<compile_context>
chip_gen: v5e
topology: v5e:2x2
jax: 0.10.0
libtpu: 0.0.40
codegen_flags: <defaults>
</compile_context>

<pallas_src>
import functools

import jax
import jax.numpy as jnp
from jax import lax
from jax.experimental import pallas as pl
from jax.experimental.pallas import tpu as pltpu

MIN_VALUE = -1e38
# 48 MiB: leaves headroom on v7x's 64 MiB physical VMEM; blocks below are small
# enough that this is also comfortable on 128 MiB parts (v5e / v6e).
VMEM_LIMIT = 48 * 1024 * 1024
# Native MXU dtype on v5e/v6e/v7x; accumulation is always f32.  Set to
# jnp.float32 if bit-exact f32 projections are required.
MATMUL_DTYPE = jnp.bfloat16


def _pick_div(n, candidates, default):
    """Largest/first candidate <= n that divides n, else `default`."""
    for c in candidates:
        if c <= n and n % c == 0:
            return c
    return default


# ----------------------------- Pallas kernels ------------------------------

def _dwconv5x5_kernel(x_ref, w_ref, out_ref, xpad_ref):
    """Depthwise 5x5 conv (re-parameterized OmniShift), one channel block.

    x_ref:   (1, H, W, cc)      input slab (f32)
    w_ref:   (25, cc)           per-channel taps, row-major over (dy, dx)
    out_ref: (1, H, W, cc)      output slab (MATMUL_DTYPE)
    xpad_ref:(1, H+4, W+4, cc)  VMEM halo scratch (f32)
    """
    H = out_ref.shape[1]
    W = out_ref.shape[2]
    cc = out_ref.shape[3]

    # Build the zero halo in VMEM: zero ONLY the four 2-wide strips, then copy
    # the interior once (no full-buffer zero pass, no HBM pad round trip).
    zrow = jnp.zeros((1, 2, W + 4, cc), xpad_ref.dtype)
    zcol = jnp.zeros((1, H, 2, cc), xpad_ref.dtype)
    xpad_ref[:, 0:2, :, :] = zrow
    xpad_ref[:, H + 2:H + 4, :, :] = zrow
    xpad_ref[:, 2:H + 2, 0:2, :] = zcol
    xpad_ref[:, 2:H + 2, W + 2:W + 4, :] = zcol
    xpad_ref[:, 2:H + 2, 2:W + 2, :] = x_ref[...].astype(xpad_ref.dtype)

    w = w_ref[...]                                   # (25, cc) — loaded once
    acc = jnp.zeros((1, H, W, cc), jnp.float32)
    for dy in range(5):
        for dx in range(5):
            tap = w[dy * 5 + dx]                     # (cc,)
            acc = acc + xpad_ref[:, dy:dy + H, dx:dx + W, :] * tap
    out_ref[...] = acc.astype(out_ref.dtype)
    # TODO(synk): for very large H*W additionally strip-tile over H (halo-aware
    # DMA) and do the dx shifts with pltpu.roll + edge masks on the XLU.


def _proj_kernel(x_ref, wkvr_ref, k_ref, v_ref, sr_ref):
    """Fused k/v/r projection: one bf16 MXU matmul against Wk|Wv|Wr = (C, 3C)."""
    kvr = jnp.dot(x_ref[...], wkvr_ref[...], preferred_element_type=jnp.float32)
    C = k_ref.shape[1]
    k_ref[...] = kvr[:, :C]
    v_ref[...] = kvr[:, C:2 * C]
    sr_ref[...] = jax.nn.sigmoid(kvr[:, 2 * C:])


def _wkv_kernel(w_ref, u_ref, k_ref, v_ref, y_ref, p_ref, q_ref, o_ref, *, sub):
    """RWKV 'WKV' recurrence; math identical to wkv_cuda.cu kernel_forward.

    Blocks (batch dim squeezed via BlockSpec):
      w_ref / u_ref : (gb, L)        decay / first for gb channel groups
      k/v/y refs    : (S, 1, gb, L)  S timesteps in recurrence order
      p/q/o scratch : (gb, L)        running state, carried across the
                                     innermost grid axis.
    CORRECTNESS: the carry is only valid because the innermost grid axis is the
    recurrence axis and is marked "arbitrary" (sequential per (b, group));
    do not reorder the grid or mark that axis "parallel".
    """
    @pl.when(pl.program_id(2) == 0)
    def _():
        p_ref[...] = jnp.zeros(p_ref.shape, p_ref.dtype)
        q_ref[...] = jnp.zeros(q_ref.shape, q_ref.dtype)
        o_ref[...] = jnp.full(o_ref.shape, MIN_VALUE, o_ref.dtype)

    w = w_ref[...]                                   # (gb, L)
    u = u_ref[...]
    S = k_ref.shape[0]
    n_sub = S // sub

    def chunk(ci, carry):
        p, q, o = carry
        base = pl.multiple_of(ci * sub, sub)
        kc = k_ref[pl.ds(base, sub)]                 # (sub, 1, gb, L) chunked load
        vc = v_ref[pl.ds(base, sub)]
        for i in range(sub):                         # statically unrolled steps
            kt = kc[i, 0]                            # (gb, L) full-vreg rows
            vt = vc[i, 0]
            uk = u + kt                              # hoisted common subexpr
            wo = w + o
            no = jnp.maximum(o, uk)
            a = jnp.exp(o - no)
            b = jnp.exp(uk - no)
            # exact f32 divide (matches the CUDA reference; no approx recip)
            yrow = (a * p + b * vt) / (a * q + b)
            y_ref[pl.ds(base + i, 1)] = yrow[None, None]
            no2 = jnp.maximum(wo, kt)
            a2 = jnp.exp(wo - no2)
            b2 = jnp.exp(kt - no2)
            p = a2 * p + b2 * vt
            q = a2 * q + b2
            o = no2
        return (p, q, o)

    p, q, o = lax.fori_loop(0, n_sub, chunk,
                            (p_ref[...], q_ref[...], o_ref[...]))
    p_ref[...] = p
    q_ref[...] = q
    o_ref[...] = o


def _output_kernel(sr_ref, v_ref, wo_ref, o_ref):
    """out = (sr * v) @ Wo, bf16 MXU operands, f32 accumulation."""
    rv = (sr_ref[...] * v_ref[...]).astype(wo_ref.dtype)
    o_ref[...] = jnp.dot(rv, wo_ref[...], preferred_element_type=jnp.float32)


# ------------------------------ wrappers ------------------------------------

def omni_shift(x_bhwc, w25):
    B, H, W, C = x_bhwc.shape
    cc = 128 if C % 128 == 0 else C                  # lane-dense channel block
    return pl.pallas_call(
        _dwconv5x5_kernel,
        out_shape=jax.ShapeDtypeStruct((B, H, W, C), MATMUL_DTYPE),
        grid=(B, C // cc),
        in_specs=[
            pl.BlockSpec((1, H, W, cc), lambda b, c: (b, 0, 0, c)),
            pl.BlockSpec((25, cc), lambda b, c: (0, c)),
        ],
        out_specs=pl.BlockSpec((1, H, W, cc), lambda b, c: (b, 0, 0, c)),
        scratch_shapes=[pltpu.VMEM((1, H + 4, W + 4, cc), jnp.float32)],
        compiler_params=pltpu.CompilerParams(
            dimension_semantics=("parallel", "parallel"),
            vmem_limit_bytes=VMEM_LIMIT),
    )(x_bhwc, w25)


def projections(x2d, wkvr_t, *, row_tile=512):
    """k, v, sigmoid(r) from a single fused bf16 matmul, row-tiled over N."""
    N, C = x2d.shape
    tn = _pick_div(N, (row_tile, 512, 256, 128, 64, 32, 16, 8), N)
    sds = jax.ShapeDtypeStruct((N, C), jnp.float32)
    return pl.pallas_call(
        _proj_kernel,
        out_shape=(sds, sds, sds),
        grid=(N // tn,),
        in_specs=[
            pl.BlockSpec((tn, C), lambda i: (i, 0)),
            pl.BlockSpec((C, 3 * C), lambda i: (0, 0)),      # weight resident
        ],
        out_specs=(
            pl.BlockSpec((tn, C), lambda i: (i, 0)),
            pl.BlockSpec((tn, C), lambda i: (i, 0)),
            pl.BlockSpec((tn, C), lambda i: (i, 0)),
        ),
        compiler_params=pltpu.CompilerParams(
            dimension_semantics=("parallel",),
            vmem_limit_bytes=VMEM_LIMIT),
    )(x2d.astype(MATMUL_DTYPE), wkvr_t.astype(MATMUL_DTYPE))


def run_wkv(w_dec, u_first, k, v, resolution, *, wmajor=False):
    """WKV recurrence, time-major (h-major) or w-major traversal.

    wmajor=False: timesteps t = 0..T-1 in row-major (h, w) order.
    wmajor=True : timesteps are visited in (w outer, h inner) order directly
                  through the BlockSpecs of a (B, h, w, G, L) view, so no
                  hw<->wh transpose of k / v / y ever touches HBM.
    """
    B, T, C = k.shape
    h, w = resolution
    L = 128 if C % 128 == 0 else C                   # lane width
    G = C // L                                       # channel groups
    gb = 8 if G % 8 == 0 else G                      # groups per instance (sublanes)
    # TODO(synk): pad C (and the fused weights) to a multiple of 128 when it is
    # not, so the L=128 / gb=8 vreg packing also applies to shapes like C=192.

    w2 = w_dec.reshape(G, L).astype(jnp.float32)
    u2 = u_first.reshape(G, L).astype(jnp.float32)

    if wmajor:
        k5 = k.reshape(B, h, w, G, L)
        v5 = v.reshape(B, h, w, G, L)
        steps, n_carry = h, w
        ts_spec = pl.BlockSpec((None, h, 1, gb, L),
                               lambda b, g, t: (b, 0, t, g, 0))
    else:
        tc = _pick_div(T, (256, 128, 64, 32, 16, 8), T)     # time chunk
        k5 = k.reshape(B, T, 1, G, L)
        v5 = v.reshape(B, T, 1, G, L)
        steps, n_carry = tc, T // tc
        ts_spec = pl.BlockSpec((None, tc, 1, gb, L),
                               lambda b, g, t: (b, t, 0, g, 0))

    sub = _pick_div(steps, (8, 4, 2), 1)             # statically unrolled window
    wu_spec = pl.BlockSpec((gb, L), lambda b, g, t: (g, 0))

    out = pl.pallas_call(
        functools.partial(_wkv_kernel, sub=sub),
        out_shape=jax.ShapeDtypeStruct(k5.shape, jnp.float32),
        grid=(B, G // gb, n_carry),
        in_specs=[wu_spec, wu_spec, ts_spec, ts_spec],
        out_specs=ts_spec,
        scratch_shapes=[pltpu.VMEM((gb, L), jnp.float32) for _ in range(3)],
        compiler_params=pltpu.CompilerParams(
            # Innermost axis carries the recurrence state -> must stay innermost
            # and "arbitrary"; the other two are independent (megacore-shardable).
            dimension_semantics=("parallel", "parallel", "arbitrary"),
            vmem_limit_bytes=VMEM_LIMIT),
    )(w2, u2, k5, v5)
    return out.reshape(B, T, C)


def output_proj(sr2d, v2d, wo_t, *, row_tile=512):
    N, C = sr2d.shape
    tn = _pick_div(N, (row_tile, 512, 256, 128, 64, 32, 16, 8), N)
    return pl.pallas_call(
        _output_kernel,
        out_shape=jax.ShapeDtypeStruct((N, C), jnp.float32),
        grid=(N // tn,),
        in_specs=[
            pl.BlockSpec((tn, C), lambda i: (i, 0)),
            pl.BlockSpec((tn, C), lambda i: (i, 0)),
            pl.BlockSpec((C, C), lambda i: (0, 0)),          # weight resident
        ],
        out_specs=pl.BlockSpec((tn, C), lambda i: (i, 0)),
        compiler_params=pltpu.CompilerParams(
            dimension_semantics=("parallel",),
            vmem_limit_bytes=VMEM_LIMIT),
    )(sr2d, v2d, wo_t.astype(MATMUL_DTYPE))


# --------------------------- full module forward ----------------------------

def vrwkv_spatial_mix_forward(x, resolution, params):
    """params must come from prepare_params() (weights pre-fused / pre-cast)."""
    B, T, C = x.shape
    h, w = resolution
    assert T == h * w
    recurrence = 2

    # --- OmniShift (re-parameterized 5x5 depthwise conv), channel-tiled ---
    x_img = x.reshape(B, h, w, C)                    # 'b (h w) c -> b h w c'
    x_shift = omni_shift(x_img, params["omni_w25"])  # bf16 (MATMUL_DTYPE)
    # TODO(synk): fuse the shifted-row production directly into the k/v/r
    # projection kernel to drop this intermediate HBM round trip entirely.

    # --- fused key / value / receptance projections (+ sigmoid) ---
    k2d, v2d, sr2d = projections(x_shift.reshape(B * T, C), params["kvr_w_t"])
    k = k2d.reshape(B, T, C)
    v = v2d.reshape(B, T, C)

    # --- bidirectional spatial WKV recurrence ---
    # Second pass walks the tensors in w-major order straight through the
    # BlockSpecs (no hw<->wh XLA transposes).
    for j in range(recurrence):
        dec = params["spatial_decay"][j] / T
        fst = params["spatial_first"][j] / T
        v = run_wkv(dec, fst, k, v, (h, w), wmajor=(j % 2 == 1))

    # key_norm is None in the reference config -> skipped.
    out = output_proj(sr2d, v.reshape(B * T, C), params["output_w_t"])
    return out.reshape(B, T, C)


# ------------------------------ parameters -----------------------------------

def init_params(key, n_embd, recurrence=2):
    """Raw parameters, laid out like the PyTorch module."""
    C = n_embd
    ks = jax.random.split(key, 10)
    scale = 1.0 / jnp.sqrt(jnp.float32(C))
    return {
        "conv1x1_w": jax.random.normal(ks[0], (C, 1, 1, 1), jnp.float32) * 0.1,
        "conv3x3_w": jax.random.normal(ks[1], (C, 1, 3, 3), jnp.float32) * 0.1,
        "conv5x5_w": jax.random.normal(ks[2], (C, 1, 5, 5), jnp.float32) * 0.1,
        "alpha": jax.random.normal(ks[3], (4,), jnp.float32) * 0.5,
        "key_w": jax.random.normal(ks[4], (C, C), jnp.float32) * scale,
        "value_w": jax.random.normal(ks[5], (C, C), jnp.float32) * scale,
        "receptance_w": jax.random.normal(ks[6], (C, C), jnp.float32) * scale,
        "output_w": jax.random.normal(ks[7], (C, C), jnp.float32) * scale,
        "spatial_decay": jax.random.normal(ks[8], (recurrence, C), jnp.float32),
        "spatial_first": jax.random.normal(ks[9], (recurrence, C), jnp.float32),
    }


def prepare_params(raw):
    """One-time setup: OmniShift reparam merge + weight fusion / bf16 cast."""
    alpha = raw["alpha"]
    w1 = raw["conv1x1_w"][:, 0, 0, 0]                  # (C,)
    w3 = raw["conv3x3_w"][:, 0]                        # (C, 3, 3)
    w5 = raw["conv5x5_w"][:, 0]                        # (C, 5, 5)
    comb = alpha[3] * w5
    comb = comb.at[:, 1:4, 1:4].add(alpha[2] * w3)
    comb = comb.at[:, 2, 2].add(alpha[0] + alpha[1] * w1)
    w25 = jnp.transpose(comb, (1, 2, 0)).reshape(25, -1)     # (25, C)

    kvr_w_t = jnp.concatenate(
        [raw["key_w"].T, raw["value_w"].T, raw["receptance_w"].T], axis=1)

    return {
        "omni_w25": w25.astype(jnp.float32),               # (25, C)
        "kvr_w_t": kvr_w_t.astype(MATMUL_DTYPE),           # (C, 3C) = Wk|Wv|Wr
        "output_w_t": raw["output_w"].T.astype(MATMUL_DTYPE),  # (C, C) (in,out)
        "spatial_decay": raw["spatial_decay"],             # (recurrence, C)
        "spatial_first": raw["spatial_first"],             # (recurrence, C)
    }


# ----------------------------------- main ------------------------------------

if __name__ == "__main__":
    B, C = 2, 32
    h, w = 8, 8
    T = h * w

    key = jax.random.PRNGKey(0)
    kx, kp = jax.random.split(key)
    x = jax.random.normal(kx, (B, T, C), jnp.float32)
    params = prepare_params(init_params(kp, C))

    @jax.jit
    def fwd(x, params):
        return vrwkv_spatial_mix_forward(x, (h, w), params)

    out = jax.block_until_ready(fwd(x, params))
    assert out.shape == (B, T, C)
    assert bool(jnp.all(jnp.isfinite(out)))
    print("KERNEL_OK")
</pallas_src>

<mosaic_0001>
module attributes {stable_mosaic.version = 11 : i64} {
  func.func @_proj_kernel(%arg0: i32, %arg1: memref<128x32xbf16, #tpu.memory_space<vmem>>, %arg2: memref<32x96xbf16, #tpu.memory_space<vmem>>, %arg3: memref<128x32xf32, #tpu.memory_space<vmem>>, %arg4: memref<128x32xf32, #tpu.memory_space<vmem>>, %arg5: memref<128x32xf32, #tpu.memory_space<vmem>>) attributes {dimension_semantics = [#tpu.dimension_semantics<parallel>], iteration_bounds = array<i64: 1>, scalar_prefetch = 0 : i64, scratch_operands = 0 : i64, tpu.core_type = #tpu.core_type<tc>, window_params = [{transform_indices = @transform_0, window_bounds = array<i64: 128, 32>}, {pipeline_mode = #tpu.pipeline_mode<synchronous>, transform_indices = @transform_1, window_bounds = array<i64: 32, 96>}, {transform_indices = @transform_2, window_bounds = array<i64: 128, 32>}, {transform_indices = @transform_3, window_bounds = array<i64: 128, 32>}, {transform_indices = @transform_4, window_bounds = array<i64: 128, 32>}]} {
    %c0 = arith.constant 0 : index
    %c0_0 = arith.constant 0 : index
    %0 = vector.load %arg1[%c0, %c0_0] : memref<128x32xbf16, #tpu.memory_space<vmem>>, vector<128x32xbf16>
    %c0_1 = arith.constant 0 : index
    %c0_2 = arith.constant 0 : index
    %1 = vector.load %arg2[%c0_1, %c0_2] : memref<32x96xbf16, #tpu.memory_space<vmem>>, vector<32x96xbf16>
    %cst = arith.constant dense<0.000000e+00> : vector<128x96xf32>
    %2 = tpu.matmul %0, %1, %cst {dimension_numbers = #tpu.dot_dimension_numbers<[1], [0], [0], [1], [0, 0, 1, 1], [], []>} : vector<128x32xbf16>, vector<32x96xbf16>, vector<128x96xf32> -> vector<128x96xf32>
    %3 = vector.extract_strided_slice %2 {offsets = [0, 0], sizes = [128, 32], strides = [1, 1]} : vector<128x96xf32> to vector<128x32xf32>
    %c0_3 = arith.constant 0 : index
    %c0_4 = arith.constant 0 : index
    %4 = vector.load %arg3[%c0_3, %c0_4] : memref<128x32xf32, #tpu.memory_space<vmem>>, vector<128x32xf32>
    tpu.vector_store %arg3[%c0_3, %c0_4], %3 {strides = array<i32>} : memref<128x32xf32, #tpu.memory_space<vmem>>, vector<128x32xf32>,
    %5 = vector.extract_strided_slice %2 {offsets = [0, 32], sizes = [128, 32], strides = [1, 1]} : vector<128x96xf32> to vector<128x32xf32>
    %c0_5 = arith.constant 0 : index
    %c0_6 = arith.constant 0 : index
    %6 = vector.load %arg4[%c0_5, %c0_6] : memref<128x32xf32, #tpu.memory_space<vmem>>, vector<128x32xf32>
    tpu.vector_store %arg4[%c0_5, %c0_6], %5 {strides = array<i32>} : memref<128x32xf32, #tpu.memory_space<vmem>>, vector<128x32xf32>,
    %7 = vector.extract_strided_slice %2 {offsets = [0, 64], sizes = [128, 32], strides = [1, 1]} : vector<128x96xf32> to vector<128x32xf32>
    %8 = arith.negf %7 : vector<128x32xf32>
    %9 = math.exp %8 : vector<128x32xf32>
    %cst_7 = arith.constant 1.000000e+00 : f32
    %10 = vector.broadcast %cst_7 : f32 to vector<128x32xf32>
    %11 = arith.addf %10, %9 : vector<128x32xf32>
    %12 = arith.divf %10, %11 : vector<128x32xf32>
    %c0_8 = arith.constant 0 : index
    %c0_9 = arith.constant 0 : index
    %13 = vector.load %arg5[%c0_8, %c0_9] : memref<128x32xf32, #tpu.memory_space<vmem>>, vector<128x32xf32>
    tpu.vector_store %arg5[%c0_8, %c0_9], %12 {strides = array<i32>} : memref<128x32xf32, #tpu.memory_space<vmem>>, vector<128x32xf32>,
    return
  }
  func.func @transform_0(%arg0: i32) -> (i32, i32) {
    %c0_i32 = arith.constant 0 : i32
    %c0_i32_0 = arith.constant 0 : i32
    return %arg0, %c0_i32 : i32, i32
  }
  func.func @transform_1(%arg0: i32) -> (i32, i32) {
    %c0_i32 = arith.constant 0 : i32
    %c0_i32_0 = arith.constant 0 : i32
    %c0_i32_1 = arith.constant 0 : i32
    return %c0_i32, %c0_i32_0 : i32, i32
  }
  func.func @transform_2(%arg0: i32) -> (i32, i32) {
    %c0_i32 = arith.constant 0 : i32
    %c0_i32_0 = arith.constant 0 : i32
    return %arg0, %c0_i32 : i32, i32
  }
  func.func @transform_3(%arg0: i32) -> (i32, i32) {
    %c0_i32 = arith.constant 0 : i32
    %c0_i32_0 = arith.constant 0 : i32
    return %arg0, %c0_i32 : i32, i32
  }
  func.func @transform_4(%arg0: i32) -> (i32, i32) {
    %c0_i32 = arith.constant 0 : i32
    %c0_i32_0 = arith.constant 0 : i32
    return %arg0, %c0_i32 : i32, i32
  }
}

module attributes {stable_mosaic.version = 11 : i64} {
  func.func @_dwconv5x5_kernel(%arg0: i32, %arg1: i32, %arg2: memref<1x8x8x32xf32, #tpu.memory_space<vmem>>, %arg3: memref<25x32xf32, #tpu.memory_space<vmem>>, %arg4: memref<1x8x8x32xbf16, #tpu.memory_space<vmem>>, %arg5: memref<1x12x12x32xf32, #tpu.memory_space<vmem>>) attributes {dimension_semantics = [#tpu.dimension_semantics<parallel>, #tpu.dimension_semantics<parallel>], iteration_bounds = array<i64: 2, 1>, scalar_prefetch = 0 : i64, scratch_operands = 1 : i64, tpu.core_type = #tpu.core_type<tc>, window_params = [{transform_indices = @transform_0, window_bounds = array<i64: 1, 8, 8, 32>}, {transform_indices = @transform_1, window_bounds = array<i64: 25, 32>}, {transform_indices = @transform_2, window_bounds = array<i64: 1, 8, 8, 32>}]} {
    %cst = arith.constant 0.000000e+00 : f32
    %0 = vector.broadcast %cst : f32 to vector<1x2x12x32xf32>
    %cst_0 = arith.constant 0.000000e+00 : f32
    %1 = vector.broadcast %cst_0 : f32 to vector<1x8x2x32xf32>
    %c0 = arith.constant 0 : index
    %c0_1 = arith.constant 0 : index
    %c0_2 = arith.constant 0 : index
    %c0_3 = arith.constant 0 : index
    %2 = vector.load %arg5[%c0, %c0_1, %c0_2, %c0_3] : memref<1x12x12x32xf32, #tpu.memory_space<vmem>>, vector<1x2x12x32xf32>
    tpu.vector_store %arg5[%c0, %c0_1, %c0_2, %c0_3], %0 {strides = array<i32>} : memref<1x12x12x32xf32, #tpu.memory_space<vmem>>, vector<1x2x12x32xf32>,
    %c0_4 = arith.constant 0 : index
    %c10 = arith.constant 10 : index
    %c0_5 = arith.constant 0 : index
    %c0_6 = arith.constant 0 : index
    %3 = vector.load %arg5[%c0_4, %c10, %c0_5, %c0_6] : memref<1x12x12x32xf32, #tpu.memory_space<vmem>>, vector<1x2x12x32xf32>
    tpu.vector_store %arg5[%c0_4, %c10, %c0_5, %c0_6], %0 {strides = array<i32>} : memref<1x12x12x32xf32, #tpu.memory_space<vmem>>, vector<1x2x12x32xf32>,
    %c0_7 = arith.constant 0 : index
    %c2 = arith.constant 2 : index
    %c0_8 = arith.constant 0 : index
    %c0_9 = arith.constant 0 : index
    %4 = vector.load %arg5[%c0_7, %c2, %c0_8, %c0_9] : memref<1x12x12x32xf32, #tpu.memory_space<vmem>>, vector<1x8x2x32xf32>
    tpu.vector_store %arg5[%c0_7, %c2, %c0_8, %c0_9], %1 {strides = array<i32>} : memref<1x12x12x32xf32, #tpu.memory_space<vmem>>, vector<1x8x2x32xf32>,
    %c0_10 = arith.constant 0 : index
    %c2_11 = arith.constant 2 : index
    %c10_12 = arith.constant 10 : index
    %c0_13 = arith.constant 0 : index
    %5 = vector.load %arg5[%c0_10, %c2_11, %c10_12, %c0_13] : memref<1x12x12x32xf32, #tpu.memory_space<vmem>>, vector<1x8x2x32xf32>
    tpu.vector_store %arg5[%c0_10, %c2_11, %c10_12, %c0_13], %1 {strides = array<i32>} : memref<1x12x12x32xf32, #tpu.memory_space<vmem>>, vector<1x8x2x32xf32>,
    %c0_14 = arith.constant 0 : index
    %c0_15 = arith.constant 0 : index
    %c0_16 = arith.constant 0 : index
    %c0_17 = arith.constant 0 : index
    %6 = vector.load %arg2[%c0_14, %c0_15, %c0_16, %c0_17] : memref<1x8x8x32xf32, #tpu.memory_space<vmem>>, vector<1x8x8x32xf32>
    %c0_18 = arith.constant 0 : index
    %c2_19 = arith.constant 2 : index
    %c2_20 = arith.constant 2 : index
    %c0_21 = arith.constant 0 : index
    %7 = vector.load %arg5[%c0_18, %c2_19, %c2_20, %c0_21] : memref<1x12x12x32xf32, #tpu.memory_space<vmem>>, vector<1x8x8x32xf32>
    tpu.vector_store %arg5[%c0_18, %c2_19, %c2_20, %c0_21], %6 {strides = array<i32>} : memref<1x12x12x32xf32, #tpu.memory_space<vmem>>, vector<1x8x8x32xf32>,
    %c0_22 = arith.constant 0 : index
    %c0_23 = arith.constant 0 : index
    %8 = vector.load %arg3[%c0_22, %c0_23] : memref<25x32xf32, #tpu.memory_space<vmem>>, vector<25x32xf32>
    %cst_24 = arith.constant 0.000000e+00 : f32
    %9 = vector.broadcast %cst_24 : f32 to vector<1x8x8x32xf32>
    %10 = vector.extract_strided_slice %8 {offsets = [0, 0], sizes = [1, 32], strides = [1, 1]} : vector<25x32xf32> to vector<1x32xf32>
    %11 = vector.shape_cast %10 : vector<1x32xf32> to vector<32xf32>
    %c0_25 = arith.constant 0 : index
    %c0_26 = arith.constant 0 : index
    %c0_27 = arith.constant 0 : index
    %c0_28 = arith.constant 0 : index
    %12 = vector.load %arg5[%c0_25, %c0_26, %c0_27, %c0_28] : memref<1x12x12x32xf32, #tpu.memory_space<vmem>>, vector<1x8x8x32xf32>
    %13 = vector.shape_cast %11 : vector<32xf32> to vector<1x1x1x32xf32>
    %14 = vector.broadcast %13 : vector<1x1x1x32xf32> to vector<1x8x8x32xf32>
    %15 = arith.mulf %12, %14 : vector<1x8x8x32xf32>
    %16 = arith.addf %9, %15 : vector<1x8x8x32xf32>
    %17 = vector.extract_strided_slice %8 {offsets = [1, 0], sizes = [1, 32], strides = [1, 1]} : vector<25x32xf32> to vector<1x32xf32>
    %18 = vector.shape_cast %17 : vector<1x32xf32> to vector<32xf32>
    %c0_29 = arith.constant 0 : index
    %c0_30 = arith.constant 0 : index
    %c1 = arith.constant 1 : index
    %c0_31 = arith.constant 0 : index
    %19 = vector.load %arg5[%c0_29, %c0_30, %c1, %c0_31] : memref<1x12x12x32xf32, #tpu.memory_space<vmem>>, vector<1x8x8x32xf32>
    %20 = vector.shape_cast %18 : vector<32xf32> to vector<1x1x1x32xf32>
    %21 = vector.broadcast %20 : vector<1x1x1x32xf32> to vector<1x8x8x32xf32>
    %22 = arith.mulf %19, %21 : vector<1x8x8x32xf32>
    %23 = arith.addf %16, %22 : vector<1x8x8x32xf32>
    %24 = vector.extract_strided_slice %8 {offsets = [2, 0], sizes = [1, 32], strides = [1, 1]} : vector<25x32xf32> to vector<1x32xf32>
    %25 = vector.shape_cast %24 : vector<1x32xf32> to vector<32xf32>
    %c0_32 = arith.constant 0 : index
    %c0_33 = arith.constant 0 : index
    %c2_34 = arith.constant 2 : index
    %c0_35 = arith.constant 0 : index
    %26 = vector.load %arg5[%c0_32, %c0_33, %c2_34, %c0_35] : memref<1x12x12x32xf32, #tpu.memory_space<vmem>>, vector<1x8x8x32xf32>
    %27 = vector.shape_cast %25 : vector<32xf32> to vector<1x1x1x32xf32>
    %28 = vector.broadcast %27 : vector<1x1x1x32xf32> to vector<1x8x8x32xf32>
    %29 = arith.mulf %26, %28 : vector<1x8x8x32xf32>
    %30 = arith.addf %23, %29 : vector<1x8x8x32xf32>
    %31 = vector.extract_strided_slice %8 {offsets = [3, 0], sizes = [1, 32], strides = [1, 1]} : vector<25x32xf32> to vector<1x32xf32>
    %32 = vector.shape_cast %31 : vector<1x32xf32> to vector<32xf32>
    %c0_36 = arith.constant 0 : index
    %c0_37 = arith.constant 0 : index
    %c3 = arith.constant 3 : index
    %c0_38 = arith.constant 0 : index
    %33 = vector.load %arg5[%c0_36, %c0_37, %c3, %c0_38] : memref<1x12x12x32xf32, #tpu.memory_space<vmem>>, vector<1x8x8x32xf32>
    %34 = vector.shape_cast %32 : vector<32xf32> to vector<1x1x1x32xf32>
    %35 = vector.broadcast %34 : vector<1x1x1x32xf32> to vector<1x8x8x32xf32>
    %36 = arith.mulf %33, %35 : vector<1x8x8x32xf32>
    %37 = arith.addf %30, %36 : vector<1x8x8x32xf32>
    %38 = vector.extract_strided_slice %8 {offsets = [4, 0], sizes = [1, 32], strides = [1, 1]} : vector<25x32xf32> to vector<1x32xf32>
    %39 = vector.shape_cast %38 : vector<1x32xf32> to vector<32xf32>
    %c0_39 = arith.constant 0 : index
    %c0_40 = arith.constant 0 : index
    %c4 = arith.constant 4 : index
    %c0_41 = arith.constant 0 : index
    %40 = vector.load %arg5[%c0_39, %c0_40, %c4, %c0_41] : memref<1x12x12x32xf32, #tpu.memory_space<vmem>>, vector<1x8x8x32xf32>
    %41 = vector.shape_cast %39 : vector<32xf32> to vector<1x1x1x32xf32>
    %42 = vector.broadcast %41 : vector<1x1x1x32xf32> to vector<1x8x8x32xf32>
    %43 = arith.mulf %40, %42 : vector<1x8x8x32xf32>
    %44 = arith.addf %37, %43 : vector<1x8x8x32xf32>
    %45 = vector.extract_strided_slice %8 {offsets = [5, 0], sizes = [1, 32], strides = [1, 1]} : vector<25x32xf32> to vector<1x32xf32>
    %46 = vector.shape_cast %45 : vector<1x32xf32> to vector<32xf32>
    %c0_42 = arith.constant 0 : index
    %c1_43 = arith.constant 1 : index
    %c0_44 = arith.constant 0 : index
    %c0_45 = arith.constant 0 : index
    %47 = vector.load %arg5[%c0_42, %c1_43, %c0_44, %c0_45] : memref<1x12x12x32xf32, #tpu.memory_space<vmem>>, vector<1x8x8x32xf32>
    %48 = vector.shape_cast %46 : vector<32xf32> to vector<1x1x1x32xf32>
    %49 = vector.broadcast %48 : vector<1x1x1x32xf32> to vector<1x8x8x32xf32>
    %50 = arith.mulf %47, %49 : vector<1x8x8x32xf32>
    %51 = arith.addf %44, %50 : vector<1x8x8x32xf32>
    %52 = vector.extract_strided_slice %8 {offsets = [6, 0], sizes = [1, 32], strides = [1, 1]} : vector<25x32xf32> to vector<1x32xf32>
    %53 = vector.shape_cast %52 : vector<1x32xf32> to vector<32xf32>
    %c0_46 = arith.constant 0 : index
    %c1_47 = arith.constant 1 : index
    %c1_48 = arith.constant 1 : index
    %c0_49 = arith.constant 0 : index
    %54 = vector.load %arg5[%c0_46, %c1_47, %c1_48, %c0_49] : memref<1x12x12x32xf32, #tpu.memory_space<vmem>>, vector<1x8x8x32xf32>
    %55 = vector.shape_cast %53 : vector<32xf32> to vector<1x1x1x32xf32>
    %56 = vector.broadcast %55 : vector<1x1x1x32xf32> to vector<1x8x8x32xf32>
    %57 = arith.mulf %54, %56 : vector<1x8x8x32xf32>
    %58 = arith.addf %51, %57 : vector<1x8x8x32xf32>
    %59 = vector.extract_strided_slice %8 {offsets = [7, 0], sizes = [1, 32], strides = [1, 1]} : vector<25x32xf32> to vector<1x32xf32>
    %60 = vector.shape_cast %59 : vector<1x32xf32> to vector<32xf32>
    %c0_50 = arith.constant 0 : index
    %c1_51 = arith.constant 1 : index
    %c2_52 = arith.constant 2 : index
    %c0_53 = arith.constant 0 : index
    %61 = vector.load %arg5[%c0_50, %c1_51, %c2_52, %c0_53] : memref<1x12x12x32xf32, #tpu.memory_space<vmem>>, vector<1x8x8x32xf32>
    %62 = vector.shape_cast %60 : vector<32xf32> to vector<1x1x1x32xf32>
    %63 = vector.broadcast %62 : vector<1x1x1x32xf32> to vector<1x8x8x32xf32>
    %64 = arith.mulf %61, %63 : vector<1x8x8x32xf32>
    %65 = arith.addf %58, %64 : vector<1x8x8x32xf32>
    %66 = vector.extract_strided_slice %8 {offsets = [8, 0], sizes = [1, 32], strides = [1, 1]} : vector<25x32xf32> to vector<1x32xf32>
    %67 = vector.shape_cast %66 : vector<1x32xf32> to vector<32xf32>
    %c0_54 = arith.constant 0 : index
    %c1_55 = arith.constant 1 : index
    %c3_56 = arith.constant 3 : index
    %c0_57 = arith.constant 0 : index
    %68 = vector.load %arg5[%c0_54, %c1_55, %c3_56, %c0_57] : memref<1x12x12x32xf32, #tpu.memory_space<vmem>>, vector<1x8x8x32xf32>
    %69 = vector.shape_cast %67 : vector<32xf32> to vector<1x1x1x32xf32>
    %70 = vector.broadcast %69 : vector<1x1x1x32xf32> to vector<1x8x8x32xf32>
    %71 = arith.mulf %68, %70 : vector<1x8x8x32xf32>
    %72 = arith.addf %65, %71 : vector<1x8x8x32xf32>
    %73 = vector.extract_strided_slice %8 {offsets = [9, 0], sizes = [1, 32], strides = [1, 1]} : vector<25x32xf32> to vector<1x32xf32>
    %74 = vector.shape_cast %73 : vector<1x32xf32> to vector<32xf32>
    %c0_58 = arith.constant 0 : index
    %c1_59 = arith.constant 1 : index
    %c4_60 = arith.constant 4 : index
    %c0_61 = arith.constant 0 : index
    %75 = vector.load %arg5[%c0_58, %c1_59, %c4_60, %c0_61] : memref<1x12x12x32xf32, #tpu.memory_space<vmem>>, vector<1x8x8x32xf32>
    %76 = vector.shape_cast %74 : vector<32xf32> to vector<1x1x1x32xf32>
    %77 = vector.broadcast %76 : vector<1x1x1x32xf32> to vector<1x8x8x32xf32>
    %78 = arith.mulf %75, %77 : vector<1x8x8x32xf32>
    %79 = arith.addf %72, %78 : vector<1x8x8x32xf32>
    %80 = vector.extract_strided_slice %8 {offsets = [10, 0], sizes = [1, 32], strides = [1, 1]} : vector<25x32xf32> to vector<1x32xf32>
    %81 = vector.shape_cast %80 : vector<1x32xf32> to vector<32xf32>
    %c0_62 = arith.constant 0 : index
    %c2_63 = arith.constant 2 : index
    %c0_64 = arith.constant 0 : index
    %c0_65 = arith.constant 0 : index
    %82 = vector.load %arg5[%c0_62, %c2_63, %c0_64, %c0_65] : memref<1x12x12x32xf32, #tpu.memory_space<vmem>>, vector<1x8x8x32xf32>
    %83 = vector.shape_cast %81 : vector<32xf32> to vector<1x1x1x32xf32>
    %84 = vector.broadcast %83 : vector<1x1x1x32xf32> to vector<1x8x8x32xf32>
    %85 = arith.mulf %82, %84 : vector<1x8x8x32xf32>
    %86 = arith.addf %79, %85 : vector<1x8x8x32xf32>
    %87 = vector.extract_strided_slice %8 {offsets = [11, 0], sizes = [1, 32], strides = [1, 1]} : vector<25x32xf32> to vector<1x32xf32>
    %88 = vector.shape_cast %87 : vector<1x32xf32> to vector<32xf32>
    %c0_66 = arith.constant 0 : index
    %c2_67 = arith.constant 2 : index
    %c1_68 = arith.constant 1 : index
    %c0_69 = arith.constant 0 : index
    %89 = vector.load %arg5[%c0_66, %c2_67, %c1_68, %c0_69] : memref<1x12x12x32xf32, #tpu.memory_space<vmem>>, vector<1x8x8x32xf32>
    %90 = vector.shape_cast %88 : vector<32xf32> to vector<1x1x1x32xf32>
    %91 = vector.broadcast %90 : vector<1x1x1x32xf32> to vector<1x8x8x32xf32>
    %92 = arith.mulf %89, %91 : vector<1x8x8x32xf32>
    %93 = arith.addf %86, %92 : vector<1x8x8x32xf32>
    %94 = vector.extract_strided_slice %8 {offsets = [12, 0], sizes = [1, 32], strides = [1, 1]} : vector<25x32xf32> to vector<1x32xf32>
    %95 = vector.shape_cast %94 : vector<1x32xf32> to vector<32xf32>
    %c0_70 = arith.constant 0 : index
    %c2_71 = arith.constant 2 : index
    %c2_72 = arith.constant 2 : index
    %c0_73 = arith.constant 0 : index
    %96 = vector.load %arg5[%c0_70, %c2_71, %c2_72, %c0_73] : memref<1x12x12x32xf32, #tpu.memory_space<vmem>>, vector<1x8x8x32xf32>
    %97 = vector.shape_cast %95 : vector<32xf32> to vector<1x1x1x32xf32>
    %98 = vector.broadcast %97 : vector<1x1x1x32xf32> to vector<1x8x8x32xf32>
    %99 = arith.mulf %96, %98 : vector<1x8x8x32xf32>
    %100 = arith.addf %93, %99 : vector<1x8x8x32xf32>
    %101 = vector.extract_strided_slice %8 {offsets = [13, 0], sizes = [1, 32], strides = [1, 1]} : vector<25x32xf32> to vector<1x32xf32>
    %102 = vector.shape_cast %101 : vector<1x32xf32> to vector<32xf32>
    %c0_74 = arith.constant 0 : index
    %c2_75 = arith.constant 2 : index
    %c3_76 = arith.constant 3 : index
    %c0_77 = arith.constant 0 : index
    %103 = vector.load %arg5[%c0_74, %c2_75, %c3_76, %c0_77] : memref<1x12x12x32xf32, #tpu.memory_space<vmem>>, vector<1x8x8x32xf32>
    %104 = vector.shape_cast %102 : vector<32xf32> to vector<1x1x1x32xf32>
    %105 = vector.broadcast %104 : vector<1x1x1x32xf32> to vector<1x8x8x32xf32>
    %106 = arith.mulf %103, %105 : vector<1x8x8x32xf32>
    %107 = arith.addf %100, %106 : vector<1x8x8x32xf32>
    %108 = vector.extract_strided_slice %8 {offsets = [14, 0], sizes = [1, 32], strides = [1, 1]} : vector<25x32xf32> to vector<1x32xf32>
    %109 = vector.shape_cast %108 : vector<1x32xf32> to vector<32xf32>
    %c0_78 = arith.constant 0 : index
    %c2_79 = arith.constant 2 : index
    %c4_80 = arith.constant 4 : index
    %c0_81 = arith.constant 0 : index
    %110 = vector.load %arg5[%c0_78, %c2_79, %c4_80, %c0_81] : memref<1x12x12x32xf32, #tpu.memory_space<vmem>>, vector<1x8x8x32xf32>
    %111 = vector.shape_cast %109 : vector<32xf32> to vector<1x1x1x32xf32>
    %112 = vector.broadcast %111 : vector<1x1x1x32xf32> to vector<1x8x8x32xf32>
    %113 = arith.mulf %110, %112 : vector<1x8x8x32xf32>
    %114 = arith.addf %107, %113 : vector<1x8x8x32xf32>
    %115 = vector.extract_strided_slice %8 {offsets = [15, 0], sizes = [1, 32], strides = [1, 1]} : vector<25x32xf32> to vector<1x32xf32>
    %116 = vector.shape_cast %115 : vector<1x32xf32> to vector<32xf32>
    %c0_82 = arith.constant 0 : index
    %c3_83 = arith.constant 3 : index
    %c0_84 = arith.constant 0 : index
    %c0_85 = arith.constant 0 : index
    %117 = vector.load %arg5[%c0_82, %c3_83, %c0_84, %c0_85] : memref<1x12x12x32xf32, #tpu.memory_space<vmem>>, vector<1x8x8x32xf32>
    %118 = vector.shape_cast %116 : vector<32xf32> to vector<1x1x1x32xf32>
    %119 = vector.broadcast %118 : vector<1x1x1x32xf32> to vector<1x8x8x32xf32>
    %120 = arith.mulf %117, %119 : vector<1x8x8x32xf32>
    %121 = arith.addf %114, %120 : vector<1x8x8x32xf32>
    %122 = vector.extract_strided_slice %8 {offsets = [16, 0], sizes = [1, 32], strides = [1, 1]} : vector<25x32xf32> to vector<1x32xf32>
    %123 = vector.shape_cast %122 : vector<1x32xf32> to vector<32xf32>
    %c0_86 = arith.constant 0 : index
    %c3_87 = arith.constant 3 : index
    %c1_88 = arith.constant 1 : index
    %c0_89 = arith.constant 0 : index
    %124 = vector.load %arg5[%c0_86, %c3_87, %c1_88, %c0_89] : memref<1x12x12x32xf32, #tpu.memory_space<vmem>>, vector<1x8x8x32xf32>
    %125 = vector.shape_cast %123 : vector<32xf32> to vector<1x1x1x32xf32>
    %126 = vector.broadcast %125 : vector<1x1x1x32xf32> to vector<1x8x8x32xf32>
    %127 = arith.mulf %124, %126 : vector<1x8x8x32xf32>
    %128 = arith.addf %121, %127 : vector<1x8x8x32xf32>
    %129 = vector.extract_strided_slice %8 {offsets = [17, 0], sizes = [1, 32], strides = [1, 1]} : vector<25x32xf32> to vector<1x32xf32>
    %130 = vector.shape_cast %129 : vector<1x32xf32> to vector<32xf32>
    %c0_90 = arith.constant 0 : index
    %c3_91 = arith.constant 3 : index
    %c2_92 = arith.constant 2 : index
    %c0_93 = arith.constant 0 : index
    %131 = vector.load %arg5[%c0_90, %c3_91, %c2_92, %c0_93] : memref<1x12x12x32xf32, #tpu.memory_space<vmem>>, vector<1x8x8x32xf32>
    %132 = vector.shape_cast %130 : vector<32xf32> to vector<1x1x1x32xf32>
    %133 = vector.broadcast %132 : vector<1x1x1x32xf32> to vector<1x8x8x32xf32>
    %134 = arith.mulf %131, %133 : vector<1x8x8x32xf32>
    %135 = arith.addf %128, %134 : vector<1x8x8x32xf32>
    %136 = vector.extract_strided_slice %8 {offsets = [18, 0], sizes = [1, 32], strides = [1, 1]} : vector<25x32xf32> to vector<1x32xf32>
    %137 = vector.shape_cast %136 : vector<1x32xf32> to vector<32xf32>
    %c0_94 = arith.constant 0 : index
    %c3_95 = arith.constant 3 : index
    %c3_96 = arith.constant 3 : index
    %c0_97 = arith.constant 0 : index
    %138 = vector.load %arg5[%c0_94, %c3_95, %c3_96, %c0_97] : memref<1x12x12x32xf32, #tpu.memory_space<vmem>>, vector<1x8x8x32xf32>
    %139 = vector.shape_cast %137 : vector<32xf32> to vector<1x1x1x32xf32>
    %140 = vector.broadcast %139 : vector<1x1x1x32xf32> to vector<1x8x8x32xf32>
    %141 = arith.mulf %138, %140 : vector<1x8x8x32xf32>
    %142 = arith.addf %135, %141 : vector<1x8x8x32xf32>
    %143 = vector.extract_strided_slice %8 {offsets = [19, 0], sizes = [1, 32], strides = [1, 1]} : vector<25x32xf32> to vector<1x32xf32>
    %144 = vector.shape_cast %143 : vector<1x32xf32> to vector<32xf32>
    %c0_98 = arith.constant 0 : index
    %c3_99 = arith.constant 3 : index
    %c4_100 = arith.constant 4 : index
    %c0_101 = arith.constant 0 : index
    %145 = vector.load %arg5[%c0_98, %c3_99, %c4_100, %c0_101] : memref<1x12x12x32xf32, #tpu.memory_space<vmem>>, vector<1x8x8x32xf32>
    %146 = vector.shape_cast %144 : vector<32xf32> to vector<1x1x1x32xf32>
    %147 = vector.broadcast %146 : vector<1x1x1x32xf32> to vector<1x8x8x32xf32>
    %148 = arith.mulf %145, %147 : vector<1x8x8x32xf32>
    %149 = arith.addf %142, %148 : vector<1x8x8x32xf32>
    %150 = vector.extract_strided_slice %8 {offsets = [20, 0], sizes = [1, 32], strides = [1, 1]} : vector<25x32xf32> to vector<1x32xf32>
    %151 = vector.shape_cast %150 : vector<1x32xf32> to vector<32xf32>
    %c0_102 = arith.constant 0 : index
    %c4_103 = arith.constant 4 : index
    %c0_104 = arith.constant 0 : index
    %c0_105 = arith.constant 0 : index
    %152 = vector.load %arg5[%c0_102, %c4_103, %c0_104, %c0_105] : memref<1x12x12x32xf32, #tpu.memory_space<vmem>>, vector<1x8x8x32xf32>
    %153 = vector.shape_cast %151 : vector<32xf32> to vector<1x1x1x32xf32>
    %154 = vector.broadcast %153 : vector<1x1x1x32xf32> to vector<1x8x8x32xf32>
    %155 = arith.mulf %152, %154 : vector<1x8x8x32xf32>
    %156 = arith.addf %149, %155 : vector<1x8x8x32xf32>
    %157 = vector.extract_strided_slice %8 {offsets = [21, 0], sizes = [1, 32], strides = [1, 1]} : vector<25x32xf32> to vector<1x32xf32>
    %158 = vector.shape_cast %157 : vector<1x32xf32> to vector<32xf32>
    %c0_106 = arith.constant 0 : index
    %c4_107 = arith.constant 4 : index
    %c1_108 = arith.constant 1 : index
    %c0_109 = arith.constant 0 : index
    %159 = vector.load %arg5[%c0_106, %c4_107, %c1_108, %c0_109] : memref<1x12x12x32xf32, #tpu.memory_space<vmem>>, vector<1x8x8x32xf32>
    %160 = vector.shape_cast %158 : vector<32xf32> to vector<1x1x1x32xf32>
    %161 = vector.broadcast %160 : vector<1x1x1x32xf32> to vector<1x8x8x32xf32>
    %162 = arith.mulf %159, %161 : vector<1x8x8x32xf32>
    %163 = arith.addf %156, %162 : vector<1x8x8x32xf32>
    %164 = vector.extract_strided_slice %8 {offsets = [22, 0], sizes = [1, 32], strides = [1, 1]} : vector<25x32xf32> to vector<1x32xf32>
    %165 = vector.shape_cast %164 : vector<1x32xf32> to vector<32xf32>
    %c0_110 = arith.constant 0 : index
    %c4_111 = arith.constant 4 : index
    %c2_112 = arith.constant 2 : index
    %c0_113 = arith.constant 0 : index
    %166 = vector.load %arg5[%c0_110, %c4_111, %c2_112, %c0_113] : memref<1x12x12x32xf32, #tpu.memory_space<vmem>>, vector<1x8x8x32xf32>
    %167 = vector.shape_cast %165 : vector<32xf32> to vector<1x1x1x32xf32>
    %168 = vector.broadcast %167 : vector<1x1x1x32xf32> to vector<1x8x8x32xf32>
    %169 = arith.mulf %166, %168 : vector<1x8x8x32xf32>
    %170 = arith.addf %163, %169 : vector<1x8x8x32xf32>
    %171 = vector.extract_strided_slice %8 {offsets = [23, 0], sizes = [1, 32], strides = [1, 1]} : vector<25x32xf32> to vector<1x32xf32>
    %172 = vector.shape_cast %171 : vector<1x32xf32> to vector<32xf32>
    %c0_114 = arith.constant 0 : index
    %c4_115 = arith.constant 4 : index
    %c3_116 = arith.constant 3 : index
    %c0_117 = arith.constant 0 : index
    %173 = vector.load %arg5[%c0_114, %c4_115, %c3_116, %c0_117] : memref<1x12x12x32xf32, #tpu.memory_space<vmem>>, vector<1x8x8x32xf32>
    %174 = vector.shape_cast %172 : vector<32xf32> to vector<1x1x1x32xf32>
    %175 = vector.broadcast %174 : vector<1x1x1x32xf32> to vector<1x8x8x32xf32>
    %176 = arith.mulf %173, %175 : vector<1x8x8x32xf32>
    %177 = arith.addf %170, %176 : vector<1x8x8x32xf32>
    %178 = vector.extract_strided_slice %8 {offsets = [24, 0], sizes = [1, 32], strides = [1, 1]} : vector<25x32xf32> to vector<1x32xf32>
    %179 = vector.shape_cast %178 : vector<1x32xf32> to vector<32xf32>
    %c0_118 = arith.constant 0 : index
    %c4_119 = arith.constant 4 : index
    %c4_120 = arith.constant 4 : index
    %c0_121 = arith.constant 0 : index
    %180 = vector.load %arg5[%c0_118, %c4_119, %c4_120, %c0_121] : memref<1x12x12x32xf32, #tpu.memory_space<vmem>>, vector<1x8x8x32xf32>
    %181 = vector.shape_cast %179 : vector<32xf32> to vector<1x1x1x32xf32>
    %182 = vector.broadcast %181 : vector<1x1x1x32xf32> to vector<1x8x8x32xf32>
    %183 = arith.mulf %180, %182 : vector<1x8x8x32xf32>
    %184 = arith.addf %177, %183 : vector<1x8x8x32xf32>
    %185 = arith.truncf %184 : vector<1x8x8x32xf32> to vector<1x8x8x32xbf16>
    %c0_122 = arith.constant 0 : index
    %c0_123 = arith.constant 0 : index
    %c0_124 = arith.constant 0 : index
    %c0_125 = arith.constant 0 : index
    %186 = vector.load %arg4[%c0_122, %c0_123, %c0_124, %c0_125] : memref<1x8x8x32xbf16, #tpu.memory_space<vmem>>, vector<1x8x8x32xbf16>
    tpu.vector_store %arg4[%c0_122, %c0_123, %c0_124, %c0_125], %185 {strides = array<i32>} : memref<1x8x8x32xbf16, #tpu.memory_space<vmem>>, vector<1x8x8x32xbf16>,
    return
  }
  func.func @transform_0(%arg0: i32, %arg1: i32) -> (i32, i32, i32, i32) {
    %c0_i32 = arith.constant 0 : i32
    %c0_i32_0 = arith.constant 0 : i32
    %c0_i32_1 = arith.constant 0 : i32
    return %arg0, %c0_i32, %c0_i32_0, %arg1 : i32, i32, i32, i32
  }
  func.func @transform_1(%arg0: i32, %arg1: i32) -> (i32, i32) {
    %c0_i32 = arith.constant 0 : i32
    %c0_i32_0 = arith.constant 0 : i32
    return %c0_i32, %arg1 : i32, i32
  }
  func.func @transform_2(%arg0: i32, %arg1: i32) -> (i32, i32, i32, i32) {
    %c0_i32 = arith.constant 0 : i32
    %c0_i32_0 = arith.constant 0 : i32
    %c0_i32_1 = arith.constant 0 : i32
    return %arg0, %c0_i32, %c0_i32_0, %arg1 : i32, i32, i32, i32
  }
}

module attributes {stable_mosaic.version = 11 : i64} {
  func.func @_wkv_kernel(%arg0: i32, %arg1: i32, %arg2: i32, %arg3: memref<1x32xf32, #tpu.memory_space<vmem>>, %arg4: memref<1x32xf32, #tpu.memory_space<vmem>>, %arg5: memref<1x8x1x1x32xf32, #tpu.memory_space<vmem>>, %arg6: memref<1x8x1x1x32xf32, #tpu.memory_space<vmem>>, %arg7: memref<1x8x1x1x32xf32, #tpu.memory_space<vmem>>, %arg8: memref<1x32xf32, #tpu.memory_space<vmem>>, %arg9: memref<1x32xf32, #tpu.memory_space<vmem>>, %arg10: memref<1x32xf32, #tpu.memory_space<vmem>>) attributes {dimension_semantics = [#tpu.dimension_semantics<parallel>, #tpu.dimension_semantics<parallel>, #tpu.dimension_semantics<arbitrary>], iteration_bounds = array<i64: 2, 1, 8>, scalar_prefetch = 0 : i64, scratch_operands = 3 : i64, tpu.core_type = #tpu.core_type<tc>, window_params = [{transform_indices = @transform_0, window_bounds = array<i64: 1, 32>}, {transform_indices = @transform_1, window_bounds = array<i64: 1, 32>}, {transform_indices = @transform_2, window_bounds = array<i64: 1, 8, 1, 1, 32>}, {transform_indices = @transform_3, window_bounds = array<i64: 1, 8, 1, 1, 32>}, {transform_indices = @transform_4, window_bounds = array<i64: 1, 8, 1, 1, 32>}]} {
    %c0_i32 = arith.constant 0 : i32
    %0 = arith.cmpi eq, %arg2, %c0_i32 : i32
    %1 = arith.extui %0 : i1 to i32
    %c0_i32_0 = arith.constant 0 : i32
    %2 = arith.cmpi ne, %1, %c0_i32_0 : i32
    scf.if %2 {
      %cst = arith.constant 0.000000e+00 : f32
      %283 = vector.broadcast %cst : f32 to vector<1x32xf32>
      %c0_59 = arith.constant 0 : index
      %c0_60 = arith.constant 0 : index
      %284 = vector.load %arg8[%c0_59, %c0_60] : memref<1x32xf32, #tpu.memory_space<vmem>>, vector<1x32xf32>
      tpu.vector_store %arg8[%c0_59, %c0_60], %283 {strides = array<i32>} : memref<1x32xf32, #tpu.memory_space<vmem>>, vector<1x32xf32>,
      %cst_61 = arith.constant 0.000000e+00 : f32
      %285 = vector.broadcast %cst_61 : f32 to vector<1x32xf32>
      %c0_62 = arith.constant 0 : index
      %c0_63 = arith.constant 0 : index
      %286 = vector.load %arg9[%c0_62, %c0_63] : memref<1x32xf32, #tpu.memory_space<vmem>>, vector<1x32xf32>
      tpu.vector_store %arg9[%c0_62, %c0_63], %285 {strides = array<i32>} : memref<1x32xf32, #tpu.memory_space<vmem>>, vector<1x32xf32>,
      %cst_64 = arith.constant -9.99999968E+37 : f32
      %287 = vector.broadcast %cst_64 : f32 to vector<1x32xf32>
      %c0_65 = arith.constant 0 : index
      %c0_66 = arith.constant 0 : index
      %288 = vector.load %arg10[%c0_65, %c0_66] : memref<1x32xf32, #tpu.memory_space<vmem>>, vector<1x32xf32>
      tpu.vector_store %arg10[%c0_65, %c0_66], %287 {strides = array<i32>} : memref<1x32xf32, #tpu.memory_space<vmem>>, vector<1x32xf32>,
    } else {
    }
    %c0 = arith.constant 0 : index
    %c0_1 = arith.constant 0 : index
    %3 = vector.load %arg3[%c0, %c0_1] : memref<1x32xf32, #tpu.memory_space<vmem>>, vector<1x32xf32>
    %c0_2 = arith.constant 0 : index
    %c0_3 = arith.constant 0 : index
    %4 = vector.load %arg4[%c0_2, %c0_3] : memref<1x32xf32, #tpu.memory_space<vmem>>, vector<1x32xf32>
    %c0_4 = arith.constant 0 : index
    %c0_5 = arith.constant 0 : index
    %5 = vector.load %arg8[%c0_4, %c0_5] : memref<1x32xf32, #tpu.memory_space<vmem>>, vector<1x32xf32>
    %c0_6 = arith.constant 0 : index
    %c0_7 = arith.constant 0 : index
    %6 = vector.load %arg9[%c0_6, %c0_7] : memref<1x32xf32, #tpu.memory_space<vmem>>, vector<1x32xf32>
    %c0_8 = arith.constant 0 : index
    %c0_9 = arith.constant 0 : index
    %7 = vector.load %arg10[%c0_8, %c0_9] : memref<1x32xf32, #tpu.memory_space<vmem>>, vector<1x32xf32>
    %c0_i32_10 = arith.constant 0 : i32
    %c8_i32 = arith.constant 8 : i32
    %8 = arith.muli %c0_i32_10, %c8_i32 : i32
    %9 = tpu.assume_multiple %8, 8 : i32
    %c0_11 = arith.constant 0 : index
    %10 = arith.index_cast %9 : i32 to index
    %c0_12 = arith.constant 0 : index
    %c0_13 = arith.constant 0 : index
    %c0_14 = arith.constant 0 : index
    %11 = vector.load %arg5[%c0_11, %10, %c0_12, %c0_13, %c0_14] : memref<1x8x1x1x32xf32, #tpu.memory_space<vmem>>, vector<1x8x1x1x32xf32>
    %12 = vector.shape_cast %11 : vector<1x8x1x1x32xf32> to vector<8x1x1x32xf32>
    %c0_15 = arith.constant 0 : index
    %13 = arith.index_cast %9 : i32 to index
    %c0_16 = arith.constant 0 : index
    %c0_17 = arith.constant 0 : index
    %c0_18 = arith.constant 0 : index
    %14 = vector.load %arg6[%c0_15, %13, %c0_16, %c0_17, %c0_18] : memref<1x8x1x1x32xf32, #tpu.memory_space<vmem>>, vector<1x8x1x1x32xf32>
    %15 = vector.shape_cast %14 : vector<1x8x1x1x32xf32> to vector<8x1x1x32xf32>
    %16 = vector.extract_strided_slice %12 {offsets = [0, 0, 0, 0], sizes = [1, 1, 1, 32], strides = [1, 1, 1, 1]} : vector<8x1x1x32xf32> to vector<1x1x1x32xf32>
    %17 = vector.shape_cast %16 : vector<1x1x1x32xf32> to vector<1x32xf32>
    %18 = vector.extract_strided_slice %15 {offsets = [0, 0, 0, 0], sizes = [1, 1, 1, 32], strides = [1, 1, 1, 1]} : vector<8x1x1x32xf32> to vector<1x1x1x32xf32>
    %19 = vector.shape_cast %18 : vector<1x1x1x32xf32> to vector<1x32xf32>
    %20 = arith.addf %4, %17 : vector<1x32xf32>
    %21 = arith.addf %3, %7 : vector<1x32xf32>
    %22 = arith.maximumf %7, %20 : vector<1x32xf32>
    %23 = arith.subf %7, %22 : vector<1x32xf32>
    %24 = math.exp %23 : vector<1x32xf32>
    %25 = arith.subf %20, %22 : vector<1x32xf32>
    %26 = math.exp %25 : vector<1x32xf32>
    %27 = arith.mulf %24, %5 : vector<1x32xf32>
    %28 = arith.mulf %26, %19 : vector<1x32xf32>
    %29 = arith.addf %27, %28 : vector<1x32xf32>
    %30 = arith.mulf %24, %6 : vector<1x32xf32>
    %31 = arith.addf %30, %26 : vector<1x32xf32>
    %32 = arith.divf %29, %31 : vector<1x32xf32>
    %33 = vector.shape_cast %32 : vector<1x32xf32> to vector<1x1x1x32xf32>
    %c0_i32_19 = arith.constant 0 : i32
    %34 = arith.addi %9, %c0_i32_19 : i32
    %c0_20 = arith.constant 0 : index
    %35 = arith.index_cast %34 : i32 to index
    %c0_21 = arith.constant 0 : index
    %c0_22 = arith.constant 0 : index
    %c0_23 = arith.constant 0 : index
    %36 = vector.load %arg7[%c0_20, %35, %c0_21, %c0_22, %c0_23] : memref<1x8x1x1x32xf32, #tpu.memory_space<vmem>>, vector<1x1x1x1x32xf32>
    %37 = vector.shape_cast %36 : vector<1x1x1x1x32xf32> to vector<1x1x1x32xf32>
    %38 = vector.shape_cast %33 : vector<1x1x1x32xf32> to vector<1x1x1x1x32xf32>
    tpu.vector_store %arg7[%c0_20, %35, %c0_21, %c0_22, %c0_23], %38 {strides = array<i32>} : memref<1x8x1x1x32xf32, #tpu.memory_space<vmem>>, vector<1x1x1x1x32xf32>,
    %39 = arith.maximumf %21, %17 : vector<1x32xf32>
    %40 = arith.subf %21, %39 : vector<1x32xf32>
    %41 = math.exp %40 : vector<1x32xf32>
    %42 = arith.subf %17, %39 : vector<1x32xf32>
    %43 = math.exp %42 : vector<1x32xf32>
    %44 = arith.mulf %41, %5 : vector<1x32xf32>
    %45 = arith.mulf %43, %19 : vector<1x32xf32>
    %46 = arith.addf %44, %45 : vector<1x32xf32>
    %47 = arith.mulf %41, %6 : vector<1x32xf32>
    %48 = arith.addf %47, %43 : vector<1x32xf32>
    %49 = vector.extract_strided_slice %12 {offsets = [1, 0, 0, 0], sizes = [1, 1, 1, 32], strides = [1, 1, 1, 1]} : vector<8x1x1x32xf32> to vector<1x1x1x32xf32>
    %50 = vector.shape_cast %49 : vector<1x1x1x32xf32> to vector<1x32xf32>
    %51 = vector.extract_strided_slice %15 {offsets = [1, 0, 0, 0], sizes = [1, 1, 1, 32], strides = [1, 1, 1, 1]} : vector<8x1x1x32xf32> to vector<1x1x1x32xf32>
    %52 = vector.shape_cast %51 : vector<1x1x1x32xf32> to vector<1x32xf32>
    %53 = arith.addf %4, %50 : vector<1x32xf32>
    %54 = arith.addf %3, %39 : vector<1x32xf32>
    %55 = arith.maximumf %39, %53 : vector<1x32xf32>
    %56 = arith.subf %39, %55 : vector<1x32xf32>
    %57 = math.exp %56 : vector<1x32xf32>
    %58 = arith.subf %53, %55 : vector<1x32xf32>
    %59 = math.exp %58 : vector<1x32xf32>
    %60 = arith.mulf %57, %46 : vector<1x32xf32>
    %61 = arith.mulf %59, %52 : vector<1x32xf32>
    %62 = arith.addf %60, %61 : vector<1x32xf32>
    %63 = arith.mulf %57, %48 : vector<1x32xf32>
    %64 = arith.addf %63, %59 : vector<1x32xf32>
    %65 = arith.divf %62, %64 : vector<1x32xf32>
    %66 = vector.shape_cast %65 : vector<1x32xf32> to vector<1x1x1x32xf32>
    %c1_i32 = arith.constant 1 : i32
    %67 = arith.addi %9, %c1_i32 : i32
    %c0_24 = arith.constant 0 : index
    %68 = arith.index_cast %67 : i32 to index
    %c0_25 = arith.constant 0 : index
    %c0_26 = arith.constant 0 : index
    %c0_27 = arith.constant 0 : index
    %69 = vector.load %arg7[%c0_24, %68, %c0_25, %c0_26, %c0_27] : memref<1x8x1x1x32xf32, #tpu.memory_space<vmem>>, vector<1x1x1x1x32xf32>
    %70 = vector.shape_cast %69 : vector<1x1x1x1x32xf32> to vector<1x1x1x32xf32>
    %71 = vector.shape_cast %66 : vector<1x1x1x32xf32> to vector<1x1x1x1x32xf32>
    tpu.vector_store %arg7[%c0_24, %68, %c0_25, %c0_26, %c0_27], %71 {strides = array<i32>} : memref<1x8x1x1x32xf32, #tpu.memory_space<vmem>>, vector<1x1x1x1x32xf32>,
    %72 = arith.maximumf %54, %50 : vector<1x32xf32>
    %73 = arith.subf %54, %72 : vector<1x32xf32>
    %74 = math.exp %73 : vector<1x32xf32>
    %75 = arith.subf %50, %72 : vector<1x32xf32>
    %76 = math.exp %75 : vector<1x32xf32>
    %77 = arith.mulf %74, %46 : vector<1x32xf32>
    %78 = arith.mulf %76, %52 : vector<1x32xf32>
    %79 = arith.addf %77, %78 : vector<1x32xf32>
    %80 = arith.mulf %74, %48 : vector<1x32xf32>
    %81 = arith.addf %80, %76 : vector<1x32xf32>
    %82 = vector.extract_strided_slice %12 {offsets = [2, 0, 0, 0], sizes = [1, 1, 1, 32], strides = [1, 1, 1, 1]} : vector<8x1x1x32xf32> to vector<1x1x1x32xf32>
    %83 = vector.shape_cast %82 : vector<1x1x1x32xf32> to vector<1x32xf32>
    %84 = vector.extract_strided_slice %15 {offsets = [2, 0, 0, 0], sizes = [1, 1, 1, 32], strides = [1, 1, 1, 1]} : vector<8x1x1x32xf32> to vector<1x1x1x32xf32>
    %85 = vector.shape_cast %84 : vector<1x1x1x32xf32> to vector<1x32xf32>
    %86 = arith.addf %4, %83 : vector<1x32xf32>
    %87 = arith.addf %3, %72 : vector<1x32xf32>
    %88 = arith.maximumf %72, %86 : vector<1x32xf32>
    %89 = arith.subf %72, %88 : vector<1x32xf32>
    %90 = math.exp %89 : vector<1x32xf32>
    %91 = arith.subf %86, %88 : vector<1x32xf32>
    %92 = math.exp %91 : vector<1x32xf32>
    %93 = arith.mulf %90, %79 : vector<1x32xf32>
    %94 = arith.mulf %92, %85 : vector<1x32xf32>
    %95 = arith.addf %93, %94 : vector<1x32xf32>
    %96 = arith.mulf %90, %81 : vector<1x32xf32>
    %97 = arith.addf %96, %92 : vector<1x32xf32>
    %98 = arith.divf %95, %97 : vector<1x32xf32>
    %99 = vector.shape_cast %98 : vector<1x32xf32> to vector<1x1x1x32xf32>
    %c2_i32 = arith.constant 2 : i32
    %100 = arith.addi %9, %c2_i32 : i32
    %c0_28 = arith.constant 0 : index
    %101 = arith.index_cast %100 : i32 to index
    %c0_29 = arith.constant 0 : index
    %c0_30 = arith.constant 0 : index
    %c0_31 = arith.constant 0 : index
    %102 = vector.load %arg7[%c0_28, %101, %c0_29, %c0_30, %c0_31] : memref<1x8x1x1x32xf32, #tpu.memory_space<vmem>>, vector<1x1x1x1x32xf32>
    %103 = vector.shape_cast %102 : vector<1x1x1x1x32xf32> to vector<1x1x1x32xf32>
    %104 = vector.shape_cast %99 : vector<1x1x1x32xf32> to vector<1x1x1x1x32xf32>
    tpu.vector_store %arg7[%c0_28, %101, %c0_29, %c0_30, %c0_31], %104 {strides = array<i32>} : memref<1x8x1x1x32xf32, #tpu.memory_space<vmem>>, vector<1x1x1x1x32xf32>,
    %105 = arith.maximumf %87, %83 : vector<1x32xf32>
    %106 = arith.subf %87, %105 : vector<1x32xf32>
    %107 = math.exp %106 : vector<1x32xf32>
    %108 = arith.subf %83, %105 : vector<1x32xf32>
    %109 = math.exp %108 : vector<1x32xf32>
    %110 = arith.mulf %107, %79 : vector<1x32xf32>
    %111 = arith.mulf %109, %85 : vector<1x32xf32>
    %112 = arith.addf %110, %111 : vector<1x32xf32>
    %113 = arith.mulf %107, %81 : vector<1x32xf32>
    %114 = arith.addf %113, %109 : vector<1x32xf32>
    %115 = vector.extract_strided_slice %12 {offsets = [3, 0, 0, 0], sizes = [1, 1, 1, 32], strides = [1, 1, 1, 1]} : vector<8x1x1x32xf32> to vector<1x1x1x32xf32>
    %116 = vector.shape_cast %115 : vector<1x1x1x32xf32> to vector<1x32xf32>
    %117 = vector.extract_strided_slice %15 {offsets = [3, 0, 0, 0], sizes = [1, 1, 1, 32], strides = [1, 1, 1, 1]} : vector<8x1x1x32xf32> to vector<1x1x1x32xf32>
    %118 = vector.shape_cast %117 : vector<1x1x1x32xf32> to vector<1x32xf32>
    %119 = arith.addf %4, %116 : vector<1x32xf32>
    %120 = arith.addf %3, %105 : vector<1x32xf32>
    %121 = arith.maximumf %105, %119 : vector<1x32xf32>
    %122 = arith.subf %105, %121 : vector<1x32xf32>
    %123 = math.exp %122 : vector<1x32xf32>
    %124 = arith.subf %119, %121 : vector<1x32xf32>
    %125 = math.exp %124 : vector<1x32xf32>
    %126 = arith.mulf %123, %112 : vector<1x32xf32>
    %127 = arith.mulf %125, %118 : vector<1x32xf32>
    %128 = arith.addf %126, %127 : vector<1x32xf32>
    %129 = arith.mulf %123, %114 : vector<1x32xf32>
    %130 = arith.addf %129, %125 : vector<1x32xf32>
    %131 = arith.divf %128, %130 : vector<1x32xf32>
    %132 = vector.shape_cast %131 : vector<1x32xf32> to vector<1x1x1x32xf32>
    %c3_i32 = arith.constant 3 : i32
    %133 = arith.addi %9, %c3_i32 : i32
    %c0_32 = arith.constant 0 : index
    %134 = arith.index_cast %133 : i32 to index
    %c0_33 = arith.constant 0 : index
    %c0_34 = arith.constant 0 : index
    %c0_35 = arith.constant 0 : index
    %135 = vector.load %arg7[%c0_32, %134, %c0_33, %c0_34, %c0_35] : memref<1x8x1x1x32xf32, #tpu.memory_space<vmem>>, vector<1x1x1x1x32xf32>
    %136 = vector.shape_cast %135 : vector<1x1x1x1x32xf32> to vector<1x1x1x32xf32>
    %137 = vector.shape_cast %132 : vector<1x1x1x32xf32> to vector<1x1x1x1x32xf32>
    tpu.vector_store %arg7[%c0_32, %134, %c0_33, %c0_34, %c0_35], %137 {strides = array<i32>} : memref<1x8x1x1x32xf32, #tpu.memory_space<vmem>>, vector<1x1x1x1x32xf32>,
    %138 = arith.maximumf %120, %116 : vector<1x32xf32>
    %139 = arith.subf %120, %138 : vector<1x32xf32>
    %140 = math.exp %139 : vector<1x32xf32>
    %141 = arith.subf %116, %138 : vector<1x32xf32>
    %142 = math.exp %141 : vector<1x32xf32>
    %143 = arith.mulf %140, %112 : vector<1x32xf32>
    %144 = arith.mulf %142, %118 : vector<1x32xf32>
    %145 = arith.addf %143, %144 : vector<1x32xf32>
    %146 = arith.mulf %140, %114 : vector<1x32xf32>
    %147 = arith.addf %146, %142 : vector<1x32xf32>
    %148 = vector.extract_strided_slice %12 {offsets = [4, 0, 0, 0], sizes = [1, 1, 1, 32], strides = [1, 1, 1, 1]} : vector<8x1x1x32xf32> to vector<1x1x1x32xf32>
    %149 = vector.shape_cast %148 : vector<1x1x1x32xf32> to vector<1x32xf32>
    %150 = vector.extract_strided_slice %15 {offsets = [4, 0, 0, 0], sizes = [1, 1, 1, 32], strides = [1, 1, 1, 1]} : vector<8x1x1x32xf32> to vector<1x1x1x32xf32>
    %151 = vector.shape_cast %150 : vector<1x1x1x32xf32> to vector<1x32xf32>
    %152 = arith.addf %4, %149 : vector<1x32xf32>
    %153 = arith.addf %3, %138 : vector<1x32xf32>
    %154 = arith.maximumf %138, %152 : vector<1x32xf32>
    %155 = arith.subf %138, %154 : vector<1x32xf32>
    %156 = math.exp %155 : vector<1x32xf32>
    %157 = arith.subf %152, %154 : vector<1x32xf32>
    %158 = math.exp %157 : vector<1x32xf32>
    %159 = arith.mulf %156, %145 : vector<1x32xf32>
    %160 = arith.mulf %158, %151 : vector<1x32xf32>
    %161 = arith.addf %159, %160 : vector<1x32xf32>
    %162 = arith.mulf %156, %147 : vector<1x32xf32>
    %163 = arith.addf %162, %158 : vector<1x32xf32>
    %164 = arith.divf %161, %163 : vector<1x32xf32>
    %165 = vector.shape_cast %164 : vector<1x32xf32> to vector<1x1x1x32xf32>
    %c4_i32 = arith.constant 4 : i32
    %166 = arith.addi %9, %c4_i32 : i32
    %c0_36 = arith.constant 0 : index
    %167 = arith.index_cast %166 : i32 to index
    %c0_37 = arith.constant 0 : index
    %c0_38 = arith.constant 0 : index
    %c0_39 = arith.constant 0 : index
    %168 = vector.load %arg7[%c0_36, %167, %c0_37, %c0_38, %c0_39] : memref<1x8x1x1x32xf32, #tpu.memory_space<vmem>>, vector<1x1x1x1x32xf32>
    %169 = vector.shape_cast %168 : vector<1x1x1x1x32xf32> to vector<1x1x1x32xf32>
    %170 = vector.shape_cast %165 : vector<1x1x1x32xf32> to vector<1x1x1x1x32xf32>
    tpu.vector_store %arg7[%c0_36, %167, %c0_37, %c0_38, %c0_39], %170 {strides = array<i32>} : memref<1x8x1x1x32xf32, #tpu.memory_space<vmem>>, vector<1x1x1x1x32xf32>,
    %171 = arith.maximumf %153, %149 : vector<1x32xf32>
    %172 = arith.subf %153, %171 : vector<1x32xf32>
    %173 = math.exp %172 : vector<1x32xf32>
    %174 = arith.subf %149, %171 : vector<1x32xf32>
    %175 = math.exp %174 : vector<1x32xf32>
    %176 = arith.mulf %173, %145 : vector<1x32xf32>
    %177 = arith.mulf %175, %151 : vector<1x32xf32>
    %178 = arith.addf %176, %177 : vector<1x32xf32>
    %179 = arith.mulf %173, %147 : vector<1x32xf32>
    %180 = arith.addf %179, %175 : vector<1x32xf32>
    %181 = vector.extract_strided_slice %12 {offsets = [5, 0, 0, 0], sizes = [1, 1, 1, 32], strides = [1, 1, 1, 1]} : vector<8x1x1x32xf32> to vector<1x1x1x32xf32>
    %182 = vector.shape_cast %181 : vector<1x1x1x32xf32> to vector<1x32xf32>
    %183 = vector.extract_strided_slice %15 {offsets = [5, 0, 0, 0], sizes = [1, 1, 1, 32], strides = [1, 1, 1, 1]} : vector<8x1x1x32xf32> to vector<1x1x1x32xf32>
    %184 = vector.shape_cast %183 : vector<1x1x1x32xf32> to vector<1x32xf32>
    %185 = arith.addf %4, %182 : vector<1x32xf32>
    %186 = arith.addf %3, %171 : vector<1x32xf32>
    %187 = arith.maximumf %171, %185 : vector<1x32xf32>
    %188 = arith.subf %171, %187 : vector<1x32xf32>
    %189 = math.exp %188 : vector<1x32xf32>
    %190 = arith.subf %185, %187 : vector<1x32xf32>
    %191 = math.exp %190 : vector<1x32xf32>
    %192 = arith.mulf %189, %178 : vector<1x32xf32>
    %193 = arith.mulf %191, %184 : vector<1x32xf32>
    %194 = arith.addf %192, %193 : vector<1x32xf32>
    %195 = arith.mulf %189, %180 : vector<1x32xf32>
    %196 = arith.addf %195, %191 : vector<1x32xf32>
    %197 = arith.divf %194, %196 : vector<1x32xf32>
    %198 = vector.shape_cast %197 : vector<1x32xf32> to vector<1x1x1x32xf32>
    %c5_i32 = arith.constant 5 : i32
    %199 = arith.addi %9, %c5_i32 : i32
    %c0_40 = arith.constant 0 : index
    %200 = arith.index_cast %199 : i32 to index
    %c0_41 = arith.constant 0 : index
    %c0_42 = arith.constant 0 : index
    %c0_43 = arith.constant 0 : index
    %201 = vector.load %arg7[%c0_40, %200, %c0_41, %c0_42, %c0_43] : memref<1x8x1x1x32xf32, #tpu.memory_space<vmem>>, vector<1x1x1x1x32xf32>
    %202 = vector.shape_cast %201 : vector<1x1x1x1x32xf32> to vector<1x1x1x32xf32>
    %203 = vector.shape_cast %198 : vector<1x1x1x32xf32> to vector<1x1x1x1x32xf32>
    tpu.vector_store %arg7[%c0_40, %200, %c0_41, %c0_42, %c0_43], %203 {strides = array<i32>} : memref<1x8x1x1x32xf32, #tpu.memory_space<vmem>>, vector<1x1x1x1x32xf32>,
    %204 = arith.maximumf %186, %182 : vector<1x32xf32>
    %205 = arith.subf %186, %204 : vector<1x32xf32>
    %206 = math.exp %205 : vector<1x32xf32>
    %207 = arith.subf %182, %204 : vector<1x32xf32>
    %208 = math.exp %207 : vector<1x32xf32>
    %209 = arith.mulf %206, %178 : vector<1x32xf32>
    %210 = arith.mulf %208, %184 : vector<1x32xf32>
    %211 = arith.addf %209, %210 : vector<1x32xf32>
    %212 = arith.mulf %206, %180 : vector<1x32xf32>
    %213 = arith.addf %212, %208 : vector<1x32xf32>
    %214 = vector.extract_strided_slice %12 {offsets = [6, 0, 0, 0], sizes = [1, 1, 1, 32], strides = [1, 1, 1, 1]} : vector<8x1x1x32xf32> to vector<1x1x1x32xf32>
    %215 = vector.shape_cast %214 : vector<1x1x1x32xf32> to vector<1x32xf32>
    %216 = vector.extract_strided_slice %15 {offsets = [6, 0, 0, 0], sizes = [1, 1, 1, 32], strides = [1, 1, 1, 1]} : vector<8x1x1x32xf32> to vector<1x1x1x32xf32>
    %217 = vector.shape_cast %216 : vector<1x1x1x32xf32> to vector<1x32xf32>
    %218 = arith.addf %4, %215 : vector<1x32xf32>
    %219 = arith.addf %3, %204 : vector<1x32xf32>
    %220 = arith.maximumf %204, %218 : vector<1x32xf32>
    %221 = arith.subf %204, %220 : vector<1x32xf32>
    %222 = math.exp %221 : vector<1x32xf32>
    %223 = arith.subf %218, %220 : vector<1x32xf32>
    %224 = math.exp %223 : vector<1x32xf32>
    %225 = arith.mulf %222, %211 : vector<1x32xf32>
    %226 = arith.mulf %224, %217 : vector<1x32xf32>
    %227 = arith.addf %225, %226 : vector<1x32xf32>
    %228 = arith.mulf %222, %213 : vector<1x32xf32>
    %229 = arith.addf %228, %224 : vector<1x32xf32>
    %230 = arith.divf %227, %229 : vector<1x32xf32>
    %231 = vector.shape_cast %230 : vector<1x32xf32> to vector<1x1x1x32xf32>
    %c6_i32 = arith.constant 6 : i32
    %232 = arith.addi %9, %c6_i32 : i32
    %c0_44 = arith.constant 0 : index
    %233 = arith.index_cast %232 : i32 to index
    %c0_45 = arith.constant 0 : index
    %c0_46 = arith.constant 0 : index
    %c0_47 = arith.constant 0 : index
    %234 = vector.load %arg7[%c0_44, %233, %c0_45, %c0_46, %c0_47] : memref<1x8x1x1x32xf32, #tpu.memory_space<vmem>>, vector<1x1x1x1x32xf32>
    %235 = vector.shape_cast %234 : vector<1x1x1x1x32xf32> to vector<1x1x1x32xf32>
    %236 = vector.shape_cast %231 : vector<1x1x1x32xf32> to vector<1x1x1x1x32xf32>
    tpu.vector_store %arg7[%c0_44, %233, %c0_45, %c0_46, %c0_47], %236 {strides = array<i32>} : memref<1x8x1x1x32xf32, #tpu.memory_space<vmem>>, vector<1x1x1x1x32xf32>,
    %237 = arith.maximumf %219, %215 : vector<1x32xf32>
    %238 = arith.subf %219, %237 : vector<1x32xf32>
    %239 = math.exp %238 : vector<1x32xf32>
    %240 = arith.subf %215, %237 : vector<1x32xf32>
    %241 = math.exp %240 : vector<1x32xf32>
    %242 = arith.mulf %239, %211 : vector<1x32xf32>
    %243 = arith.mulf %241, %217 : vector<1x32xf32>
    %244 = arith.addf %242, %243 : vector<1x32xf32>
    %245 = arith.mulf %239, %213 : vector<1x32xf32>
    %246 = arith.addf %245, %241 : vector<1x32xf32>
    %247 = vector.extract_strided_slice %12 {offsets = [7, 0, 0, 0], sizes = [1, 1, 1, 32], strides = [1, 1, 1, 1]} : vector<8x1x1x32xf32> to vector<1x1x1x32xf32>
    %248 = vector.shape_cast %247 : vector<1x1x1x32xf32> to vector<1x32xf32>
    %249 = vector.extract_strided_slice %15 {offsets = [7, 0, 0, 0], sizes = [1, 1, 1, 32], strides = [1, 1, 1, 1]} : vector<8x1x1x32xf32> to vector<1x1x1x32xf32>
    %250 = vector.shape_cast %249 : vector<1x1x1x32xf32> to vector<1x32xf32>
    %251 = arith.addf %4, %248 : vector<1x32xf32>
    %252 = arith.addf %3, %237 : vector<1x32xf32>
    %253 = arith.maximumf %237, %251 : vector<1x32xf32>
    %254 = arith.subf %237, %253 : vector<1x32xf32>
    %255 = math.exp %254 : vector<1x32xf32>
    %256 = arith.subf %251, %253 : vector<1x32xf32>
    %257 = math.exp %256 : vector<1x32xf32>
    %258 = arith.mulf %255, %244 : vector<1x32xf32>
    %259 = arith.mulf %257, %250 : vector<1x32xf32>
    %260 = arith.addf %258, %259 : vector<1x32xf32>
    %261 = arith.mulf %255, %246 : vector<1x32xf32>
    %262 = arith.addf %261, %257 : vector<1x32xf32>
    %263 = arith.divf %260, %262 : vector<1x32xf32>
    %264 = vector.shape_cast %263 : vector<1x32xf32> to vector<1x1x1x32xf32>
    %c7_i32 = arith.constant 7 : i32
    %265 = arith.addi %9, %c7_i32 : i32
    %c0_48 = arith.constant 0 : index
    %266 = arith.index_cast %265 : i32 to index
    %c0_49 = arith.constant 0 : index
    %c0_50 = arith.constant 0 : index
    %c0_51 = arith.constant 0 : index
    %267 = vector.load %arg7[%c0_48, %266, %c0_49, %c0_50, %c0_51] : memref<1x8x1x1x32xf32, #tpu.memory_space<vmem>>, vector<1x1x1x1x32xf32>
    %268 = vector.shape_cast %267 : vector<1x1x1x1x32xf32> to vector<1x1x1x32xf32>
    %269 = vector.shape_cast %264 : vector<1x1x1x32xf32> to vector<1x1x1x1x32xf32>
    tpu.vector_store %arg7[%c0_48, %266, %c0_49, %c0_50, %c0_51], %269 {strides = array<i32>} : memref<1x8x1x1x32xf32, #tpu.memory_space<vmem>>, vector<1x1x1x1x32xf32>,
    %270 = arith.maximumf %252, %248 : vector<1x32xf32>
    %271 = arith.subf %252, %270 : vector<1x32xf32>
    %272 = math.exp %271 : vector<1x32xf32>
    %273 = arith.subf %248, %270 : vector<1x32xf32>
    %274 = math.exp %273 : vector<1x32xf32>
    %275 = arith.mulf %272, %244 : vector<1x32xf32>
    %276 = arith.mulf %274, %250 : vector<1x32xf32>
    %277 = arith.addf %275, %276 : vector<1x32xf32>
    %278 = arith.mulf %272, %246 : vector<1x32xf32>
    %279 = arith.addf %278, %274 : vector<1x32xf32>
    %c1_i32_52 = arith.constant 1 : i32
    %c0_53 = arith.constant 0 : index
    %c0_54 = arith.constant 0 : index
    %280 = vector.load %arg8[%c0_53, %c0_54] : memref<1x32xf32, #tpu.memory_space<vmem>>, vector<1x32xf32>
    tpu.vector_store %arg8[%c0_53, %c0_54], %277 {strides = array<i32>} : memref<1x32xf32, #tpu.memory_space<vmem>>, vector<1x32xf32>,
    %c0_55 = arith.constant 0 : index
    %c0_56 = arith.constant 0 : index
    %281 = vector.load %arg9[%c0_55, %c0_56] : memref<1x32xf32, #tpu.memory_space<vmem>>, vector<1x32xf32>
    tpu.vector_store %arg9[%c0_55, %c0_56], %279 {strides = array<i32>} : memref<1x32xf32, #tpu.memory_space<vmem>>, vector<1x32xf32>,
    %c0_57 = arith.constant 0 : index
    %c0_58 = arith.constant 0 : index
    %282 = vector.load %arg10[%c0_57, %c0_58] : memref<1x32xf32, #tpu.memory_space<vmem>>, vector<1x32xf32>
    tpu.vector_store %arg10[%c0_57, %c0_58], %270 {strides = array<i32>} : memref<1x32xf32, #tpu.memory_space<vmem>>, vector<1x32xf32>,
    return
  }
  func.func @transform_0(%arg0: i32, %arg1: i32, %arg2: i32) -> (i32, i32) {
    %c0_i32 = arith.constant 0 : i32
    %c0_i32_0 = arith.constant 0 : i32
    return %arg1, %c0_i32 : i32, i32
  }
  func.func @transform_1(%arg0: i32, %arg1: i32, %arg2: i32) -> (i32, i32) {
    %c0_i32 = arith.constant 0 : i32
    %c0_i32_0 = arith.constant 0 : i32
    return %arg1, %c0_i32 : i32, i32
  }
  func.func @transform_2(%arg0: i32, %arg1: i32, %arg2: i32) -> (i32, i32, i32, i32, i32) {
    %c0_i32 = arith.constant 0 : i32
    %c0_i32_0 = arith.constant 0 : i32
    %c0_i32_1 = arith.constant 0 : i32
    return %arg0, %c0_i32, %arg2, %arg1, %c0_i32_0 : i32, i32, i32, i32, i32
  }
  func.func @transform_3(%arg0: i32, %arg1: i32, %arg2: i32) -> (i32, i32, i32, i32, i32) {
    %c0_i32 = arith.constant 0 : i32
    %c0_i32_0 = arith.constant 0 : i32
    %c0_i32_1 = arith.constant 0 : i32
    return %arg0, %c0_i32, %arg2, %arg1, %c0_i32_0 : i32, i32, i32, i32, i32
  }
  func.func @transform_4(%arg0: i32, %arg1: i32, %arg2: i32) -> (i32, i32, i32, i32, i32) {
    %c0_i32 = arith.constant 0 : i32
    %c0_i32_0 = arith.constant 0 : i32
    %c0_i32_1 = arith.constant 0 : i32
    return %arg0, %c0_i32, %arg2, %arg1, %c0_i32_0 : i32, i32, i32, i32, i32
  }
}

module attributes {stable_mosaic.version = 11 : i64} {
  func.func @_wkv_kernel(%arg0: i32, %arg1: i32, %arg2: i32, %arg3: memref<1x32xf32, #tpu.memory_space<vmem>>, %arg4: memref<1x32xf32, #tpu.memory_space<vmem>>, %arg5: memref<1x64x1x1x32xf32, #tpu.memory_space<vmem>>, %arg6: memref<1x64x1x1x32xf32, #tpu.memory_space<vmem>>, %arg7: memref<1x64x1x1x32xf32, #tpu.memory_space<vmem>>, %arg8: memref<1x32xf32, #tpu.memory_space<vmem>>, %arg9: memref<1x32xf32, #tpu.memory_space<vmem>>, %arg10: memref<1x32xf32, #tpu.memory_space<vmem>>) attributes {dimension_semantics = [#tpu.dimension_semantics<parallel>, #tpu.dimension_semantics<parallel>, #tpu.dimension_semantics<arbitrary>], iteration_bounds = array<i64: 2, 1, 1>, scalar_prefetch = 0 : i64, scratch_operands = 3 : i64, tpu.core_type = #tpu.core_type<tc>, window_params = [{transform_indices = @transform_0, window_bounds = array<i64: 1, 32>}, {transform_indices = @transform_1, window_bounds = array<i64: 1, 32>}, {transform_indices = @transform_2, window_bounds = array<i64: 1, 64, 1, 1, 32>}, {transform_indices = @transform_3, window_bounds = array<i64: 1, 64, 1, 1, 32>}, {transform_indices = @transform_4, window_bounds = array<i64: 1, 64, 1, 1, 32>}]} {
    %c0_i32 = arith.constant 0 : i32
    %0 = arith.cmpi eq, %arg2, %c0_i32 : i32
    %1 = arith.extui %0 : i1 to i32
    %c0_i32_0 = arith.constant 0 : i32
    %2 = arith.cmpi ne, %1, %c0_i32_0 : i32
    scf.if %2 {
      %cst = arith.constant 0.000000e+00 : f32
      %13 = vector.broadcast %cst : f32 to vector<1x32xf32>
      %c0_18 = arith.constant 0 : index
      %c0_19 = arith.constant 0 : index
      %14 = vector.load %arg8[%c0_18, %c0_19] : memref<1x32xf32, #tpu.memory_space<vmem>>, vector<1x32xf32>
      tpu.vector_store %arg8[%c0_18, %c0_19], %13 {strides = array<i32>} : memref<1x32xf32, #tpu.memory_space<vmem>>, vector<1x32xf32>,
      %cst_20 = arith.constant 0.000000e+00 : f32
      %15 = vector.broadcast %cst_20 : f32 to vector<1x32xf32>
      %c0_21 = arith.constant 0 : index
      %c0_22 = arith.constant 0 : index
      %16 = vector.load %arg9[%c0_21, %c0_22] : memref<1x32xf32, #tpu.memory_space<vmem>>, vector<1x32xf32>
      tpu.vector_store %arg9[%c0_21, %c0_22], %15 {strides = array<i32>} : memref<1x32xf32, #tpu.memory_space<vmem>>, vector<1x32xf32>,
      %cst_23 = arith.constant -9.99999968E+37 : f32
      %17 = vector.broadcast %cst_23 : f32 to vector<1x32xf32>
      %c0_24 = arith.constant 0 : index
      %c0_25 = arith.constant 0 : index
      %18 = vector.load %arg10[%c0_24, %c0_25] : memref<1x32xf32, #tpu.memory_space<vmem>>, vector<1x32xf32>
      tpu.vector_store %arg10[%c0_24, %c0_25], %17 {strides = array<i32>} : memref<1x32xf32, #tpu.memory_space<vmem>>, vector<1x32xf32>,
    } else {
    }
    %c0 = arith.constant 0 : index
    %c0_1 = arith.constant 0 : index
    %3 = vector.load %arg3[%c0, %c0_1] : memref<1x32xf32, #tpu.memory_space<vmem>>, vector<1x32xf32>
    %c0_2 = arith.constant 0 : index
    %c0_3 = arith.constant 0 : index
    %4 = vector.load %arg4[%c0_2, %c0_3] : memref<1x32xf32, #tpu.memory_space<vmem>>, vector<1x32xf32>
    %c0_4 = arith.constant 0 : index
    %c0_5 = arith.constant 0 : index
    %5 = vector.load %arg8[%c0_4, %c0_5] : memref<1x32xf32, #tpu.memory_space<vmem>>, vector<1x32xf32>
    %c0_6 = arith.constant 0 : index
    %c0_7 = arith.constant 0 : index
    %6 = vector.load %arg9[%c0_6, %c0_7] : memref<1x32xf32, #tpu.memory_space<vmem>>, vector<1x32xf32>
    %c0_8 = arith.constant 0 : index
    %c0_9 = arith.constant 0 : index
    %7 = vector.load %arg10[%c0_8, %c0_9] : memref<1x32xf32, #tpu.memory_space<vmem>>, vector<1x32xf32>
    %c0_i32_10 = arith.constant 0 : i32
    %c8_i32 = arith.constant 8 : i32
    %8 = arith.addi %c0_i32_10, %c8_i32 : i32
    %c1_i32 = arith.constant 1 : i32
    %9:3 = scf.for %arg11 = %c0_i32_10 to %8 step %c1_i32 iter_args(%arg12 = %5, %arg13 = %6, %arg14 = %7) -> (vector<1x32xf32>, vector<1x32xf32>, vector<1x32xf32>)  : i32 {
      %c8_i32_18 = arith.constant 8 : i32
      %13 = arith.muli %arg11, %c8_i32_18 : i32
      %14 = tpu.assume_multiple %13, 8 : i32
      %c0_19 = arith.constant 0 : index
      %15 = arith.index_cast %14 : i32 to index
      %c0_20 = arith.constant 0 : index
      %c0_21 = arith.constant 0 : index
      %c0_22 = arith.constant 0 : index
      %16 = vector.load %arg5[%c0_19, %15, %c0_20, %c0_21, %c0_22] : memref<1x64x1x1x32xf32, #tpu.memory_space<vmem>>, vector<1x8x1x1x32xf32>
      %17 = vector.shape_cast %16 : vector<1x8x1x1x32xf32> to vector<8x1x1x32xf32>
      %c0_23 = arith.constant 0 : index
      %18 = arith.index_cast %14 : i32 to index
      %c0_24 = arith.constant 0 : index
      %c0_25 = arith.constant 0 : index
      %c0_26 = arith.constant 0 : index
      %19 = vector.load %arg6[%c0_23, %18, %c0_24, %c0_25, %c0_26] : memref<1x64x1x1x32xf32, #tpu.memory_space<vmem>>, vector<1x8x1x1x32xf32>
      %20 = vector.shape_cast %19 : vector<1x8x1x1x32xf32> to vector<8x1x1x32xf32>
      %21 = vector.extract_strided_slice %17 {offsets = [0, 0, 0, 0], sizes = [1, 1, 1, 32], strides = [1, 1, 1, 1]} : vector<8x1x1x32xf32> to vector<1x1x1x32xf32>
      %22 = vector.shape_cast %21 : vector<1x1x1x32xf32> to vector<1x32xf32>
      %23 = vector.extract_strided_slice %20 {offsets = [0, 0, 0, 0], sizes = [1, 1, 1, 32], strides = [1, 1, 1, 1]} : vector<8x1x1x32xf32> to vector<1x1x1x32xf32>
      %24 = vector.shape_cast %23 : vector<1x1x1x32xf32> to vector<1x32xf32>
      %25 = arith.addf %4, %22 : vector<1x32xf32>
      %26 = arith.addf %3, %arg14 : vector<1x32xf32>
      %27 = arith.maximumf %arg14, %25 : vector<1x32xf32>
      %28 = arith.subf %arg14, %27 : vector<1x32xf32>
      %29 = math.exp %28 : vector<1x32xf32>
      %30 = arith.subf %25, %27 : vector<1x32xf32>
      %31 = math.exp %30 : vector<1x32xf32>
      %32 = arith.mulf %29, %arg12 : vector<1x32xf32>
      %33 = arith.mulf %31, %24 : vector<1x32xf32>
      %34 = arith.addf %32, %33 : vector<1x32xf32>
      %35 = arith.mulf %29, %arg13 : vector<1x32xf32>
      %36 = arith.addf %35, %31 : vector<1x32xf32>
      %37 = arith.divf %34, %36 : vector<1x32xf32>
      %38 = vector.shape_cast %37 : vector<1x32xf32> to vector<1x1x1x32xf32>
      %c0_i32_27 = arith.constant 0 : i32
      %39 = arith.addi %14, %c0_i32_27 : i32
      %c0_28 = arith.constant 0 : index
      %40 = arith.index_cast %39 : i32 to index
      %c0_29 = arith.constant 0 : index
      %c0_30 = arith.constant 0 : index
      %c0_31 = arith.constant 0 : index
      %41 = vector.load %arg7[%c0_28, %40, %c0_29, %c0_30, %c0_31] : memref<1x64x1x1x32xf32, #tpu.memory_space<vmem>>, vector<1x1x1x1x32xf32>
      %42 = vector.shape_cast %41 : vector<1x1x1x1x32xf32> to vector<1x1x1x32xf32>
      %43 = vector.shape_cast %38 : vector<1x1x1x32xf32> to vector<1x1x1x1x32xf32>
      tpu.vector_store %arg7[%c0_28, %40, %c0_29, %c0_30, %c0_31], %43 {strides = array<i32>} : memref<1x64x1x1x32xf32, #tpu.memory_space<vmem>>, vector<1x1x1x1x32xf32>,
      %44 = arith.maximumf %26, %22 : vector<1x32xf32>
      %45 = arith.subf %26, %44 : vector<1x32xf32>
      %46 = math.exp %45 : vector<1x32xf32>
      %47 = arith.subf %22, %44 : vector<1x32xf32>
      %48 = math.exp %47 : vector<1x32xf32>
      %49 = arith.mulf %46, %arg12 : vector<1x32xf32>
      %50 = arith.mulf %48, %24 : vector<1x32xf32>
      %51 = arith.addf %49, %50 : vector<1x32xf32>
      %52 = arith.mulf %46, %arg13 : vector<1x32xf32>
      %53 = arith.addf %52, %48 : vector<1x32xf32>
      %54 = vector.extract_strided_slice %17 {offsets = [1, 0, 0, 0], sizes = [1, 1, 1, 32], strides = [1, 1, 1, 1]} : vector<8x1x1x32xf32> to vector<1x1x1x32xf32>
      %55 = vector.shape_cast %54 : vector<1x1x1x32xf32> to vector<1x32xf32>
      %56 = vector.extract_strided_slice %20 {offsets = [1, 0, 0, 0], sizes = [1, 1, 1, 32], strides = [1, 1, 1, 1]} : vector<8x1x1x32xf32> to vector<1x1x1x32xf32>
      %57 = vector.shape_cast %56 : vector<1x1x1x32xf32> to vector<1x32xf32>
      %58 = arith.addf %4, %55 : vector<1x32xf32>
      %59 = arith.addf %3, %44 : vector<1x32xf32>
      %60 = arith.maximumf %44, %58 : vector<1x32xf32>
      %61 = arith.subf %44, %60 : vector<1x32xf32>
      %62 = math.exp %61 : vector<1x32xf32>
      %63 = arith.subf %58, %60 : vector<1x32xf32>
      %64 = math.exp %63 : vector<1x32xf32>
      %65 = arith.mulf %62, %51 : vector<1x32xf32>
      %66 = arith.mulf %64, %57 : vector<1x32xf32>
      %67 = arith.addf %65, %66 : vector<1x32xf32>
      %68 = arith.mulf %62, %53 : vector<1x32xf32>
      %69 = arith.addf %68, %64 : vector<1x32xf32>
      %70 = arith.divf %67, %69 : vector<1x32xf32>
      %71 = vector.shape_cast %70 : vector<1x32xf32> to vector<1x1x1x32xf32>
      %c1_i32_32 = arith.constant 1 : i32
      %72 = arith.addi %14, %c1_i32_32 : i32
      %c0_33 = arith.constant 0 : index
      %73 = arith.index_cast %72 : i32 to index
      %c0_34 = arith.constant 0 : index
      %c0_35 = arith.constant 0 : index
      %c0_36 = arith.constant 0 : index
      %74 = vector.load %arg7[%c0_33, %73, %c0_34, %c0_35, %c0_36] : memref<1x64x1x1x32xf32, #tpu.memory_space<vmem>>, vector<1x1x1x1x32xf32>
      %75 = vector.shape_cast %74 : vector<1x1x1x1x32xf32> to vector<1x1x1x32xf32>
      %76 = vector.shape_cast %71 : vector<1x1x1x32xf32> to vector<1x1x1x1x32xf32>
      tpu.vector_store %arg7[%c0_33, %73, %c0_34, %c0_35, %c0_36], %76 {strides = array<i32>} : memref<1x64x1x1x32xf32, #tpu.memory_space<vmem>>, vector<1x1x1x1x32xf32>,
      %77 = arith.maximumf %59, %55 : vector<1x32xf32>
      %78 = arith.subf %59, %77 : vector<1x32xf32>
      %79 = math.exp %78 : vector<1x32xf32>
      %80 = arith.subf %55, %77 : vector<1x32xf32>
      %81 = math.exp %80 : vector<1x32xf32>
      %82 = arith.mulf %79, %51 : vector<1x32xf32>
      %83 = arith.mulf %81, %57 : vector<1x32xf32>
      %84 = arith.addf %82, %83 : vector<1x32xf32>
      %85 = arith.mulf %79, %53 : vector<1x32xf32>
      %86 = arith.addf %85, %81 : vector<1x32xf32>
      %87 = vector.extract_strided_slice %17 {offsets = [2, 0, 0, 0], sizes = [1, 1, 1, 32], strides = [1, 1, 1, 1]} : vector<8x1x1x32xf32> to vector<1x1x1x32xf32>
      %88 = vector.shape_cast %87 : vector<1x1x1x32xf32> to vector<1x32xf32>
      %89 = vector.extract_strided_slice %20 {offsets = [2, 0, 0, 0], sizes = [1, 1, 1, 32], strides = [1, 1, 1, 1]} : vector<8x1x1x32xf32> to vector<1x1x1x32xf32>
      %90 = vector.shape_cast %89 : vector<1x1x1x32xf32> to vector<1x32xf32>
      %91 = arith.addf %4, %88 : vector<1x32xf32>
      %92 = arith.addf %3, %77 : vector<1x32xf32>
      %93 = arith.maximumf %77, %91 : vector<1x32xf32>
      %94 = arith.subf %77, %93 : vector<1x32xf32>
      %95 = math.exp %94 : vector<1x32xf32>
      %96 = arith.subf %91, %93 : vector<1x32xf32>
      %97 = math.exp %96 : vector<1x32xf32>
      %98 = arith.mulf %95, %84 : vector<1x32xf32>
      %99 = arith.mulf %97, %90 : vector<1x32xf32>
      %100 = arith.addf %98, %99 : vector<1x32xf32>
      %101 = arith.mulf %95, %86 : vector<1x32xf32>
      %102 = arith.addf %101, %97 : vector<1x32xf32>
      %103 = arith.divf %100, %102 : vector<1x32xf32>
      %104 = vector.shape_cast %103 : vector<1x32xf32> to vector<1x1x1x32xf32>
      %c2_i32 = arith.constant 2 : i32
      %105 = arith.addi %14, %c2_i32 : i32
      %c0_37 = arith.constant 0 : index
      %106 = arith.index_cast %105 : i32 to index
      %c0_38 = arith.constant 0 : index
      %c0_39 = arith.constant 0 : index
      %c0_40 = arith.constant 0 : index
      %107 = vector.load %arg7[%c0_37, %106, %c0_38, %c0_39, %c0_40] : memref<1x64x1x1x32xf32, #tpu.memory_space<vmem>>, vector<1x1x1x1x32xf32>
      %108 = vector.shape_cast %107 : vector<1x1x1x1x32xf32> to vector<1x1x1x32xf32>
      %109 = vector.shape_cast %104 : vector<1x1x1x32xf32> to vector<1x1x1x1x32xf32>
      tpu.vector_store %arg7[%c0_37, %106, %c0_38, %c0_39, %c0_40], %109 {strides = array<i32>} : memref<1x64x1x1x32xf32, #tpu.memory_space<vmem>>, vector<1x1x1x1x32xf32>,
      %110 = arith.maximumf %92, %88 : vector<1x32xf32>
      %111 = arith.subf %92, %110 : vector<1x32xf32>
      %112 = math.exp %111 : vector<1x32xf32>
      %113 = arith.subf %88, %110 : vector<1x32xf32>
      %114 = math.exp %113 : vector<1x32xf32>
      %115 = arith.mulf %112, %84 : vector<1x32xf32>
      %116 = arith.mulf %114, %90 : vector<1x32xf32>
      %117 = arith.addf %115, %116 : vector<1x32xf32>
      %118 = arith.mulf %112, %86 : vector<1x32xf32>
      %119 = arith.addf %118, %114 : vector<1x32xf32>
      %120 = vector.extract_strided_slice %17 {offsets = [3, 0, 0, 0], sizes = [1, 1, 1, 32], strides = [1, 1, 1, 1]} : vector<8x1x1x32xf32> to vector<1x1x1x32xf32>
      %121 = vector.shape_cast %120 : vector<1x1x1x32xf32> to vector<1x32xf32>
      %122 = vector.extract_strided_slice %20 {offsets = [3, 0, 0, 0], sizes = [1, 1, 1, 32], strides = [1, 1, 1, 1]} : vector<8x1x1x32xf32> to vector<1x1x1x32xf32>
      %123 = vector.shape_cast %122 : vector<1x1x1x32xf32> to vector<1x32xf32>
      %124 = arith.addf %4, %121 : vector<1x32xf32>
      %125 = arith.addf %3, %110 : vector<1x32xf32>
      %126 = arith.maximumf %110, %124 : vector<1x32xf32>
      %127 = arith.subf %110, %126 : vector<1x32xf32>
      %128 = math.exp %127 : vector<1x32xf32>
      %129 = arith.subf %124, %126 : vector<1x32xf32>
      %130 = math.exp %129 : vector<1x32xf32>
      %131 = arith.mulf %128, %117 : vector<1x32xf32>
      %132 = arith.mulf %130, %123 : vector<1x32xf32>
      %133 = arith.addf %131, %132 : vector<1x32xf32>
      %134 = arith.mulf %128, %119 : vector<1x32xf32>
      %135 = arith.addf %134, %130 : vector<1x32xf32>
      %136 = arith.divf %133, %135 : vector<1x32xf32>
      %137 = vector.shape_cast %136 : vector<1x32xf32> to vector<1x1x1x32xf32>
      %c3_i32 = arith.constant 3 : i32
      %138 = arith.addi %14, %c3_i32 : i32
      %c0_41 = arith.constant 0 : index
      %139 = arith.index_cast %138 : i32 to index
      %c0_42 = arith.constant 0 : index
      %c0_43 = arith.constant 0 : index
      %c0_44 = arith.constant 0 : index
      %140 = vector.load %arg7[%c0_41, %139, %c0_42, %c0_43, %c0_44] : memref<1x64x1x1x32xf32, #tpu.memory_space<vmem>>, vector<1x1x1x1x32xf32>
      %141 = vector.shape_cast %140 : vector<1x1x1x1x32xf32> to vector<1x1x1x32xf32>
      %142 = vector.shape_cast %137 : vector<1x1x1x32xf32> to vector<1x1x1x1x32xf32>
      tpu.vector_store %arg7[%c0_41, %139, %c0_42, %c0_43, %c0_44], %142 {strides = array<i32>} : memref<1x64x1x1x32xf32, #tpu.memory_space<vmem>>, vector<1x1x1x1x32xf32>,
      %143 = arith.maximumf %125, %121 : vector<1x32xf32>
      %144 = arith.subf %125, %143 : vector<1x32xf32>
      %145 = math.exp %144 : vector<1x32xf32>
      %146 = arith.subf %121, %143 : vector<1x32xf32>
      %147 = math.exp %146 : vector<1x32xf32>
      %148 = arith.mulf %145, %117 : vector<1x32xf32>
      %149 = arith.mulf %147, %123 : vector<1x32xf32>
      %150 = arith.addf %148, %149 : vector<1x32xf32>
      %151 = arith.mulf %145, %119 : vector<1x32xf32>
      %152 = arith.addf %151, %147 : vector<1x32xf32>
      %153 = vector.extract_strided_slice %17 {offsets = [4, 0, 0, 0], sizes = [1, 1, 1, 32], strides = [1, 1, 1, 1]} : vector<8x1x1x32xf32> to vector<1x1x1x32xf32>
      %154 = vector.shape_cast %153 : vector<1x1x1x32xf32> to vector<1x32xf32>
      %155 = vector.extract_strided_slice %20 {offsets = [4, 0, 0, 0], sizes = [1, 1, 1, 32], strides = [1, 1, 1, 1]} : vector<8x1x1x32xf32> to vector<1x1x1x32xf32>
      %156 = vector.shape_cast %155 : vector<1x1x1x32xf32> to vector<1x32xf32>
      %157 = arith.addf %4, %154 : vector<1x32xf32>
      %158 = arith.addf %3, %143 : vector<1x32xf32>
      %159 = arith.maximumf %143, %157 : vector<1x32xf32>
      %160 = arith.subf %143, %159 : vector<1x32xf32>
      %161 = math.exp %160 : vector<1x32xf32>
      %162 = arith.subf %157, %159 : vector<1x32xf32>
      %163 = math.exp %162 : vector<1x32xf32>
      %164 = arith.mulf %161, %150 : vector<1x32xf32>
      %165 = arith.mulf %163, %156 : vector<1x32xf32>
      %166 = arith.addf %164, %165 : vector<1x32xf32>
      %167 = arith.mulf %161, %152 : vector<1x32xf32>
      %168 = arith.addf %167, %163 : vector<1x32xf32>
      %169 = arith.divf %166, %168 : vector<1x32xf32>
      %170 = vector.shape_cast %169 : vector<1x32xf32> to vector<1x1x1x32xf32>
      %c4_i32 = arith.constant 4 : i32
      %171 = arith.addi %14, %c4_i32 : i32
      %c0_45 = arith.constant 0 : index
      %172 = arith.index_cast %171 : i32 to index
      %c0_46 = arith.constant 0 : index
      %c0_47 = arith.constant 0 : index
      %c0_48 = arith.constant 0 : index
      %173 = vector.load %arg7[%c0_45, %172, %c0_46, %c0_47, %c0_48] : memref<1x64x1x1x32xf32, #tpu.memory_space<vmem>>, vector<1x1x1x1x32xf32>
      %174 = vector.shape_cast %173 : vector<1x1x1x1x32xf32> to vector<1x1x1x32xf32>
      %175 = vector.shape_cast %170 : vector<1x1x1x32xf32> to vector<1x1x1x1x32xf32>
      tpu.vector_store %arg7[%c0_45, %172, %c0_46, %c0_47, %c0_48], %175 {strides = array<i32>} : memref<1x64x1x1x32xf32, #tpu.memory_space<vmem>>, vector<1x1x1x1x32xf32>,
      %176 = arith.maximumf %158, %154 : vector<1x32xf32>
      %177 = arith.subf %158, %176 : vector<1x32xf32>
      %178 = math.exp %177 : vector<1x32xf32>
      %179 = arith.subf %154, %176 : vector<1x32xf32>
      %180 = math.exp %179 : vector<1x32xf32>
      %181 = arith.mulf %178, %150 : vector<1x32xf32>
      %182 = arith.mulf %180, %156 : vector<1x32xf32>
      %183 = arith.addf %181, %182 : vector<1x32xf32>
      %184 = arith.mulf %178, %152 : vector<1x32xf32>
      %185 = arith.addf %184, %180 : vector<1x32xf32>
      %186 = vector.extract_strided_slice %17 {offsets = [5, 0, 0, 0], sizes = [1, 1, 1, 32], strides = [1, 1, 1, 1]} : vector<8x1x1x32xf32> to vector<1x1x1x32xf32>
      %187 = vector.shape_cast %186 : vector<1x1x1x32xf32> to vector<1x32xf32>
      %188 = vector.extract_strided_slice %20 {offsets = [5, 0, 0, 0], sizes = [1, 1, 1, 32], strides = [1, 1, 1, 1]} : vector<8x1x1x32xf32> to vector<1x1x1x32xf32>
      %189 = vector.shape_cast %188 : vector<1x1x1x32xf32> to vector<1x32xf32>
      %190 = arith.addf %4, %187 : vector<1x32xf32>
      %191 = arith.addf %3, %176 : vector<1x32xf32>
      %192 = arith.maximumf %176, %190 : vector<1x32xf32>
      %193 = arith.subf %176, %192 : vector<1x32xf32>
      %194 = math.exp %193 : vector<1x32xf32>
      %195 = arith.subf %190, %192 : vector<1x32xf32>
      %196 = math.exp %195 : vector<1x32xf32>
      %197 = arith.mulf %194, %183 : vector<1x32xf32>
      %198 = arith.mulf %196, %189 : vector<1x32xf32>
      %199 = arith.addf %197, %198 : vector<1x32xf32>
      %200 = arith.mulf %194, %185 : vector<1x32xf32>
      %201 = arith.addf %200, %196 : vector<1x32xf32>
      %202 = arith.divf %199, %201 : vector<1x32xf32>
      %203 = vector.shape_cast %202 : vector<1x32xf32> to vector<1x1x1x32xf32>
      %c5_i32 = arith.constant 5 : i32
      %204 = arith.addi %14, %c5_i32 : i32
      %c0_49 = arith.constant 0 : index
      %205 = arith.index_cast %204 : i32 to index
      %c0_50 = arith.constant 0 : index
      %c0_51 = arith.constant 0 : index
      %c0_52 = arith.constant 0 : index
      %206 = vector.load %arg7[%c0_49, %205, %c0_50, %c0_51, %c0_52] : memref<1x64x1x1x32xf32, #tpu.memory_space<vmem>>, vector<1x1x1x1x32xf32>
      %207 = vector.shape_cast %206 : vector<1x1x1x1x32xf32> to vector<1x1x1x32xf32>
      %208 = vector.shape_cast %203 : vector<1x1x1x32xf32> to vector<1x1x1x1x32xf32>
      tpu.vector_store %arg7[%c0_49, %205, %c0_50, %c0_51, %c0_52], %208 {strides = array<i32>} : memref<1x64x1x1x32xf32, #tpu.memory_space<vmem>>, vector<1x1x1x1x32xf32>,
      %209 = arith.maximumf %191, %187 : vector<1x32xf32>
      %210 = arith.subf %191, %209 : vector<1x32xf32>
      %211 = math.exp %210 : vector<1x32xf32>
      %212 = arith.subf %187, %209 : vector<1x32xf32>
      %213 = math.exp %212 : vector<1x32xf32>
      %214 = arith.mulf %211, %183 : vector<1x32xf32>
      %215 = arith.mulf %213, %189 : vector<1x32xf32>
      %216 = arith.addf %214, %215 : vector<1x32xf32>
      %217 = arith.mulf %211, %185 : vector<1x32xf32>
      %218 = arith.addf %217, %213 : vector<1x32xf32>
      %219 = vector.extract_strided_slice %17 {offsets = [6, 0, 0, 0], sizes = [1, 1, 1, 32], strides = [1, 1, 1, 1]} : vector<8x1x1x32xf32> to vector<1x1x1x32xf32>
      %220 = vector.shape_cast %219 : vector<1x1x1x32xf32> to vector<1x32xf32>
      %221 = vector.extract_strided_slice %20 {offsets = [6, 0, 0, 0], sizes = [1, 1, 1, 32], strides = [1, 1, 1, 1]} : vector<8x1x1x32xf32> to vector<1x1x1x32xf32>
      %222 = vector.shape_cast %221 : vector<1x1x1x32xf32> to vector<1x32xf32>
      %223 = arith.addf %4, %220 : vector<1x32xf32>
      %224 = arith.addf %3, %209 : vector<1x32xf32>
      %225 = arith.maximumf %209, %223 : vector<1x32xf32>
      %226 = arith.subf %209, %225 : vector<1x32xf32>
      %227 = math.exp %226 : vector<1x32xf32>
      %228 = arith.subf %223, %225 : vector<1x32xf32>
      %229 = math.exp %228 : vector<1x32xf32>
      %230 = arith.mulf %227, %216 : vector<1x32xf32>
      %231 = arith.mulf %229, %222 : vector<1x32xf32>
      %232 = arith.addf %230, %231 : vector<1x32xf32>
      %233 = arith.mulf %227, %218 : vector<1x32xf32>
      %234 = arith.addf %233, %229 : vector<1x32xf32>
      %235 = arith.divf %232, %234 : vector<1x32xf32>
      %236 = vector.shape_cast %235 : vector<1x32xf32> to vector<1x1x1x32xf32>
      %c6_i32 = arith.constant 6 : i32
      %237 = arith.addi %14, %c6_i32 : i32
      %c0_53 = arith.constant 0 : index
      %238 = arith.index_cast %237 : i32 to index
      %c0_54 = arith.constant 0 : index
      %c0_55 = arith.constant 0 : index
      %c0_56 = arith.constant 0 : index
      %239 = vector.load %arg7[%c0_53, %238, %c0_54, %c0_55, %c0_56] : memref<1x64x1x1x32xf32, #tpu.memory_space<vmem>>, vector<1x1x1x1x32xf32>
      %240 = vector.shape_cast %239 : vector<1x1x1x1x32xf32> to vector<1x1x1x32xf32>
      %241 = vector.shape_cast %236 : vector<1x1x1x32xf32> to vector<1x1x1x1x32xf32>
      tpu.vector_store %arg7[%c0_53, %238, %c0_54, %c0_55, %c0_56], %241 {strides = array<i32>} : memref<1x64x1x1x32xf32, #tpu.memory_space<vmem>>, vector<1x1x1x1x32xf32>,
      %242 = arith.maximumf %224, %220 : vector<1x32xf32>
      %243 = arith.subf %224, %242 : vector<1x32xf32>
      %244 = math.exp %243 : vector<1x32xf32>
      %245 = arith.subf %220, %242 : vector<1x32xf32>
      %246 = math.exp %245 : vector<1x32xf32>
      %247 = arith.mulf %244, %216 : vector<1x32xf32>
      %248 = arith.mulf %246, %222 : vector<1x32xf32>
      %249 = arith.addf %247, %248 : vector<1x32xf32>
      %250 = arith.mulf %244, %218 : vector<1x32xf32>
      %251 = arith.addf %250, %246 : vector<1x32xf32>
      %252 = vector.extract_strided_slice %17 {offsets = [7, 0, 0, 0], sizes = [1, 1, 1, 32], strides = [1, 1, 1, 1]} : vector<8x1x1x32xf32> to vector<1x1x1x32xf32>
      %253 = vector.shape_cast %252 : vector<1x1x1x32xf32> to vector<1x32xf32>
      %254 = vector.extract_strided_slice %20 {offsets = [7, 0, 0, 0], sizes = [1, 1, 1, 32], strides = [1, 1, 1, 1]} : vector<8x1x1x32xf32> to vector<1x1x1x32xf32>
      %255 = vector.shape_cast %254 : vector<1x1x1x32xf32> to vector<1x32xf32>
      %256 = arith.addf %4, %253 : vector<1x32xf32>
      %257 = arith.addf %3, %242 : vector<1x32xf32>
      %258 = arith.maximumf %242, %256 : vector<1x32xf32>
      %259 = arith.subf %242, %258 : vector<1x32xf32>
      %260 = math.exp %259 : vector<1x32xf32>
      %261 = arith.subf %256, %258 : vector<1x32xf32>
      %262 = math.exp %261 : vector<1x32xf32>
      %263 = arith.mulf %260, %249 : vector<1x32xf32>
      %264 = arith.mulf %262, %255 : vector<1x32xf32>
      %265 = arith.addf %263, %264 : vector<1x32xf32>
      %266 = arith.mulf %260, %251 : vector<1x32xf32>
      %267 = arith.addf %266, %262 : vector<1x32xf32>
      %268 = arith.divf %265, %267 : vector<1x32xf32>
      %269 = vector.shape_cast %268 : vector<1x32xf32> to vector<1x1x1x32xf32>
      %c7_i32 = arith.constant 7 : i32
      %270 = arith.addi %14, %c7_i32 : i32
      %c0_57 = arith.constant 0 : index
      %271 = arith.index_cast %270 : i32 to index
      %c0_58 = arith.constant 0 : index
      %c0_59 = arith.constant 0 : index
      %c0_60 = arith.constant 0 : index
      %272 = vector.load %arg7[%c0_57, %271, %c0_58, %c0_59, %c0_60] : memref<1x64x1x1x32xf32, #tpu.memory_space<vmem>>, vector<1x1x1x1x32xf32>
      %273 = vector.shape_cast %272 : vector<1x1x1x1x32xf32> to vector<1x1x1x32xf32>
      %274 = vector.shape_cast %269 : vector<1x1x1x32xf32> to vector<1x1x1x1x32xf32>
      tpu.vector_store %arg7[%c0_57, %271, %c0_58, %c0_59, %c0_60], %274 {strides = array<i32>} : memref<1x64x1x1x32xf32, #tpu.memory_space<vmem>>, vector<1x1x1x1x32xf32>,
      %275 = arith.maximumf %257, %253 : vector<1x32xf32>
      %276 = arith.subf %257, %275 : vector<1x32xf32>
      %277 = math.exp %276 : vector<1x32xf32>
      %278 = arith.subf %253, %275 : vector<1x32xf32>
      %279 = math.exp %278 : vector<1x32xf32>
      %280 = arith.mulf %277, %249 : vector<1x32xf32>
      %281 = arith.mulf %279, %255 : vector<1x32xf32>
      %282 = arith.addf %280, %281 : vector<1x32xf32>
      %283 = arith.mulf %277, %251 : vector<1x32xf32>
      %284 = arith.addf %283, %279 : vector<1x32xf32>
      scf.yield %282, %284, %275 : vector<1x32xf32>, vector<1x32xf32>, vector<1x32xf32>
    }
    %c8_i32_11 = arith.constant 8 : i32
    %c0_12 = arith.constant 0 : index
    %c0_13 = arith.constant 0 : index
    %10 = vector.load %arg8[%c0_12, %c0_13] : memref<1x32xf32, #tpu.memory_space<vmem>>, vector<1x32xf32>
    tpu.vector_store %arg8[%c0_12, %c0_13], %9#0 {strides = array<i32>} : memref<1x32xf32, #tpu.memory_space<vmem>>, vector<1x32xf32>,
    %c0_14 = arith.constant 0 : index
    %c0_15 = arith.constant 0 : index
    %11 = vector.load %arg9[%c0_14, %c0_15] : memref<1x32xf32, #tpu.memory_space<vmem>>, vector<1x32xf32>
    tpu.vector_store %arg9[%c0_14, %c0_15], %9#1 {strides = array<i32>} : memref<1x32xf32, #tpu.memory_space<vmem>>, vector<1x32xf32>,
    %c0_16 = arith.constant 0 : index
    %c0_17 = arith.constant 0 : index
    %12 = vector.load %arg10[%c0_16, %c0_17] : memref<1x32xf32, #tpu.memory_space<vmem>>, vector<1x32xf32>
    tpu.vector_store %arg10[%c0_16, %c0_17], %9#2 {strides = array<i32>} : memref<1x32xf32, #tpu.memory_space<vmem>>, vector<1x32xf32>,
    return
  }
  func.func @transform_0(%arg0: i32, %arg1: i32, %arg2: i32) -> (i32, i32) {
    %c0_i32 = arith.constant 0 : i32
    %c0_i32_0 = arith.constant 0 : i32
    return %arg1, %c0_i32 : i32, i32
  }
  func.func @transform_1(%arg0: i32, %arg1: i32, %arg2: i32) -> (i32, i32) {
    %c0_i32 = arith.constant 0 : i32
    %c0_i32_0 = arith.constant 0 : i32
    return %arg1, %c0_i32 : i32, i32
  }
  func.func @transform_2(%arg0: i32, %arg1: i32, %arg2: i32) -> (i32, i32, i32, i32, i32) {
    %c0_i32 = arith.constant 0 : i32
    %c0_i32_0 = arith.constant 0 : i32
    %c0_i32_1 = arith.constant 0 : i32
    return %arg0, %arg2, %c0_i32, %arg1, %c0_i32_0 : i32, i32, i32, i32, i32
  }
  func.func @transform_3(%arg0: i32, %arg1: i32, %arg2: i32) -> (i32, i32, i32, i32, i32) {
    %c0_i32 = arith.constant 0 : i32
    %c0_i32_0 = arith.constant 0 : i32
    %c0_i32_1 = arith.constant 0 : i32
    return %arg0, %arg2, %c0_i32, %arg1, %c0_i32_0 : i32, i32, i32, i32, i32
  }
  func.func @transform_4(%arg0: i32, %arg1: i32, %arg2: i32) -> (i32, i32, i32, i32, i32) {
    %c0_i32 = arith.constant 0 : i32
    %c0_i32_0 = arith.constant 0 : i32
    %c0_i32_1 = arith.constant 0 : i32
    return %arg0, %arg2, %c0_i32, %arg1, %c0_i32_0 : i32, i32, i32, i32, i32
  }
}

module attributes {stable_mosaic.version = 11 : i64} {
  func.func @_output_kernel(%arg0: i32, %arg1: memref<128x32xf32, #tpu.memory_space<vmem>>, %arg2: memref<128x32xf32, #tpu.memory_space<vmem>>, %arg3: memref<32x32xbf16, #tpu.memory_space<vmem>>, %arg4: memref<128x32xf32, #tpu.memory_space<vmem>>) attributes {dimension_semantics = [#tpu.dimension_semantics<parallel>], iteration_bounds = array<i64: 1>, scalar_prefetch = 0 : i64, scratch_operands = 0 : i64, tpu.core_type = #tpu.core_type<tc>, window_params = [{transform_indices = @transform_0, window_bounds = array<i64: 128, 32>}, {transform_indices = @transform_1, window_bounds = array<i64: 128, 32>}, {pipeline_mode = #tpu.pipeline_mode<synchronous>, transform_indices = @transform_2, window_bounds = array<i64: 32, 32>}, {transform_indices = @transform_3, window_bounds = array<i64: 128, 32>}]} {
    %c0 = arith.constant 0 : index
    %c0_0 = arith.constant 0 : index
    %0 = vector.load %arg1[%c0, %c0_0] : memref<128x32xf32, #tpu.memory_space<vmem>>, vector<128x32xf32>
    %c0_1 = arith.constant 0 : index
    %c0_2 = arith.constant 0 : index
    %1 = vector.load %arg2[%c0_1, %c0_2] : memref<128x32xf32, #tpu.memory_space<vmem>>, vector<128x32xf32>
    %2 = arith.mulf %0, %1 : vector<128x32xf32>
    %3 = arith.truncf %2 : vector<128x32xf32> to vector<128x32xbf16>
    %c0_3 = arith.constant 0 : index
    %c0_4 = arith.constant 0 : index
    %4 = vector.load %arg3[%c0_3, %c0_4] : memref<32x32xbf16, #tpu.memory_space<vmem>>, vector<32x32xbf16>
    %cst = arith.constant dense<0.000000e+00> : vector<128x32xf32>
    %5 = tpu.matmul %3, %4, %cst {dimension_numbers = #tpu.dot_dimension_numbers<[1], [0], [0], [1], [0, 0, 1, 1], [], []>} : vector<128x32xbf16>, vector<32x32xbf16>, vector<128x32xf32> -> vector<128x32xf32>
    %c0_5 = arith.constant 0 : index
    %c0_6 = arith.constant 0 : index
    %6 = vector.load %arg4[%c0_5, %c0_6] : memref<128x32xf32, #tpu.memory_space<vmem>>, vector<128x32xf32>
    tpu.vector_store %arg4[%c0_5, %c0_6], %5 {strides = array<i32>} : memref<128x32xf32, #tpu.memory_space<vmem>>, vector<128x32xf32>,
    return
  }
  func.func @transform_0(%arg0: i32) -> (i32, i32) {
    %c0_i32 = arith.constant 0 : i32
    %c0_i32_0 = arith.constant 0 : i32
    return %arg0, %c0_i32 : i32, i32
  }
  func.func @transform_1(%arg0: i32) -> (i32, i32) {
    %c0_i32 = arith.constant 0 : i32
    %c0_i32_0 = arith.constant 0 : i32
    return %arg0, %c0_i32 : i32, i32
  }
  func.func @transform_2(%arg0: i32) -> (i32, i32) {
    %c0_i32 = arith.constant 0 : i32
    %c0_i32_0 = arith.constant 0 : i32
    %c0_i32_1 = arith.constant 0 : i32
    return %c0_i32, %c0_i32_0 : i32, i32
  }
  func.func @transform_3(%arg0: i32) -> (i32, i32) {
    %c0_i32 = arith.constant 0 : i32
    %c0_i32_0 = arith.constant 0 : i32
    return %arg0, %c0_i32 : i32, i32
  }
}

</mosaic_0001>

<bundles_post_ra>
// kernel: fwd.6
= control target key start
LH: loop header
LB: loop body
LE: loop exit
PB: predicated region body
PF: predicated region fallthrough
CT: control target
= control target key end

     0   :  { %vm87_vm0 = vcmask 261120   ;;  %s799_s10 = smov 96   ;;  %s800_s13 = smov 64   ;;  %s1455_s1 = inlined_call_operand.vmem [shape: bf16[32,96], index: 1, kind: input, shape index: {}]   ;;  %s1456_s0 = inlined_call_operand.vmem [shape: bf16[128,32], index: 0, kind: input, shape index: {}]   ;;  %s1457_s2 = inlined_call_operand.vmem [shape: f32[128,32], index: 2, kind: output, shape index: {0}]   ;;  %s1458_s3 = inlined_call_operand.vmem [shape: f32[128,32], index: 3, kind: output, shape index: {1}]   ;;  %s1459_s4 = inlined_call_operand.vmem [shape: f32[128,32], index: 4, kind: output, shape index: {2}]  }
   0x1   :  { %v726_v0 = vld [vmem:[%s1455_s1 + $0x8] sm:$0xff]  ;;  %v725_v1 = vld [vmem:[%s1455_s1] sm:$0xff]  ;;  %v719_v3 = vld [vmem:[%s1456_s0 + $0x10] sm:$0xff] }
   0x2   :  { %118 = vmatpush.bf16.msra.mxu0 %v726_v0  ;;  %727 = vmatpush.bf16.msra.mxu1 %v726_v0  ;;  %v717_v2 = vld [vmem:[%s1456_s0] sm:$0xff]  ;;  %v723_v5 = vld [vmem:[%s1456_s0 + $0x30] sm:$0xff]  ;;  %v718_v6 = vld [vmem:[%s1456_s0 + $0x8] sm:$0xff] }
   0x3   :  { %728 = vmatpush.bf16.msra.mxu2 %v726_v0  ;;  %729 = vmatpush.bf16.msra.mxu3 %v726_v0  ;;  %v721_v4 = vld [vmem:[%s1456_s0 + $0x20] sm:$0xff]  ;;  %v720_v7 = vld [vmem:[%s1456_s0 + $0x18] sm:$0xff]  ;;  %v722_v8 = vld [vmem:[%s1456_s0 + $0x28] sm:$0xff] }
   0x4   :  { %v724_v9 = vld [vmem:[%s1456_s0 + $0x38] sm:$0xff] }
   0x6   :  { %119 = vmatpush.bf16.msra.mxu0 %v725_v1  ;;  %730 = vmatpush.bf16.msra.mxu1 %v725_v1 }
   0x7   :  { %731 = vmatpush.bf16.msra.mxu2 %v725_v1  ;;  %732 = vmatpush.bf16.msra.mxu3 %v725_v1 }
   0x9   :  { %693 = vmatmul.msk.bf16.vlgmr.msra.gmra.mxu0 %vm87_vm0, %v717_v2  ;;  %695 = vmatmul.msk.bf16.vlgmr.msra.gmra.mxu1 %vm87_vm0, %v719_v3 }
   0xa   :  { %697 = vmatmul.msk.bf16.vlgmr.msra.gmra.mxu2 %vm87_vm0, %v721_v4  ;;  %699 = vmatmul.msk.bf16.vlgmr.msra.gmra.mxu3 %vm87_vm0, %v723_v5 }
  0x19   :  { %694 = vmatmul.msk.bf16.gmra.mxu0 %vm87_vm0, %v718_v6  ;;  %696 = vmatmul.msk.bf16.gmra.mxu1 %vm87_vm0, %v720_v7 }
  0x1a   :  { %698 = vmatmul.msk.bf16.gmra.mxu2 %vm87_vm0, %v722_v8  ;;  %700 = vmatmul.msk.bf16.gmra.mxu3 %vm87_vm0, %v724_v9 }
  0x86   :  { %v121_v10 = vpop.f32.mrf.mxu0  ;;  %v131_v11 = vpop.f32.mrf.mxu1 }
  0x87   :  { %161 = vst.msk [vmem:[%s1457_s2] sm:$0xff] %vm87_vm0, %v121_v10  ;;  %v701_v12 = vmul.f32 -1.442695, %v121_v10  ;;  %v705_v13 = vmul.f32 -1.442695, %v131_v11  ;;  %201 = vrot.lane.b32.xlu2 %v131_v11, %s799_s10  ;;  %193 = vrot.lane.b32.xlu0 %v121_v10, %s799_s10 }
  0x88   :  { %165 = vst.msk [vmem:[%s1457_s2 + $0x20] sm:$0xff] %vm87_vm0, %v131_v11 }
  0x89   :  { %735 = vpow2.f32 %v701_v12 }
  0x8a   :  { %737 = vpow2.f32 %v705_v13 }
  0x8d   :  { %v141_v14 = vpop.f32.mrf.mxu2  ;;  %v151_v15 = vpop.f32.mrf.mxu3 }
  0x8e   :  { %169 = vst.msk [vmem:[%s1457_s2 + $0x40] sm:$0xff] %vm87_vm0, %v141_v14  ;;  %v709_v16 = vmul.f32 -1.442695, %v141_v14  ;;  %v123_v17 = vpop.f32.mrf.mxu0  ;;  %v133_v18 = vpop.f32.mrf.mxu1  ;;  %v713_v25 = vmul.f32 -1.442695, %v151_v15 }
  0x8f   :  { %v736_v19 = vpop.eup %735  ;;  %173 = vst.msk [vmem:[%s1457_s2 + $0x60] sm:$0xff] %vm87_vm0, %v151_v15  ;;  %209 = vrot.lane.b32.xlu2 %v141_v14, %s799_s10  ;;  %217 = vrot.lane.b32.xlu0 %v151_v15, %s799_s10  ;;  %v702_v21 = vmul.f32 -1.442695, %v123_v17  ;;  %v706_v23 = vmul.f32 -1.442695, %v133_v18 }
  0x90   :  { %v738_v20 = vpop.eup %737  ;;  %739 = vpow2.f32 %v709_v16  ;;  %162 = vst.msk [vmem:[%s1457_s2 + $0x8] sm:$0xff] %vm87_vm0, %v123_v17  ;;  %v894_v24 = vadd.f32 1.0, %v736_v19 }
  0x91   :  { %v888_v22 = vadd.f32 1.0, %v738_v20  ;;  %166 = vst.msk [vmem:[%s1457_s2 + $0x28] sm:$0xff] %vm87_vm0, %v133_v18 }
  0x92   :  { %v332_v60 = vand.u32 2147483648, %v894_v24  ;;  %vm326_vm5 = vweird.f32 %v894_v24  ;;  %v330_v10 = vand.u32 2147483647, %v894_v24 }
  0x93   :  { %741 = vrcp.f32 %v888_v22  ;;  %vm386_vm1 = vweird.f32 %v888_v22  ;;  %v392_v39 = vand.u32 2147483648, %v888_v22  ;;  %v390_v46 = vand.u32 2147483647, %v888_v22 }
  0x94   :  { %743 = vpow2.f32 %v702_v21  ;;  %v990_v11 = vor.u32 1.1754944e-38, %v332_v60  ;;  %vm1027_vm8 = vcmp.eq.f32.partialorder %v330_v10, 8.507059e+37 }
  0x95   :  { %745 = vpow2.f32 %v706_v23  ;;  %v143_v26 = vpop.f32.mrf.mxu2  ;;  %v153_v27 = vpop.f32.mrf.mxu3  ;;  %v393_v54 = vor.u32 1.1754944e-38, %v392_v39  ;;  %vm391_vm4 = vcmp.eq.f32.partialorder %v390_v46, 8.507059e+37 }
  0x96   :  { %v740_v28 = vpop.eup %739  ;;  %747 = vrcp.f32 %v894_v24  ;;  %170 = vst.msk [vmem:[%s1457_s2 + $0x48] sm:$0xff] %vm87_vm0, %v143_v26  ;;  %219 = vrot.lane.b32.xlu1 %v153_v27, %s799_s10  ;;  %v126_v29 = vpop.f32.mrf.mxu0  ;;  %v710_v32 = vmul.f32 -1.442695, %v143_v26  ;;  %v714_v43 = vmul.f32 -1.442695, %v153_v27 }
  0x97   :  { %v903_v30 = vpop.f32.mrf.mxu1  ;;  %v905_v31 = vadd.f32 1.0, %v740_v28  ;;  %174 = vst.msk [vmem:[%s1457_s2 + $0x68] sm:$0xff] %vm87_vm0, %v153_v27  ;;  %203 = vrot.lane.b32.xlu2 %v133_v18, %s799_s10  ;;  %195 = vrot.lane.b32.xlu0 %v123_v17, %s799_s10  ;;  %749 = vpow2.f32 %v713_v25  ;;  %v703_v38 = vmul.f32 -1.442695, %v126_v29 }
  0x98   :  { %163 = vst.msk [vmem:[%s1457_s2 + $0x10] sm:$0xff] %vm87_vm0, %v126_v29  ;;  %v707_v56 = vmul.f32 -1.442695, %v903_v30 }
  0x99   :  { %v742_v33 = vpop.eup %741  ;;  %751 = vrcp.f32 %v905_v31  ;;  %167 = vst.msk [vmem:[%s1457_s2 + $0x30] sm:$0xff] %vm87_vm0, %v903_v30  ;;  %v452_v9 = vand.u32 2147483648, %v905_v31  ;;  %vm446_vm6 = vweird.f32 %v905_v31  ;;  %v450_v15 = vand.u32 2147483647, %v905_v31 }
  0x9a   :  { %v744_v34 = vpop.eup %743  ;;  %v382_v35 = vmul.f32 %v742_v33, %v888_v22  ;;  %753 = vpow2.f32 %v710_v32  ;;  %vm387_vm2 = vweird.f32 %v742_v33 }
  0x9b   :  { %v746_v36 = vpop.eup %745  ;;  %v924_v37 = vadd.f32 1.0, %v744_v34  ;;  %vm956_vm3 = vmor %vm386_vm1, %vm387_vm2  ;;  %vm1021_vm7 = vcmp.eq.f32.partialorder %v450_v15, 8.507059e+37 }
  0x9c   :  { %v928_v40 = vpop.eup %747  ;;  %v930_v41 = vadd.f32 1.0, %v746_v36  ;;  %v383_v42 = vsub.f32 1.0, %v382_v35 }
  0x9d   :  { %755 = vrcp.f32 %v924_v37  ;;  %v146_v44 = vpop.f32.mrf.mxu2  ;;  %v156_v45 = vpop.f32.mrf.mxu3  ;;  %v322_v55 = vmul.f32 %v928_v40, %v894_v24  ;;  %v345_v27 = vand.u32 2147483647, %v924_v37  ;;  %vm341_vm10 = vweird.f32 %v924_v37 }
  0x9e   :  { %v750_v47 = vpop.eup %749  ;;  %757 = vrcp.f32 %v930_v41  ;;  %171 = vst.msk [vmem:[%s1457_s2 + $0x50] sm:$0xff] %vm87_vm0, %v146_v44  ;;  %v711_v48 = vmul.f32 -1.442695, %v146_v44  ;;  %197 = vrot.lane.b32.xlu1 %v126_v29, %s799_s10  ;;  %v940_v49 = vpop.f32.mrf.mxu0  ;;  %v384_v50 = vmul.f32 %v742_v33, %v383_v42  ;;  %v715_v1 = vmul.f32 -1.442695, %v156_v45 }
  0x9f   :  { %v942_v51 = vpop.eup %751  ;;  %759 = vpow2.f32 %v703_v38  ;;  %164 = vst.msk [vmem:[%s1457_s2 + $0x18] sm:$0xff] %vm87_vm0, %v940_v49  ;;  %221 = vrot.lane.b32.xlu2 %v156_v45, %s799_s10  ;;  %v950_v52 = vpop.f32.mrf.mxu1  ;;  %211 = vrot.lane.b32.xlu0 %v143_v26, %s799_s10  ;;  %v969_v59 = vadd.f32 1.0, %v750_v47  ;;  %v323_v2 = vsub.f32 1.0, %v322_v55  ;;  %v704_v25 = vmul.f32 -1.442695, %v940_v49 }
  0xa0   :  { %761 = vpow2.f32 %v711_v48  ;;  %175 = vst.msk [vmem:[%s1457_s2 + $0x70] sm:$0xff] %vm87_vm0, %v156_v45  ;;  %v385_v57 = vadd.f32 %v742_v33, %v384_v50  ;;  %v442_v58 = vmul.f32 %v942_v51, %v905_v31  ;;  %v754_v61 = vpop.eup %753  ;;  %v708_v62 = vmul.f32 -1.442695, %v950_v52 }
  0xa1   :  { %763 = vpow2.f32 %v714_v43  ;;  %168 = vst.msk [vmem:[%s1457_s2 + $0x38] sm:$0xff] %vm87_vm0, %v950_v52  ;;  %v999_v17 = vadd.f32 1.0, %v754_v61  ;;  %v324_v23 = vmul.f32 %v928_v40, %v323_v2  ;;  %v453_v26 = vor.u32 1.1754944e-38, %v452_v9 }
  0xa2   :  { %v389_v63 = vsel %vm956_vm3, %v742_v33, %v385_v57  ;;  %765 = vpow2.f32 %v707_v56  ;;  %v443_v5 = vsub.f32 1.0, %v442_v58  ;;  %v347_v33 = vand.u32 2147483648, %v924_v37 }
  0xa3   :  { %v980_v0 = vpop.eup %755  ;;  %v394_v4 = vsel %vm391_vm4, %v393_v54, %v389_v63  ;;  %767 = vrcp.f32 %v969_v59  ;;  %vm447_vm9 = vweird.f32 %v942_v51  ;;  %v325_v42 = vadd.f32 %v928_v40, %v324_v23 }
  0xa4   :  { %v982_v3 = vpop.eup %757  ;;  %v337_v6 = vmul.f32 %v980_v0, %v924_v37  ;;  %769 = vpow2.f32 %v708_v62  ;;  %v444_v22 = vmul.f32 %v942_v51, %v443_v5  ;;  %vm327_vm11 = vweird.f32 %v928_v40  ;;  %vm1055_vm13 = vmor %vm446_vm6, %vm447_vm9 }
  0xa5   :  { %v760_v7 = vpop.eup %759  ;;  %v148_v8 = vpop.f32.mrf.mxu2  ;;  %v397_v20 = vmul.f32 %v982_v3, %v930_v41  ;;  %771 = vpow2.f32 %v715_v1  ;;  %vm1044_vm12 = vcmp.eq.f32.partialorder %v345_v27, 8.507059e+37  ;;  %vm342_vm14 = vweird.f32 %v980_v0  ;;  %vm1070_vm15 = vmor %vm326_vm5, %vm327_vm11 }
  0xa6   :  { %v762_v12 = vpop.eup %761  ;;  %172 = vst.msk [vmem:[%s1457_s2 + $0x58] sm:$0xff] %vm87_vm0, %v148_v8  ;;  %v712_v13 = vmul.f32 -1.442695, %v148_v8  ;;  %213 = vrot.lane.b32.xlu1 %v146_v44, %s799_s10  ;;  %v158_v14 = vpop.f32.mrf.mxu3  ;;  %v338_v19 = vsub.f32 1.0, %v337_v6  ;;  %v1012_v21 = vadd.f32 1.0, %v760_v7  ;;  %v445_v39 = vadd.f32 %v942_v51, %v444_v22  ;;  %vm1093_vm2 = vmor %vm341_vm10, %vm342_vm14 }
  0xa7   :  { %v764_v16 = vpop.eup %763  ;;  %v1001_v18 = vadd.f32 1.0, %v762_v12  ;;  %176 = vst.msk [vmem:[%s1457_s2 + $0x78] sm:$0xff] %vm87_vm0, %v158_v14  ;;  %585 = vrot.lane.b32.xlu2 %v394_v4, %s800_s13  ;;  %205 = vrot.lane.b32.xlu0 %v903_v30, %s799_s10  ;;  %v398_v36 = vsub.f32 1.0, %v397_v20  ;;  %v348_v50 = vor.u32 1.1754944e-38, %v347_v33  ;;  %vm401_vm1 = vweird.f32 %v930_v41 }
  0xa8   :  { %v766_v28 = vpop.eup %765  ;;  %v1019_v29 = vadd.f32 1.0, %v764_v16  ;;  %v339_v32 = vmul.f32 %v980_v0, %v338_v19  ;;  %v716_v56 = vmul.f32 -1.442695, %v158_v14  ;;  %v449_v57 = vsel %vm1055_vm13, %v942_v51, %v445_v39 }
  0xa9   :  { %773 = vrcp.f32 %v1001_v18  ;;  %v1031_v35 = vpop.eup %767  ;;  %v1040_v43 = vadd.f32 1.0, %v766_v28  ;;  %v329_v24 = vsel %vm1070_vm15, %v928_v40, %v325_v42  ;;  %vm402_vm3 = vweird.f32 %v982_v3 }
  0xaa   :  { %775 = vpow2.f32 %v712_v13  ;;  %v770_v38 = vpop.eup %769  ;;  %v340_v48 = vadd.f32 %v980_v0, %v339_v32  ;;  %v502_v54 = vmul.f32 %v1031_v35, %v969_v59  ;;  %v405_v51 = vand.u32 2147483647, %v930_v41  ;;  %vm1121_vm4 = vmor %vm401_vm1, %vm402_vm3 }
  0xab   :  { %777 = vrcp.f32 %v999_v17  ;;  %v1042_v44 = vadd.f32 1.0, %v770_v38  ;;  %v772_v46 = vpop.eup %771  ;;  %v407_v2 = vand.u32 2147483648, %v930_v41  ;;  %v454_v6 = vsel %vm1021_vm7, %v453_v26, %v449_v57 }
  0xac   :  { %779 = vrcp.f32 %v1012_v21  ;;  %v503_v40 = vsub.f32 1.0, %v502_v54  ;;  %v344_v1 = vsel %vm1093_vm2, %v980_v0, %v340_v48  ;;  %v1107_v5 = vadd.f32 1.0, %v772_v46 }
  0xad   :  { %781 = vpow2.f32 %v704_v25  ;;  %v334_v7 = vsel %vm1027_vm8, %v990_v11, %v329_v24  ;;  %vm476_vm5 = vweird.f32 %v1001_v18  ;;  %v480_v12 = vand.u32 2147483647, %v1001_v18 }
  0xae   :  { %783 = vrcp.f32 %v1019_v29  ;;  %199 = vrot.lane.b32.xlu1 %v940_v49, %s799_s10  ;;  %v399_v49 = vmul.f32 %v982_v3, %v398_v36  ;;  %v349_v13 = vsel %vm1044_vm12, %v348_v50, %v344_v1  ;;  %vm1132_vm6 = vcmp.eq.f32.partialorder %v405_v51, 8.507059e+37 }
  0xaf   :  { %v1061_v53 = vpop.eup %773  ;;  %785 = vrcp.f32 %v1042_v44  ;;  %215 = vrot.lane.b32.xlu2 %v148_v8, %s799_s10  ;;  %223 = vrot.lane.b32.xlu0 %v158_v14, %s799_s10  ;;  %v504_v41 = vmul.f32 %v1031_v35, %v503_v40  ;;  %v408_v16 = vor.u32 1.1754944e-38, %v407_v2  ;;  %v482_v19 = vand.u32 2147483648, %v1001_v18 }
  0xb0   :  { %v776_v55 = vpop.eup %775  ;;  %v472_v58 = vmul.f32 %v1061_v53, %v1001_v18  ;;  %787 = vrcp.f32 %v1040_v43  ;;  %v400_v8 = vadd.f32 %v982_v3, %v399_v49  ;;  %vm477_vm7 = vweird.f32 %v1061_v53 }
  0xb1   :  { %v1086_v60 = vpop.eup %777  ;;  %v1101_v63 = vadd.f32 1.0, %v776_v55  ;;  %789 = vpow2.f32 %v716_v56  ;;  %vm1157_vm8 = vcmp.eq.f32.partialorder %v480_v12, 8.507059e+37  ;;  %v505_v30 = vadd.f32 %v1031_v35, %v504_v41  ;;  %vm1170_vm11 = vmor %vm476_vm5, %vm477_vm7 }
  0xb2   :  { %v1099_v62 = vpop.eup %779  ;;  %v473_v37 = vsub.f32 1.0, %v472_v58  ;;  %v404_v23 = vsel %vm1121_vm4, %v982_v3, %v400_v8  ;;  %vm506_vm9 = vweird.f32 %v969_v59  ;;  %vm507_vm10 = vweird.f32 %v1031_v35 }
  0xb3   :  { %v782_v4 = vpop.eup %781  ;;  %v352_v15 = vmul.f32 %v1099_v62, %v1012_v21  ;;  %791 = vrcp.f32 %v1101_v63  ;;  %v457_v3 = vmul.f32 %v1086_v60, %v999_v17  ;;  %v409_v33 = vsel %vm1132_vm6, %v408_v16, %v404_v23  ;;  %vm1184_vm13 = vmor %vm506_vm9, %vm507_vm10 }
  0xb4   :  { %v1115_v9 = vpop.eup %783  ;;  %v474_v10 = vmul.f32 %v1061_v53, %v473_v37  ;;  %v1154_v26 = vadd.f32 1.0, %v782_v4  ;;  %793 = vrcp.f32 %v1107_v5  ;;  %v483_v36 = vor.u32 1.1754944e-38, %v482_v19 }
  0xb5   :  { %v1128_v11 = vpop.eup %785  ;;  %v510_v38 = vand.u32 2147483647, %v969_v59  ;;  %v512_v45 = vand.u32 2147483648, %v969_v59  ;;  %vm431_vm12 = vweird.f32 %v1042_v44  ;;  %v435_v48 = vand.u32 2147483647, %v1042_v44 }
  0xb6   :  { %207 = vrot.lane.b32.xlu1 %v950_v52, %s799_s10  ;;  %v427_v20 = vmul.f32 %v1128_v11, %v1042_v44  ;;  %v1145_v22 = vpop.eup %787  ;;  %v475_v25 = vadd.f32 %v1061_v53, %v474_v10  ;;  %v353_v52 = vsub.f32 1.0, %v352_v15  ;;  %v437_v50 = vand.u32 2147483648, %v1042_v44 }
  0xb7   :  { %593 = vrot.lane.b32.xlu0 %v454_v6, %s800_s13  ;;  %579 = vrot.lane.b32.xlu2 %v349_v13, %s800_s13  ;;  %v790_v32 = vpop.eup %789  ;;  %v458_v31 = vsub.f32 1.0, %v457_v3  ;;  %v509_v59 = vsel %vm1184_vm13, %v1031_v35, %v505_v30  ;;  %vm432_vm14 = vweird.f32 %v1128_v11  ;;  %vm356_vm15 = vweird.f32 %v1012_v21 }
  0xb8   :  { %v428_v28 = vsub.f32 1.0, %v427_v20  ;;  %v354_v39 = vmul.f32 %v1099_v62, %v353_v52  ;;  %v479_v42 = vsel %vm1170_vm11, %v1061_v53, %v475_v25  ;;  %v517_v53 = vmul.f32 %v1115_v9, %v1019_v29  ;;  %vm1218_vm3 = vmor %vm431_vm12, %vm432_vm14 }
  0xb9   :  { %v1182_v18 = vpop.eup %791  ;;  %vm357_vm1 = vweird.f32 %v1099_v62  ;;  %v484_v54 = vsel %vm1157_vm8, %v483_v36, %v479_v42  ;;  %v360_v56 = vand.u32 2147483647, %v1012_v21  ;;  %v513_v35 = vor.u32 1.1754944e-38, %v512_v45 }
  0xba   :  { %v429_v46 = vmul.f32 %v1128_v11, %v428_v28  ;;  %v1198_v49 = vpop.eup %793  ;;  %v355_v55 = vadd.f32 %v1099_v62, %v354_v39  ;;  %v518_v57 = vsub.f32 1.0, %v517_v53  ;;  %v362_v58 = vand.u32 2147483648, %v1012_v21  ;;  %vm358_vm5 = vmor %vm356_vm15, %vm357_vm1 }
  0xbb   :  { %v487_v61 = vmul.f32 %v1182_v18, %v1101_v63  ;;  %795 = vrcp.f32 %v1154_v26  ;;  %v1212_v51 = vadd.f32 1.0, %v790_v32  ;;  %vm511_vm2 = vcmp.eq.f32.partialorder %v510_v38, 8.507059e+37 }
  0xbc   :  { %v430_v24 = vadd.f32 %v1128_v11, %v429_v46  ;;  %v459_v1 = vmul.f32 %v1086_v60, %v458_v31  ;;  %v514_v2 = vsel %vm511_vm2, %v513_v35, %v509_v59  ;;  %vm1223_vm4 = vcmp.eq.f32.partialorder %v435_v48, 8.507059e+37 }
  0xbd   :  { %v438_v4 = vor.u32 1.1754944e-38, %v437_v50  ;;  %v488_v6 = vsub.f32 1.0, %v487_v61  ;;  %v359_v44 = vsel %vm358_vm5, %v1099_v62, %v355_v55  ;;  %vm361_vm6 = vcmp.eq.f32.partialorder %v360_v56, 8.507059e+37 }
  0xbe   :  { %577 = vrot.lane.b32.xlu1 %v334_v7, %s800_s13  ;;  %v519_v7 = vmul.f32 %v1115_v9, %v518_v57  ;;  %v412_v8 = vmul.f32 %v1145_v22, %v1040_v43  ;;  %v434_v0 = vsel %vm1218_vm3, %v1128_v11, %v430_v24  ;;  %v363_v10 = vor.u32 1.1754944e-38, %v362_v58 }
  0xbf   :  { %587 = vrot.lane.b32.xlu0 %v409_v33, %s800_s13  ;;  %597 = vrot.lane.b32.xlu2 %v484_v54, %s800_s13  ;;  %vm461_vm7 = vweird.f32 %v999_v17  ;;  %v489_v12 = vmul.f32 %v1182_v18, %v488_v6  ;;  %v460_v21 = vadd.f32 %v1086_v60, %v459_v1  ;;  %vm462_vm8 = vweird.f32 %v1086_v60 }
  0xc0   :  { %v465_v62 = vand.u32 2147483647, %v999_v17  ;;  %v467_v13 = vand.u32 2147483648, %v999_v17  ;;  %v364_v14 = vsel %vm361_vm6, %v363_v10, %v359_v44  ;;  %vm522_vm9 = vweird.f32 %v1115_v9  ;;  %vm1261_vm10 = vmor %vm461_vm7, %vm462_vm8 }
  0xc1   :  { %v525_v41 = vand.u32 2147483647, %v1019_v29  ;;  %v532_v11 = vmul.f32 %v1198_v49, %v1107_v5  ;;  %v1248_v15 = vpop.eup %795  ;;  %v439_v16 = vsel %vm1223_vm4, %v438_v4, %v434_v0  ;;  %v520_v19 = vadd.f32 %v1115_v9, %v519_v7 }
  0xc2   :  { %v527_v20 = vand.u32 2147483648, %v1019_v29  ;;  %v413_v23 = vsub.f32 1.0, %v412_v8  ;;  %v490_v52 = vadd.f32 %v1182_v18, %v489_v12  ;;  %vm492_vm11 = vweird.f32 %v1182_v18 }
  0xc3   :  { %v495_v27 = vand.u32 2147483647, %v1101_v63  ;;  %v533_v28 = vsub.f32 1.0, %v532_v11  ;;  %797 = vrcp.f32 %v1212_v51  ;;  %v464_v30 = vsel %vm1261_vm10, %v1086_v60, %v460_v21 }
  0xc4   :  { %vm521_vm12 = vweird.f32 %v1019_v29  ;;  %v497_v17 = vand.u32 2147483648, %v1101_v63  ;;  %vm466_vm13 = vcmp.eq.f32.partialorder %v465_v62, 8.507059e+37  ;;  %v468_v3 = vor.u32 1.1754944e-38, %v467_v13 }
  0xc5   :  { %vm1276_vm14 = vmor %vm521_vm12, %vm522_vm9  ;;  %vm526_vm15 = vcmp.eq.f32.partialorder %v525_v41, 8.507059e+37  ;;  %vm491_vm1 = vweird.f32 %v1101_v63  ;;  %v528_v60 = vor.u32 1.1754944e-38, %v527_v20  ;;  %v414_v34 = vmul.f32 %v1145_v22, %v413_v23 }
  0xc6   :  { %601 = vrot.lane.b32.xlu1 %v514_v2, %s800_s13  ;;  %v524_v33 = vsel %vm1276_vm14, %v1115_v9, %v520_v19  ;;  %vm1284_vm2 = vmor %vm491_vm1, %vm492_vm11  ;;  %v367_v36 = vmul.f32 %v1248_v15, %v1154_v26  ;;  %v469_v38 = vsel %vm466_vm13, %v468_v3, %v464_v30  ;;  %vm496_vm3 = vcmp.eq.f32.partialorder %v495_v27, 8.507059e+37 }
  0xc7   :  { %591 = vrot.lane.b32.xlu2 %v439_v16, %s800_s13  ;;  %581 = vrot.lane.b32.xlu0 %v364_v14, %s800_s13  ;;  %v494_v39 = vsel %vm1284_vm2, %v1182_v18, %v490_v52  ;;  %v534_v63 = vmul.f32 %v1198_v49, %v533_v28  ;;  %v498_v42 = vor.u32 1.1754944e-38, %v497_v17  ;;  %vm416_vm4 = vweird.f32 %v1040_v43 }
  0xc8   :  { %vm417_vm5 = vweird.f32 %v1145_v22  ;;  %v420_v9 = vand.u32 2147483647, %v1040_v43  ;;  %v529_v45 = vsel %vm526_vm15, %v528_v60, %v524_v33  ;;  %v422_v46 = vand.u32 2147483648, %v1040_v43 }
  0xc9   :  { %vm536_vm6 = vweird.f32 %v1107_v5  ;;  %vm537_vm7 = vweird.f32 %v1198_v49  ;;  %v798_v47 = vpop.eup %797  ;;  %v499_v18 = vsel %vm496_vm3, %v498_v42, %v494_v39  ;;  %v415_v48 = vadd.f32 %v1145_v22, %v414_v34  ;;  %vm418_vm8 = vmor %vm416_vm4, %vm417_vm5 }
  0xca   :  { %v542_v50 = vand.u32 2147483648, %v1107_v5  ;;  %v368_v31 = vsub.f32 1.0, %v367_v36  ;;  %v535_v53 = vadd.f32 %v1198_v49, %v534_v63  ;;  %v540_v59 = vand.u32 2147483647, %v1107_v5  ;;  %vm538_vm9 = vmor %vm536_vm6, %vm537_vm7 }
  0xcb   :  { %vm421_vm10 = vcmp.eq.f32.partialorder %v420_v9, 8.507059e+37  ;;  %v423_v54 = vor.u32 1.1754944e-38, %v422_v46  ;;  %v419_v55 = vsel %vm418_vm8, %v1145_v22, %v415_v48  ;;  %v547_v35 = vmul.f32 %v798_v47, %v1212_v51 }
  0xcc   :  { %v543_v56 = vor.u32 1.1754944e-38, %v542_v50  ;;  %v369_v57 = vmul.f32 %v1248_v15, %v368_v31  ;;  %v539_v24 = vsel %vm538_vm9, %v1198_v49, %v535_v53  ;;  %vm541_vm11 = vcmp.eq.f32.partialorder %v540_v59, 8.507059e+37 }
  0xcd   :  { %v424_v58 = vsel %vm421_vm10, %v423_v54, %v419_v55  ;;  %vm372_vm12 = vweird.f32 %v1248_v15  ;;  %v548_v5 = vsub.f32 1.0, %v547_v35  ;;  %v377_v22 = vand.u32 2147483648, %v1154_v26 }
  0xce   :  { %595 = vrot.lane.b32.xlu1 %v469_v38, %s800_s13  ;;  %v544_v43 = vsel %vm541_vm11, %v543_v56, %v539_v24  ;;  %v370_v61 = vadd.f32 %v1248_v15, %v369_v57  ;;  %vm371_vm13 = vweird.f32 %v1154_v26  ;;  %v375_v40 = vand.u32 2147483647, %v1154_v26 }
  0xcf   :  { %603 = vrot.lane.b32.xlu2 %v529_v45, %s800_s13  ;;  %599 = vrot.lane.b32.xlu0 %v499_v18, %s800_s13  ;;  %vm373_vm14 = vmor %vm371_vm13, %vm372_vm12  ;;  %v549_v1 = vmul.f32 %v798_v47, %v548_v5  ;;  %v378_v2 = vor.u32 1.1754944e-38, %v377_v22  ;;  %vm551_vm1 = vweird.f32 %v1212_v51  ;;  %vm552_vm2 = vweird.f32 %v798_v47 }
  0xd0   :  { %v374_v49 = vsel %vm373_vm14, %v1248_v15, %v370_v61  ;;  %vm376_vm15 = vcmp.eq.f32.partialorder %v375_v40, 8.507059e+37  ;;  %v557_v4 = vand.u32 2147483648, %v1212_v51  ;;  %v555_v44 = vand.u32 2147483647, %v1212_v51  ;;  %vm553_vm3 = vmor %vm551_vm1, %vm552_vm2 }
  0xd1   :  { %v379_v37 = vsel %vm376_vm15, %v378_v2, %v374_v49  ;;  %v550_v6 = vadd.f32 %v798_v47, %v549_v1 }
  0xd2   :  { %v558_v26 = vor.u32 1.1754944e-38, %v557_v4  ;;  %vm556_vm4 = vcmp.eq.f32.partialorder %v555_v44, 8.507059e+37 }
  0xd3   :  { %v554_v8 = vsel %vm553_vm3, %v798_v47, %v550_v6 }
  0xd4   :  { %v559_v0 = vsel %vm556_vm4, %v558_v26, %v554_v8 }
  0xd6   :  { %589 = vrot.lane.b32.xlu1 %v424_v58, %s800_s13 }
  0xd7   :  { %605 = vrot.lane.b32.xlu0 %v544_v43, %s800_s13 }
  0xde   :  { %583 = vrot.lane.b32.xlu1 %v379_v37, %s800_s13 }
  0xe1   :  { %v202_v7 = vpop.permute.xlu2 %201 }
  0xe2   :  { %245 = vst.msk [vmem:[%s1458_s3 + $0x20] sm:$0xff] %vm87_vm0, %v202_v7 }
  0xe6   :  { %607 = vrot.lane.b32.xlu1 %v559_v0, %s800_s13 }
  0xe9   :  { %v210_v10 = vpop.permute.xlu2 %209 }
  0xea   :  { %249 = vst.msk [vmem:[%s1458_s3 + $0x40] sm:$0xff] %vm87_vm0, %v210_v10 }
  0xf1   :  { %v204_v51 = vpop.permute.xlu2 %203 }
  0xf2   :  { %246 = vst.msk [vmem:[%s1458_s3 + $0x28] sm:$0xff] %vm87_vm0, %v204_v51 }
  0xf9   :  { %v222_v12 = vpop.permute.xlu2 %221  ;;  %v194_v21 = vpop.permute.xlu0 %193 }
  0xfa   :  { %255 = vst.msk [vmem:[%s1458_s3 + $0x70] sm:$0xff] %vm87_vm0, %v222_v12 }
  0xfb   :  { %241 = vst.msk [vmem:[%s1458_s3] sm:$0xff] %vm87_vm0, %v194_v21 }
 0x101   :  { %v586_v62 = vpop.permute.xlu2 %585  ;;  %v218_v13 = vpop.permute.xlu0 %217 }
 0x102   :  { %629 = vst.msk [vmem:[%s1459_s4 + $0x20] sm:$0xff] %vm87_vm0, %v586_v62 }
 0x103   :  { %253 = vst.msk [vmem:[%s1458_s3 + $0x60] sm:$0xff] %vm87_vm0, %v218_v13 }
 0x108   :  { %v220_v14 = vpop.permute.xlu1 %219 }
 0x109   :  { %254 = vst.msk [vmem:[%s1458_s3 + $0x68] sm:$0xff] %vm87_vm0, %v220_v14  ;;  %v216_v41 = vpop.permute.xlu2 %215  ;;  %v196_v11 = vpop.permute.xlu0 %195 }
 0x10a   :  { %252 = vst.msk [vmem:[%s1458_s3 + $0x58] sm:$0xff] %vm87_vm0, %v216_v41 }
 0x10b   :  { %242 = vst.msk [vmem:[%s1458_s3 + $0x8] sm:$0xff] %vm87_vm0, %v196_v11 }
 0x110   :  { %v198_v15 = vpop.permute.xlu1 %197 }
 0x111   :  { %243 = vst.msk [vmem:[%s1458_s3 + $0x10] sm:$0xff] %vm87_vm0, %v198_v15  ;;  %v212_v16 = vpop.permute.xlu0 %211  ;;  %v580_v19 = vpop.permute.xlu2 %579 }
 0x112   :  { %250 = vst.msk [vmem:[%s1458_s3 + $0x48] sm:$0xff] %vm87_vm0, %v212_v16 }
 0x113   :  { %626 = vst.msk [vmem:[%s1459_s4 + $0x8] sm:$0xff] %vm87_vm0, %v580_v19 }
 0x118   :  { %v214_v20 = vpop.permute.xlu1 %213 }
 0x119   :  { %251 = vst.msk [vmem:[%s1458_s3 + $0x50] sm:$0xff] %vm87_vm0, %v214_v20  ;;  %v206_v23 = vpop.permute.xlu0 %205  ;;  %v598_v25 = vpop.permute.xlu2 %597 }
 0x11a   :  { %247 = vst.msk [vmem:[%s1458_s3 + $0x30] sm:$0xff] %vm87_vm0, %v206_v23 }
 0x11b   :  { %635 = vst.msk [vmem:[%s1459_s4 + $0x50] sm:$0xff] %vm87_vm0, %v598_v25 }
 0x120   :  { %v200_v52 = vpop.permute.xlu1 %199 }
 0x121   :  { %244 = vst.msk [vmem:[%s1458_s3 + $0x18] sm:$0xff] %vm87_vm0, %v200_v52  ;;  %v224_v27 = vpop.permute.xlu0 %223  ;;  %v592_v28 = vpop.permute.xlu2 %591 }
 0x122   :  { %256 = vst.msk [vmem:[%s1458_s3 + $0x78] sm:$0xff] %vm87_vm0, %v224_v27 }
 0x123   :  { %632 = vst.msk [vmem:[%s1459_s4 + $0x38] sm:$0xff] %vm87_vm0, %v592_v28 }
 0x128   :  { %v208_v30 = vpop.permute.xlu1 %207 }
 0x129   :  { %248 = vst.msk [vmem:[%s1458_s3 + $0x38] sm:$0xff] %vm87_vm0, %v208_v30  ;;  %v594_v17 = vpop.permute.xlu0 %593  ;;  %v604_v3 = vpop.permute.xlu2 %603 }
 0x12a   :  { %633 = vst.msk [vmem:[%s1459_s4 + $0x40] sm:$0xff] %vm87_vm0, %v594_v17 }
 0x12b   :  { %638 = vst.msk [vmem:[%s1459_s4 + $0x68] sm:$0xff] %vm87_vm0, %v604_v3 }
 0x130   :  { %v578_v32 = vpop.permute.xlu1 %577 }
 0x131   :  { %625 = vst.msk [vmem:[%s1459_s4] sm:$0xff] %vm87_vm0, %v578_v32  ;;  %v588_v33 = vpop.permute.xlu0 %587 }
 0x132   :  { %630 = vst.msk [vmem:[%s1459_s4 + $0x28] sm:$0xff] %vm87_vm0, %v588_v33 }
 0x138   :  { %v602_v60 = vpop.permute.xlu1 %601 }
 0x139   :  { %637 = vst.msk [vmem:[%s1459_s4 + $0x60] sm:$0xff] %vm87_vm0, %v602_v60  ;;  %v582_v29 = vpop.permute.xlu0 %581 }
 0x13a   :  { %627 = vst.msk [vmem:[%s1459_s4 + $0x10] sm:$0xff] %vm87_vm0, %v582_v29 }
 0x140   :  { %v596_v34 = vpop.permute.xlu1 %595 }
 0x141   :  { %634 = vst.msk [vmem:[%s1459_s4 + $0x48] sm:$0xff] %vm87_vm0, %v596_v34  ;;  %v600_v36 = vpop.permute.xlu0 %599 }
 0x142   :  { %636 = vst.msk [vmem:[%s1459_s4 + $0x58] sm:$0xff] %vm87_vm0, %v600_v36 }
 0x148   :  { %v590_v38 = vpop.permute.xlu1 %589 }
 0x149   :  { %631 = vst.msk [vmem:[%s1459_s4 + $0x30] sm:$0xff] %vm87_vm0, %v590_v38  ;;  %v606_v39 = vpop.permute.xlu0 %605 }
 0x14a   :  { %639 = vst.msk [vmem:[%s1459_s4 + $0x70] sm:$0xff] %vm87_vm0, %v606_v39 }
 0x150   :  { %v584_v63 = vpop.permute.xlu1 %583 }
 0x151   :  { %628 = vst.msk [vmem:[%s1459_s4 + $0x18] sm:$0xff] %vm87_vm0, %v584_v63 }
 0x158   :  { %v608_v42 = vpop.permute.xlu1 %607 }
 0x159   :  { %640 = vst.msk [vmem:[%s1459_s4 + $0x78] sm:$0xff] %vm87_vm0, %v608_v42 }

// kernel: fwd.8
= control target key start
LH: loop header
LB: loop body
LE: loop exit
PB: predicated region body
PF: predicated region fallthrough
CT: control target
= control target key end

     0   :  { %s1253_s15 = smov 0   ;;  %s1255_s16 = smov 0   ;;  %s1623_s0 = inlined_call_operand.vmem [shape: f32[1,32], index: 0, kind: input, shape index: {}]   ;;  %s1624_s1 = inlined_call_operand.vmem [shape: f32[1,32], index: 1, kind: input, shape index: {}]   ;;  %s1625_s2 = inlined_call_operand.vmem [shape: f32[2,8,8,1,32], index: 2, kind: input, shape index: {}]   ;;  %s1626_s3 = inlined_call_operand.vmem [shape: f32[2,8,8,1,32], index: 3, kind: input, shape index: {}]   ;;  %s1627_s4 = inlined_call_operand.vmem [shape: f32[2,8,8,1,32], index: 4, kind: output, shape index: {}]  }
   0x1   :  { %s1257_s17 = smov 0   ;;  %s1259_s18 = smov 0  }
   0x2   :  { %s1261_s19 = smov 0   ;;  %s1263_s20 = smov 0  }
   0x3   :  { %s1265_s21 = smov 0  }
   0x4 LB: > { %s26_s22 = sadd.s32 1, %s1216_s19  ;;  %s33_s23 = sadd.s32 1, %s1220_s20  ;;  %s1224_s21 = sphi %s1265_s21, %s14_s21   ;;  %s1220_s20 = sphi %s1263_s20, %s1655_s20   ;;  %s1216_s19 = sphi %s1261_s19, %s1654_s19   ;;  %s1212_s18 = sphi %s1259_s18, %s1653_s18   ;;  %s1208_s17 = sphi %s1257_s17, %s1652_s17   ;;  %s1204_s16 = sphi %s1255_s16, %s1651_s16   ;;  %s1200_s15 = sphi %s1253_s15, %s1650_s15  }
   0x5   : > { %p27_p0 = scmp.ge.s32.totalorder %s26_s22, 8  ;;  %s1006_s24 = sadd.s32 4294967295, %s1224_s21  }
   0x6   : > { %p103_p1 = scmp.ne.s32.totalorder %s1204_s16, %s1200_s15  ;;  %p104_p2 = scmp.eq.s32.totalorder %s1224_s21, 0 }
   0x7   : > { %s1657_s22 = smov (%p27_p0, %s26_s22), 0  ;;  %s1659_s23 = smov (!%p27_p0, %s33_s23), %s1220_s20 }
   0x8   : > { %p35_p3 = scmp.ge.s32.totalorder %s1659_s23, 2  ;;  %p167_p4 = scmp.eq.s32.totalorder %s1006_s24, 15 }
   0x9   : > { %s90_s25 = ssub.s32 %s1216_s19, %s1657_s22  ;;  %p1299_p5 = por %p104_p2, %p103_p1 }
   0xa   : > { %s1661_s23 = smov (%p35_p3, %s1659_s23), 0  ;;  %p1305_p6 = por %p167_p4, %p103_p1 }
   0xb   : > { %s89_s28 = ssub.s32 %s1220_s20, %s1661_s23  ;;  %s96_s30 = sadd.s32 1, %s1204_s16 }
   0xc   : > { %s91_s29 = sor.u32 %s90_s25, %s89_s28  ;;  %p1011_p8 = scmp.ge.s32.totalorder %s1224_s21, 16 }
   0xd   : > { %p94_p7 = scmp.eq.s32.totalorder %s91_s29, 0 }
   0xe   : > { %201 = sbr.rel (%p1011_p8) target bundleno = 45 (0x2d), region = 24 }
   0xf   : > { %s1313_s5 = scalar_select %p94_p7, %s1204_s16, %s96_s30  }
  0x13   : > { %204 = sbr.rel (!%p1299_p5) target bundleno = 32 (0x20), region = 28  ;;  %s206_s6 = sand.u32 (%p1299_p5), 1, %s1204_s16  }
  0x14   : > { %s1013_s7 = sshll.u32 (%p1299_p5), %s1220_s20, 6  ;;  %s1012_s8 = sshll.u32 (%p1299_p5), %s206_s6, 3 }
  0x15   : > { %s211_s9 = sadd.s32 (%p1299_p5), %s1216_s19, %s1013_s7  ;;  %s208_s13 = scalar_lea.vmem (%p1299_p5), [#allocation5], %s1012_s8 }
  0x16   : > { %s212_s12 = scalar_lea.vmem (%p1299_p5), %s1625_s2, %s211_s9 }
  0x17   : > { %v229_v0 = vld [vmem:[%s212_s12] sm:$0x1] (%p1299_p5)  ;;  %v231_v1 = vld [vmem:[%s212_s12 + $0x8] sm:$0x1] (%p1299_p5)  ;;  %v233_v2 = vld [vmem:[%s212_s12 + $0x10] sm:$0x1] (%p1299_p5) }
  0x18   : > { %230 = vst [vmem:[%s208_s13] sm:$0x1] %v229_v0  ;;  %v235_v3 = vld [vmem:[%s212_s12 + $0x18] sm:$0x1]  ;;  %v237_v4 = vld [vmem:[%s212_s12 + $0x20] sm:$0x1] }
  0x19   : > { %232 = vst [vmem:[%s208_s13 + $0x1] sm:$0x1] %v231_v1  ;;  %v239_v5 = vld [vmem:[%s212_s12 + $0x28] sm:$0x1]  ;;  %v241_v6 = vld [vmem:[%s212_s12 + $0x30] sm:$0x1] }
  0x1a   : > { %234 = vst [vmem:[%s208_s13 + $0x2] sm:$0x1] %v233_v2  ;;  %v243_v7 = vld [vmem:[%s212_s12 + $0x38] sm:$0x1] }
  0x1b   : > { %236 = vst [vmem:[%s208_s13 + $0x3] sm:$0x1] %v235_v3 }
  0x1c   : > { %238 = vst [vmem:[%s208_s13 + $0x4] sm:$0x1] %v237_v4 }
  0x1d   : > { %240 = vst [vmem:[%s208_s13 + $0x5] sm:$0x1] %v239_v5 }
  0x1e   : > { %242 = vst [vmem:[%s208_s13 + $0x6] sm:$0x1] %v241_v6 }
  0x1f   : > { %244 = vst [vmem:[%s208_s13 + $0x7] sm:$0x1] %v243_v7 }
  0x20 PF: > { %284 = sbr.rel (!%p1299_p5) target bundleno = 45 (0x2d), region = 69  ;;  %s286_s14 = sand.u32 (%p1299_p5), 1, %s1204_s16  }
  0x21   : > { %s1015_s24 = sshll.u32 (%p1299_p5), %s1220_s20, 6  ;;  %s1014_s25 = sshll.u32 (%p1299_p5), %s286_s14, 3 }
  0x22   : > { %s291_s28 = sadd.s32 (%p1299_p5), %s1216_s19, %s1015_s24  ;;  %s288_s7 = scalar_lea.vmem (%p1299_p5), [#allocation6], %s1014_s25 }
  0x23   : > { %s292_s6 = scalar_lea.vmem (%p1299_p5), %s1626_s3, %s291_s28 }
  0x24   : > { %v309_v8 = vld [vmem:[%s292_s6] sm:$0x1] (%p1299_p5)  ;;  %v311_v9 = vld [vmem:[%s292_s6 + $0x8] sm:$0x1] (%p1299_p5)  ;;  %v313_v10 = vld [vmem:[%s292_s6 + $0x10] sm:$0x1] (%p1299_p5) }
  0x25   : > { %310 = vst [vmem:[%s288_s7] sm:$0x1] %v309_v8  ;;  %v315_v11 = vld [vmem:[%s292_s6 + $0x18] sm:$0x1]  ;;  %v317_v12 = vld [vmem:[%s292_s6 + $0x20] sm:$0x1] }
  0x26   : > { %312 = vst [vmem:[%s288_s7 + $0x1] sm:$0x1] %v311_v9  ;;  %v319_v13 = vld [vmem:[%s292_s6 + $0x28] sm:$0x1]  ;;  %v321_v14 = vld [vmem:[%s292_s6 + $0x30] sm:$0x1] }
  0x27   : > { %314 = vst [vmem:[%s288_s7 + $0x2] sm:$0x1] %v313_v10  ;;  %v323_v15 = vld [vmem:[%s292_s6 + $0x38] sm:$0x1] }
  0x28   : > { %316 = vst [vmem:[%s288_s7 + $0x3] sm:$0x1] %v315_v11 }
  0x29   : > { %318 = vst [vmem:[%s288_s7 + $0x4] sm:$0x1] %v317_v12 }
  0x2a   : > { %320 = vst [vmem:[%s288_s7 + $0x5] sm:$0x1] %v319_v13 }
  0x2b   : > { %322 = vst [vmem:[%s288_s7 + $0x6] sm:$0x1] %v321_v14 }
  0x2c   : > { %324 = vst [vmem:[%s288_s7 + $0x7] sm:$0x1] %v323_v15 }
  0x2d PF: > { %p1016_p9 = scmp.ge.s32.totalorder %s1224_s21, 1  ;;  %p363_p10 = scmp.lt.s32.totalorder %s1224_s21, 17 }
  0x2f   : > { %p364_p11 = pnand %p1016_p9, %p363_p10 }
  0x30   : > { %s370_s26 = sand.u32 (!%p364_p11), 1, %s1200_s15   ;;  %p1020_p12 = scmp.ne.s32.totalorder (!%p364_p11), %s1208_s17, 0 }
  0x31   : > { %367 = sbr.rel (%p364_p11) target bundleno = 176 (0xb0), region = 110  ;;  %s1017_s8 = sshll.u32 (!%p364_p11), %s370_s26, 3 }
  0x32   : > { %s1335_s9 = scalar_lea.vmem (!%p364_p11), [#allocation5], %s1017_s8  ;;  %s1337_s10 = scalar_lea.vmem (!%p364_p11), [#allocation6], %s1017_s8 }
  0x33   : > { %s1339_s11 = scalar_lea.vmem (!%p364_p11), [#allocation7], %s1017_s8 }
  0x36   : > { %420 = sbr.rel (%p1020_p12) target bundleno = 63 (0x3f), region = 122 }
  0x3b   : > { %vm421_vm0 = vcmask 253952   ;;  %v1226_v16 = vmov 0.0   ;;  %v1227_v17 = vmov -1e+38  }
  0x3c   : > { %422 = vst.msk [vmem:[#allocation2] sm:$0x1] %vm421_vm0, %v1226_v16 }
  0x3d   : > { %423 = vst.msk [vmem:[#allocation3] sm:$0x1] %vm421_vm0, %v1226_v16 }
  0x3e   : > { %424 = vst.msk [vmem:[#allocation4] sm:$0x1] %vm421_vm0, %v1227_v17 }
  0x3f PF: > { %v1345_v18 = vld [vmem:[%s1623_s0] sm:$0x1]  ;;  %v430_v21 = vld [vmem:[%s1335_s9] sm:$0x1]  ;;  %v431_v24 = vld [vmem:[%s1335_s9 + $0x1] sm:$0x1] }
  0x40   : > { %v1350_v19 = vld [vmem:[%s1624_s1] sm:$0x1]  ;;  %v432_v34 = vld [vmem:[%s1335_s9 + $0x2] sm:$0x1]  ;;  %v438_v56 = vld [vmem:[%s1337_s10] sm:$0x1] }
  0x41   : > { %v446_v22 = vadd.f32 %v430_v21, %v1350_v19  ;;  %v489_v25 = vadd.f32 %v431_v24, %v1350_v19  ;;  %v533_v38 = vadd.f32 %v432_v34, %v1350_v19  ;;  %v1369_v6 = vld [vmem:[%s1335_s9 + $0x3] sm:$0x1]  ;;  %v439_v11 = vld [vmem:[%s1337_s10 + $0x1] sm:$0x1]  ;;  %v1378_v15 = vld [vmem:[%s1335_s9 + $0x4] sm:$0x1] }
  0x42   : > { %v1374_v9 = vadd.f32 %v1369_v6, %v1350_v19  ;;  %vm475_vm3 = vcmask 253952   ;;  %s1029_s24 = sshll.u32 (%p1305_p6), %s1212_s18, 6 }
  0x43   : > { %v427_v59 = vld [vmem:[#allocation2] sm:$0x1]  ;;  %s809_s25 = sadd.s32 (%p1305_p6), %s1208_s17, %s1029_s24 }
  0x44   : > { %v428_v55 = vld [vmem:[#allocation3] sm:$0x1]  ;;  %s810_s30 = scalar_lea.vmem (%p1305_p6), %s1627_s4, %s809_s25 }
  0x45   : > { %v429_v20 = vld [vmem:[#allocation4] sm:$0x1] }
  0x46   : > { %v447_v23 = vadd.f32 %v429_v20, %v1345_v18  ;;  %v448_v26 = vmax.f32 %v429_v20, %v446_v22 }
  0x48   : > { %v477_v27 = vmax.f32 %v447_v23, %v430_v21  ;;  %v449_v28 = vsub.f32 %v429_v20, %v448_v26  ;;  %v452_v29 = vsub.f32 %v446_v22, %v448_v26  ;;  %v1383_v22 = vadd.f32 %v1378_v15, %v1350_v19 }
  0x4a   : > { %v481_v30 = vsub.f32 %v430_v21, %v477_v27  ;;  %v478_v31 = vsub.f32 %v447_v23, %v477_v27  ;;  %v490_v32 = vadd.f32 %v477_v27, %v1345_v18  ;;  %v491_v33 = vmax.f32 %v477_v27, %v489_v25 }
  0x4b   : > { %v450_v35 = vmul.f32 1.442695, %v449_v28  ;;  %v453_v36 = vmul.f32 1.442695, %v452_v29 }
  0x4c   : > { %v482_v37 = vmul.f32 1.442695, %v481_v30  ;;  %v479_v39 = vmul.f32 1.442695, %v478_v31  ;;  %v492_v40 = vsub.f32 %v477_v27, %v491_v33  ;;  %v495_v41 = vsub.f32 %v489_v25, %v491_v33 }
  0x4d   : > { %v521_v42 = vmax.f32 %v490_v32, %v431_v24  ;;  %1090 = vpow2.f32 %v450_v35 }
  0x4e   : > { %1092 = vpow2.f32 %v453_v36  ;;  %v493_v43 = vmul.f32 1.442695, %v492_v40  ;;  %v496_v44 = vmul.f32 1.442695, %v495_v41 }
  0x4f   : > { %v525_v45 = vsub.f32 %v431_v24, %v521_v42  ;;  %1094 = vpow2.f32 %v482_v37  ;;  %v522_v46 = vsub.f32 %v490_v32, %v521_v42  ;;  %v534_v47 = vadd.f32 %v521_v42, %v1345_v18 }
  0x50   : > { %v535_v48 = vmax.f32 %v521_v42, %v533_v38  ;;  %1096 = vpow2.f32 %v479_v39 }
  0x51   : > { %v526_v49 = vmul.f32 1.442695, %v525_v45  ;;  %v523_v50 = vmul.f32 1.442695, %v522_v46  ;;  %1098 = vpow2.f32 %v493_v43  ;;  %v1361_v53 = vmax.f32 %v534_v47, %v432_v34  ;;  %v1403_v43 = vld [vmem:[%s1335_s9 + $0x5] sm:$0x1] }
  0x52   : > { %v536_v51 = vsub.f32 %v521_v42, %v535_v48  ;;  %v539_v52 = vsub.f32 %v533_v38, %v535_v48  ;;  %1100 = vpow2.f32 %v496_v44 }
  0x53   : > { %v1091_v54 = vpop.eup %1090  ;;  %1102 = vpow2.f32 %v523_v50  ;;  %v569_v63 = vsub.f32 %v432_v34, %v1361_v53  ;;  %v566_v0 = vsub.f32 %v534_v47, %v1361_v53  ;;  %v1388_v27 = vadd.f32 %v1361_v53, %v1345_v18  ;;  %v440_v50 = vld [vmem:[%s1337_s10 + $0x2] sm:$0x1] }
  0x54   : > { %v537_v57 = vmul.f32 1.442695, %v536_v51  ;;  %v1093_v58 = vpop.eup %1092  ;;  %v458_v60 = vmul.f32 %v1091_v54, %v428_v55  ;;  %1104 = vpow2.f32 %v526_v49  ;;  %v540_v62 = vmul.f32 1.442695, %v539_v52 }
  0x55   : > { %v1095_v61 = vpop.eup %1094  ;;  %v567_v8 = vmul.f32 1.442695, %v566_v0  ;;  %v570_v14 = vmul.f32 1.442695, %v569_v63  ;;  %v455_v17 = vmul.f32 %v1091_v54, %v427_v59  ;;  %v456_v20 = vmul.f32 %v1093_v58, %v438_v56 }
  0x56   : > { %v1097_v1 = vpop.eup %1096  ;;  %v1366_v2 = vadd.f32 %v1093_v58, %v458_v60  ;;  %v485_v3 = vmul.f32 %v1095_v61, %v438_v56  ;;  %1106 = vpow2.f32 %v537_v57  ;;  %v579_v30 = vmax.f32 %v1361_v53, %v1374_v9 }
  0x57   : > { %v484_v4 = vmul.f32 %v1097_v1, %v427_v59  ;;  %v487_v5 = vmul.f32 %v1097_v1, %v428_v55  ;;  %v1099_v7 = vpop.eup %1098  ;;  %v457_v36 = vadd.f32 %v456_v20, %v455_v17  ;;  %v609_v46 = vmax.f32 %v1388_v27, %v1369_v6 }
  0x58   : > { %1108 = vrcp.f32 %v1366_v2  ;;  %v1101_v10 = vpop.eup %1100  ;;  %v469_v21 = vand.u32 2147483647, %v1366_v2  ;;  %v471_v24 = vand.u32 2147483648, %v1366_v2  ;;  %vm465_vm1 = vweird.f32 %v1366_v2 }
  0x59   : > { %v486_v12 = vadd.f32 %v485_v3, %v484_v4  ;;  %v488_v13 = vadd.f32 %v1095_v61, %v487_v5  ;;  %1110 = vpow2.f32 %v540_v62  ;;  %v1103_v16 = vpop.eup %1102  ;;  %v499_v33 = vmul.f32 %v1101_v10, %v439_v11 }
  0x5a   : > { %v1105_v23 = vpop.eup %1104  ;;  %1112 = vpow2.f32 %v567_v8  ;;  %vm1395_vm2 = vcmp.eq.f32.partialorder %v469_v21, 8.507059e+37  ;;  %v472_v41 = vor.u32 1.1754944e-38, %v471_v24  ;;  %v580_v42 = vsub.f32 %v1361_v53, %v579_v30 }
  0x5b   : > { %v501_v25 = vmul.f32 %v1099_v7, %v488_v13  ;;  %v531_v26 = vmul.f32 %v1103_v16, %v488_v13  ;;  %v529_v28 = vmul.f32 %v1105_v23, %v439_v11  ;;  %v528_v29 = vmul.f32 %v1103_v16, %v486_v12 }
  0x5c   : > { %v1107_v31 = vpop.eup %1106  ;;  %v498_v32 = vmul.f32 %v1099_v7, %v486_v12  ;;  %1114 = vpow2.f32 %v570_v14  ;;  %v1409_v47 = vadd.f32 %v1403_v43, %v1350_v19  ;;  %v583_v51 = vsub.f32 %v1374_v9, %v579_v30 }
  0x5d   : > { %v1392_v34 = vadd.f32 %v1101_v10, %v501_v25  ;;  %v532_v38 = vadd.f32 %v1105_v23, %v531_v26  ;;  %v530_v44 = vadd.f32 %v529_v28, %v528_v29  ;;  %v613_v56 = vsub.f32 %v1369_v6, %v609_v46  ;;  %v442_v28 = vld [vmem:[%s1337_s10 + $0x4] sm:$0x1] }
  0x5e   : > { %v1109_v35 = vpop.eup %1108  ;;  %v1411_v49 = vadd.f32 %v499_v33, %v498_v32  ;;  %v581_v60 = vmul.f32 1.442695, %v580_v42  ;;  %v584_v5 = vmul.f32 1.442695, %v583_v51  ;;  %v610_v10 = vsub.f32 %v1388_v27, %v609_v46 }
  0x5f   : > { %v1111_v39 = vpop.eup %1110  ;;  %v461_v40 = vmul.f32 %v1109_v35, %v1366_v2  ;;  %1116 = vrcp.f32 %v1392_v34  ;;  %v545_v45 = vmul.f32 %v1107_v31, %v532_v38  ;;  %vm466_vm4 = vweird.f32 %v1109_v35 }
  0x60   : > { %v1113_v52 = vpop.eup %1112  ;;  %v512_v53 = vand.u32 2147483647, %v1392_v34  ;;  %v514_v54 = vand.u32 2147483648, %v1392_v34  ;;  %vm508_vm5 = vweird.f32 %v1392_v34  ;;  %v1421_v59 = vmul.f32 %v1111_v39, %v440_v50  ;;  %vm1425_vm6 = vmor %vm465_vm1, %vm466_vm4 }
  0x61   : > { %v462_v48 = vsub.f32 1.0, %v461_v40  ;;  %v1417_v55 = vadd.f32 %v1111_v39, %v545_v45  ;;  %v542_v62 = vmul.f32 %v1107_v31, %v530_v44  ;;  %v572_v0 = vmul.f32 %v1113_v52, %v530_v44 }
  0x62   : > { %v1115_v57 = vpop.eup %1114  ;;  %v575_v4 = vmul.f32 %v1113_v52, %v532_v38  ;;  %vm1431_vm7 = vcmp.eq.f32.partialorder %v512_v53, 8.507059e+37  ;;  %v515_v2 = vor.u32 1.1754944e-38, %v514_v54  ;;  %v614_v8 = vmul.f32 1.442695, %v613_v56  ;;  %v1477_v54 = vld [vmem:[%s1335_s9 + $0x6] sm:$0x1] }
  0x63   : > { %v463_v58 = vmul.f32 %v1109_v35, %v462_v48  ;;  %1118 = vrcp.f32 %v1417_v55  ;;  %v573_v63 = vmul.f32 %v1115_v57, %v440_v50  ;;  %v622_v11 = vadd.f32 %v609_v46, %v1345_v18 }
  0x64   : > { %1120 = vpow2.f32 %v581_v60  ;;  %v623_v14 = vmax.f32 %v609_v46, %v1383_v22  ;;  %v576_v17 = vadd.f32 %v1115_v57, %v575_v4  ;;  %v611_v20 = vmul.f32 1.442695, %v610_v10 }
  0x65   : > { %v1117_v1 = vpop.eup %1116  ;;  %v464_v3 = vadd.f32 %v1109_v35, %v463_v58  ;;  %1122 = vpow2.f32 %v584_v5  ;;  %v1443_v21 = vmax.f32 %v622_v11, %v1378_v15  ;;  %vm552_vm10 = vweird.f32 %v1417_v55 }
  0x66   : > { %v504_v6 = vmul.f32 %v1117_v1, %v1392_v34  ;;  %vm509_vm8 = vweird.f32 %v1117_v1  ;;  %1124 = vpow2.f32 %v614_v8  ;;  %v624_v25 = vsub.f32 %v609_v46, %v623_v14 }
  0x67   : > { %v468_v9 = vsel %vm1425_vm6, %v1109_v35, %v464_v3  ;;  %v627_v26 = vsub.f32 %v1383_v22, %v623_v14  ;;  %vm1450_vm9 = vmor %vm508_vm5, %vm509_vm8  ;;  %1126 = vpow2.f32 %v611_v20  ;;  %v657_v30 = vsub.f32 %v1378_v15, %v1443_v21  ;;  %v1493_v3 = vld [vmem:[%s1335_s9 + $0x7] sm:$0x1] }
  0x68   : > { %v473_v12 = vsel %vm1395_vm2, %v472_v41, %v468_v9  ;;  %v505_v13 = vsub.f32 1.0, %v504_v6  ;;  %v558_v22 = vand.u32 2147483648, %v1417_v55  ;;  %v625_v33 = vmul.f32 1.442695, %v624_v25 }
  0x69   : > { %v474_v16 = vmul.f32 %v473_v12, %v457_v36  ;;  %v1119_v23 = vpop.eup %1118  ;;  %v556_v34 = vand.u32 2147483647, %v1417_v55  ;;  %v628_v37 = vmul.f32 1.442695, %v627_v26  ;;  %v654_v15 = vsub.f32 %v622_v11, %v1443_v21 }
  0x6a   : > { %v506_v24 = vmul.f32 %v1117_v1, %v505_v13  ;;  %v1121_v27 = vpop.eup %1120  ;;  %v548_v29 = vmul.f32 %v1119_v23, %v1417_v55  ;;  %vm553_vm11 = vweird.f32 %v1119_v23  ;;  %1128 = vpow2.f32 %v625_v33 }
  0x6b   : > { %476 = vst.msk [vmem:[%s1339_s11] sm:$0x1] %vm475_vm3, %v474_v16  ;;  %v589_v32 = vmul.f32 %v1121_v27, %v576_v17  ;;  %v1123_v35 = vpop.eup %1122  ;;  %1130 = vpow2.f32 %v628_v37  ;;  %v658_v42 = vmul.f32 1.442695, %v657_v30  ;;  %vm1470_vm12 = vmor %vm552_vm10, %vm553_vm11  ;;  %v559_v48 = vor.u32 1.1754944e-38, %v558_v22 }
  0x6c   : > { %v507_v31 = vadd.f32 %v1117_v1, %v506_v24  ;;  %v549_v36 = vsub.f32 1.0, %v548_v29  ;;  %v1125_v44 = vpop.eup %1124  ;;  %v544_v51 = vadd.f32 %v1421_v59, %v542_v62  ;;  %vm557_vm13 = vcmp.eq.f32.partialorder %v556_v34, 8.507059e+37  ;;  %v441_v59 = vld [vmem:[%s1337_s10 + $0x3] sm:$0x1] }
  0x6d   : > { %v1462_v39 = vadd.f32 %v1123_v35, %v589_v32  ;;  %v1127_v50 = vpop.eup %1126  ;;  %v574_v53 = vadd.f32 %v573_v63, %v572_v0  ;;  %v655_v55 = vmul.f32 1.442695, %v654_v15  ;;  %v666_v56 = vadd.f32 %v1443_v21, %v1345_v18 }
  0x6e   : > { %v511_v38 = vsel %vm1450_vm9, %v1117_v1, %v507_v31  ;;  %v550_v41 = vmul.f32 %v1119_v23, %v549_v36  ;;  %v1485_v57 = vadd.f32 %v1477_v54, %v1350_v19  ;;  %v667_v61 = vmax.f32 %v1443_v21, %v1409_v47 }
  0x6f   : > { %v516_v40 = vsel %vm1431_vm7, %v515_v2, %v511_v38  ;;  %1132 = vrcp.f32 %v1462_v39  ;;  %v586_v60 = vmul.f32 %v1121_v27, %v574_v53  ;;  %v587_v0 = vmul.f32 %v1123_v35, %v441_v59 }
  0x70   : > { %v517_v45 = vmul.f32 %v516_v40, %v1411_v49  ;;  %v551_v52 = vadd.f32 %v1119_v23, %v550_v41  ;;  %v619_v49 = vmul.f32 %v1127_v50, %v576_v17  ;;  %1134 = vpow2.f32 %v658_v42  ;;  %v1129_v62 = vpop.eup %1128 }
  0x71   : > { %1136 = vpow2.f32 %v655_v55  ;;  %v1131_v4 = vpop.eup %1130  ;;  %v668_v6 = vsub.f32 %v1443_v21, %v667_v61  ;;  %v671_v7 = vsub.f32 %v1409_v47, %v667_v61  ;;  %v697_v2 = vmax.f32 %v666_v56, %v1403_v43 }
  0x72   : > { %1021 = vst.msk [vmem:[%s1339_s11 + $0x1] sm:$0x1] %vm475_vm3, %v517_v45  ;;  %v555_v58 = vsel %vm1470_vm12, %v1119_v23, %v551_v52  ;;  %v620_v1 = vadd.f32 %v1125_v44, %v619_v49  ;;  %v600_v9 = vand.u32 2147483647, %v1462_v39  ;;  %v617_v10 = vmul.f32 %v1125_v44, %v441_v59 }
  0x73   : > { %v560_v63 = vsel %vm557_vm13, %v559_v48, %v555_v58  ;;  %v616_v11 = vmul.f32 %v1127_v50, %v574_v53  ;;  %v669_v14 = vmul.f32 1.442695, %v668_v6  ;;  %v672_v16 = vmul.f32 1.442695, %v671_v7 }
  0x74   : > { %v561_v5 = vmul.f32 %v560_v63, %v544_v51  ;;  %v633_v12 = vmul.f32 %v1129_v62, %v620_v1  ;;  %v1504_v17 = vadd.f32 %v1493_v3, %v1350_v19  ;;  %vm596_vm14 = vweird.f32 %v1462_v39 }
  0x75   : > { %v1133_v8 = vpop.eup %1132  ;;  %v602_v47 = vand.u32 2147483648, %v1462_v39  ;;  %v701_v21 = vsub.f32 %v1403_v43, %v697_v2  ;;  %1138 = vpow2.f32 %v669_v14  ;;  %v698_v25 = vsub.f32 %v666_v56, %v697_v2  ;;  %v443_v14 = vld [vmem:[%s1337_s10 + $0x5] sm:$0x1] }
  0x76   : > { %1022 = vst.msk [vmem:[%s1339_s11 + $0x2] sm:$0x1] %vm475_vm3, %v561_v5  ;;  %v592_v13 = vmul.f32 %v1133_v8, %v1462_v39  ;;  %v1508_v20 = vadd.f32 %v1131_v4, %v633_v12  ;;  %v1135_v23 = vpop.eup %1134  ;;  %vm597_vm15 = vweird.f32 %v1133_v8  ;;  %v588_v27 = vadd.f32 %v587_v0, %v586_v60 }
  0x77   : > { %v1137_v26 = vpop.eup %1136  ;;  %v618_v29 = vadd.f32 %v617_v10, %v616_v11  ;;  %v710_v19 = vadd.f32 %v697_v2, %v1345_v18  ;;  %vm1514_vm0 = vcmp.eq.f32.partialorder %v600_v9, 8.507059e+37  ;;  %vm1520_vm1 = vmor %vm596_vm14, %vm597_vm15  ;;  %v603_v32 = vor.u32 1.1754944e-38, %v602_v47 }
  0x78   : > { %v593_v24 = vsub.f32 1.0, %v592_v13  ;;  %1140 = vrcp.f32 %v1508_v20  ;;  %v663_v22 = vmul.f32 %v1137_v26, %v620_v1  ;;  %v702_v35 = vmul.f32 1.442695, %v701_v21 }
  0x79   : > { %1142 = vpow2.f32 %v672_v16  ;;  %v630_v33 = vmul.f32 %v1129_v62, %v618_v29  ;;  %v699_v36 = vmul.f32 1.442695, %v698_v25  ;;  %v631_v37 = vmul.f32 %v1131_v4, %v442_v28 }
  0x7a   : > { %v594_v30 = vmul.f32 %v1133_v8, %v593_v24  ;;  %v661_v38 = vmul.f32 %v1135_v23, %v442_v28  ;;  %v711_v15 = vmax.f32 %v697_v2, %v1485_v57  ;;  %vm640_vm2 = vweird.f32 %v1508_v20 }
  0x7b   : > { %v664_v40 = vadd.f32 %v1135_v23, %v663_v22  ;;  %1144 = vpow2.f32 %v702_v35  ;;  %v741_v41 = vmax.f32 %v710_v19, %v1477_v54  ;;  %v1139_v39 = vpop.eup %1138  ;;  %v644_v50 = vand.u32 2147483647, %v1508_v20 }
  0x7c   : > { %v595_v34 = vadd.f32 %v1133_v8, %v594_v30  ;;  %1146 = vpow2.f32 %v699_v36  ;;  %v712_v44 = vsub.f32 %v697_v2, %v711_v15  ;;  %v715_v45 = vsub.f32 %v1485_v57, %v711_v15 }
  0x7d   : > { %v677_v51 = vmul.f32 %v1139_v39, %v664_v40  ;;  %v745_v52 = vsub.f32 %v1477_v54, %v741_v41  ;;  %v660_v56 = vmul.f32 %v1137_v26, %v618_v29  ;;  %v646_v59 = vand.u32 2147483648, %v1508_v20 }
  0x7e   : > { %v599_v42 = vsel %vm1520_vm1, %v1133_v8, %v595_v34  ;;  %v1141_v46 = vpop.eup %1140  ;;  %v713_v58 = vmul.f32 1.442695, %v712_v44  ;;  %v716_v57 = vmul.f32 1.442695, %v715_v45  ;;  %v742_v62 = vsub.f32 %v710_v19, %v741_v41 }
  0x7f   : > { %v604_v48 = vsel %vm1514_vm0, %v603_v32, %v599_v42  ;;  %v1143_v53 = vpop.eup %1142  ;;  %v636_v55 = vmul.f32 %v1141_v46, %v1508_v20  ;;  %vm641_vm4 = vweird.f32 %v1141_v46  ;;  %v755_v63 = vmax.f32 %v741_v41, %v1504_v17  ;;  %v444_v42 = vld [vmem:[%s1337_s10 + $0x6] sm:$0x1] }
  0x80   : > { %v605_v49 = vmul.f32 %v604_v48, %v588_v27  ;;  %v1536_v60 = vadd.f32 %v1143_v53, %v677_v51  ;;  %1148 = vpow2.f32 %v713_v58  ;;  %v746_v0 = vmul.f32 1.442695, %v745_v52  ;;  %vm1545_vm5 = vmor %vm640_vm2, %vm641_vm4 }
  0x81   : > { %v637_v61 = vsub.f32 1.0, %v636_v55  ;;  %v1145_v54 = vpop.eup %1144  ;;  %v662_v5 = vadd.f32 %v661_v38, %v660_v56  ;;  %v632_v6 = vadd.f32 %v631_v37, %v630_v33  ;;  %vm1549_vm6 = vcmp.eq.f32.partialorder %v644_v50, 8.507059e+37 }
  0x82   : > { %1023 = vst.msk [vmem:[%s1339_s11 + $0x3] sm:$0x1] %vm475_vm3, %v605_v49  ;;  %1150 = vrcp.f32 %v1536_v60  ;;  %v1147_v1 = vpop.eup %1146  ;;  %v647_v8 = vor.u32 1.1754944e-38, %v646_v59  ;;  %v743_v12 = vmul.f32 1.442695, %v742_v62  ;;  %v756_v13 = vsub.f32 %v741_v41, %v755_v63 }
  0x83   : > { %v638_v4 = vmul.f32 %v1141_v46, %v637_v61  ;;  %1152 = vpow2.f32 %v716_v57  ;;  %v707_v9 = vmul.f32 %v1147_v1, %v664_v40  ;;  %v674_v11 = vmul.f32 %v1139_v39, %v662_v5 }
  0x84   : > { %1154 = vpow2.f32 %v746_v0  ;;  %v759_v47 = vsub.f32 %v1504_v17, %v755_v63  ;;  %v754_v20 = vadd.f32 %v741_v41, %v1345_v18  ;;  %v675_v24 = vmul.f32 %v1143_v53, %v443_v14 }
  0x85   : > { %v639_v10 = vadd.f32 %v1141_v46, %v638_v4  ;;  %v708_v16 = vadd.f32 %v1145_v54, %v707_v9  ;;  %1156 = vpow2.f32 %v743_v12  ;;  %v757_v25 = vmul.f32 1.442695, %v756_v13 }
  0x86   : > { %v1149_v21 = vpop.eup %1148  ;;  %vm684_vm7 = vweird.f32 %v1536_v60  ;;  %v760_v29 = vmul.f32 1.442695, %v759_v47  ;;  %v690_v30 = vand.u32 2147483648, %v1536_v60  ;;  %v705_v31 = vmul.f32 %v1145_v54, %v443_v14 }
  0x87   : > { %v643_v23 = vsel %vm1545_vm5, %v1141_v46, %v639_v10  ;;  %v721_v28 = vmul.f32 %v1149_v21, %v708_v16  ;;  %1158 = vpow2.f32 %v757_v25  ;;  %v704_v22 = vmul.f32 %v1147_v1, %v662_v5 }
  0x88   : > { %v1151_v26 = vpop.eup %1150  ;;  %v648_v27 = vsel %vm1549_vm6, %v647_v8, %v643_v23  ;;  %v785_v32 = vmax.f32 %v754_v20, %v1493_v3  ;;  %v688_v35 = vand.u32 2147483647, %v1536_v60  ;;  %1160 = vpow2.f32 %v760_v29  ;;  %v445_v8 = vld [vmem:[%s1337_s10 + $0x7] sm:$0x1] }
  0x89   : > { %v1153_v19 = vpop.eup %1152  ;;  %v649_v17 = vmul.f32 %v648_v27, %v632_v6  ;;  %v680_v18 = vmul.f32 %v1151_v26, %v1536_v60  ;;  %vm685_vm8 = vweird.f32 %v1151_v26  ;;  %v676_v40 = vadd.f32 %v675_v24, %v674_v11 }
  0x8a   : > { %v722_v43 = vadd.f32 %v1153_v19, %v721_v28  ;;  %v1155_v36 = vpop.eup %1154  ;;  %799 = vst.msk [vmem:[#allocation4] sm:$0x1] %vm475_vm3, %v785_v32  ;;  %v786_v38 = vsub.f32 %v754_v20, %v785_v32  ;;  %v789_v15 = vsub.f32 %v1493_v3, %v785_v32  ;;  %vm1571_vm9 = vmor %vm684_vm7, %vm685_vm8  ;;  %v691_v39 = vor.u32 1.1754944e-38, %v690_v30  ;;  %v827_v32 = vld [vmem:[%s1339_s11] sm:$0x1] (%p1305_p6) }
  0x8b   : > { %1024 = vst.msk [vmem:[%s1339_s11 + $0x4] sm:$0x1] %vm475_vm3, %v649_v17  ;;  %v681_v33 = vsub.f32 1.0, %v680_v18  ;;  %v1157_v34 = vpop.eup %1156  ;;  %v706_v44 = vadd.f32 %v705_v31, %v704_v22  ;;  %vm689_vm10 = vcmp.eq.f32.partialorder %v688_v35, 8.507059e+37  ;;  %v749_v49 = vmul.f32 %v1155_v36, %v444_v42  ;;  %v831_v35 = vld [vmem:[%s1339_s11 + $0x2] sm:$0x1] (%p1305_p6) }
  0x8c   : > { %1162 = vrcp.f32 %v722_v43  ;;  %v751_v45 = vmul.f32 %v1157_v34, %v708_v16  ;;  %v787_v50 = vmul.f32 1.442695, %v786_v38  ;;  %v790_v51 = vmul.f32 1.442695, %v789_v15  ;;  %828 = vst [vmem:[%s810_s30] sm:$0x1] (%p1305_p6), %v827_v32 }
  0x8d   : > { %v682_v37 = vmul.f32 %v1151_v26, %v681_v33  ;;  %v1159_v46 = vpop.eup %1158  ;;  %v748_v58 = vmul.f32 %v1157_v34, %v706_v44  ;;  %v718_v61 = vmul.f32 %v1149_v21, %v706_v44  ;;  %v719_v62 = vmul.f32 %v1153_v19, %v444_v42  ;;  %v829_v33 = vld [vmem:[%s1339_s11 + $0x1] sm:$0x1] (%p1305_p6)  ;;  %832 = vst [vmem:[%s810_s30 + $0x10] sm:$0x1] (%p1305_p6), %v831_v35 }
  0x8e   : > { %v752_v52 = vadd.f32 %v1155_v36, %v751_v45  ;;  %v1161_v53 = vpop.eup %1160  ;;  %1164 = vpow2.f32 %v787_v50  ;;  %v734_v63 = vand.u32 2147483648, %v722_v43  ;;  %vm728_vm11 = vweird.f32 %v722_v43  ;;  %v833_v36 = vld [vmem:[%s1339_s11 + $0x3] sm:$0x1] (%p1305_p6)  ;;  %830 = vst [vmem:[%s810_s30 + $0x8] sm:$0x1] (%p1305_p6), %v829_v33 }
  0x8f   : > { %v683_v48 = vadd.f32 %v1151_v26, %v682_v37  ;;  %1166 = vpow2.f32 %v790_v51  ;;  %v732_v1 = vand.u32 2147483647, %v722_v43  ;;  %v750_v4 = vadd.f32 %v749_v49, %v748_v58  ;;  %834 = vst [vmem:[%s810_s30 + $0x18] sm:$0x1] (%p1305_p6), %v833_v36 }
  0x90   : > { %v765_v59 = vmul.f32 %v1159_v46, %v752_v52  ;;  %v735_v2 = vor.u32 1.1754944e-38, %v734_v63  ;;  %v720_v11 = vadd.f32 %v719_v62, %v718_v61 }
  0x91   : > { %v687_v3 = vsel %vm1571_vm9, %v1151_v26, %v683_v48  ;;  %vm733_vm14 = vcmp.eq.f32.partialorder %v732_v1, 8.507059e+37  ;;  %v762_v25 = vmul.f32 %v1159_v46, %v750_v4  ;;  %v763_v26 = vmul.f32 %v1161_v53, %v445_v8 }
  0x92   : > { %v1163_v55 = vpop.eup %1162  ;;  %v692_v56 = vsel %vm689_vm10, %v691_v39, %v687_v3  ;;  %v766_v54 = vadd.f32 %v1161_v53, %v765_v59  ;;  %v835_v34 = vld [vmem:[%s1339_s11 + $0x4] sm:$0x1] (%p1305_p6) }
  0x93   : > { %v693_v60 = vmul.f32 %v692_v56, %v676_v40  ;;  %v724_v57 = vmul.f32 %v1163_v55, %v722_v43  ;;  %vm729_vm12 = vweird.f32 %v1163_v55  ;;  %v764_v18 = vadd.f32 %v763_v26, %v762_v25  ;;  %836 = vst [vmem:[%s810_s30 + $0x20] sm:$0x1] (%p1305_p6), %v835_v34 }
  0x94   : > { %1168 = vrcp.f32 %v766_v54  ;;  %v1165_v5 = vpop.eup %1164  ;;  %vm730_vm13 = vmor %vm728_vm11, %vm729_vm12  ;;  %v778_v27 = vand.u32 2147483648, %v766_v54  ;;  %vm772_vm15 = vweird.f32 %v766_v54  ;;  %v776_v29 = vand.u32 2147483647, %v766_v54 }
  0x95   : > { %1025 = vst.msk [vmem:[%s1339_s11 + $0x5] sm:$0x1] %vm475_vm3, %v693_v60  ;;  %v725_v0 = vsub.f32 1.0, %v724_v57  ;;  %v1167_v7 = vpop.eup %1166  ;;  %v792_v9 = vmul.f32 %v1165_v5, %v750_v4  ;;  %v795_v10 = vmul.f32 %v1165_v5, %v752_v52 }
  0x96   : > { %v793_v13 = vmul.f32 %v1167_v7, %v445_v8  ;;  %v779_v17 = vor.u32 1.1754944e-38, %v778_v27  ;;  %vm777_vm2 = vcmp.eq.f32.partialorder %v776_v29, 8.507059e+37 }
  0x97   : > { %v726_v6 = vmul.f32 %v1163_v55, %v725_v0  ;;  %v796_v14 = vadd.f32 %v1167_v7, %v795_v10 }
  0x98   : > { %v794_v47 = vadd.f32 %v793_v13, %v792_v9 }
  0x99   : > { %v727_v12 = vadd.f32 %v1163_v55, %v726_v6  ;;  %798 = vst.msk [vmem:[#allocation3] sm:$0x1] %vm475_vm3, %v796_v14 }
  0x9a   : > { %v1169_v20 = vpop.eup %1168  ;;  %797 = vst.msk [vmem:[#allocation2] sm:$0x1] %vm475_vm3, %v794_v47 }
  0x9b   : > { %v731_v16 = vsel %vm730_vm13, %v1163_v55, %v727_v12  ;;  %v768_v24 = vmul.f32 %v1169_v20, %v766_v54  ;;  %vm773_vm0 = vweird.f32 %v1169_v20 }
  0x9c   : > { %v736_v21 = vsel %vm733_vm14, %v735_v2, %v731_v16  ;;  %vm774_vm1 = vmor %vm772_vm15, %vm773_vm0  ;;  %v837_v37 = vld [vmem:[%s1339_s11 + $0x5] sm:$0x1] (%p1305_p6) }
  0x9d   : > { %v737_v23 = vmul.f32 %v736_v21, %v720_v11  ;;  %v769_v28 = vsub.f32 1.0, %v768_v24  ;;  %838 = vst [vmem:[%s810_s30 + $0x28] sm:$0x1] (%p1305_p6), %v837_v37 }
  0x9f   : > { %1026 = vst.msk [vmem:[%s1339_s11 + $0x6] sm:$0x1] %vm475_vm3, %v737_v23  ;;  %v770_v19 = vmul.f32 %v1169_v20, %v769_v28 }
  0xa1   : > { %v771_v30 = vadd.f32 %v1169_v20, %v770_v19 }
  0xa3   : > { %v775_v31 = vsel %vm774_vm1, %v1169_v20, %v771_v30  ;;  %806 = sbr.rel (!%p1305_p6) target bundleno = 176 (0xb0), region = 126 }
  0xa4   : > { %v780_v22 = vsel %vm777_vm2, %v779_v17, %v775_v31 }
  0xa5   : > { %v781_v43 = vmul.f32 %v780_v22, %v764_v18 }
  0xa6   : > { %v839_v38 = vld [vmem:[%s1339_s11 + $0x6] sm:$0x1] (%p1305_p6) }
  0xa7   : > { %1027 = vst.msk [vmem:[%s1339_s11 + $0x7] sm:$0x1] %vm475_vm3, %v781_v43 }
  0xa8   : > { %840 = vst [vmem:[%s810_s30 + $0x30] sm:$0x1] %v839_v38 }
  0xae   : > { %v841_v15 = vld [vmem:[%s1339_s11 + $0x7] sm:$0x1] }
  0xaf   : > { %842 = vst [vmem:[%s810_s30 + $0x38] sm:$0x1] %v841_v15 }
  0xb0 PF: > { %s14_s21 = sadd.s32 1, %s1224_s21   ;;  %s1650_s15 = smov %s1204_s16 }
  0xb1   : > { %p11_p13 = scmp.ge.s32.totalorder %s14_s21, 18   ;;  %s1651_s16 = smov %s1313_s5 }
  0xb2   : > { %s1652_s17 = smov %s1216_s19  ;;  %s1653_s18 = smov %s1220_s20 }
  0xb3   : > { %s1654_s19 = smov %s1657_s22  ;;  %s1655_s20 = smov %s1661_s23 }
  0xb4   :  { %13 = sbr.rel (!%p11_p13) target bundleno = 4 (0x4), region = 219 }

// kernel: fwd.7
= control target key start
LH: loop header
LB: loop body
LE: loop exit
PB: predicated region body
PF: predicated region fallthrough
CT: control target
= control target key end

     0   :  { %s1152_s15 = smov 0   ;;  %s1154_s16 = smov 0   ;;  %s1476_s0 = inlined_call_operand.vmem [shape: f32[1,32], index: 0, kind: input, shape index: {}]   ;;  %s1477_s1 = inlined_call_operand.vmem [shape: f32[1,32], index: 1, kind: input, shape index: {}]   ;;  %s1478_s2 = inlined_call_operand.vmem [shape: f32[2,64,1,1,32], index: 2, kind: input, shape index: {}]   ;;  %s1479_s3 = inlined_call_operand.vmem [shape: f32[2,64,1,1,32], index: 3, kind: input, shape index: {}]   ;;  %s1480_s4 = inlined_call_operand.vmem [shape: f32[2,64,1,1,32], index: 4, kind: output, shape index: {}]  }
   0x1   :  { %s1156_s17 = smov 0  }
   0x2 LB: > { %s33_s18 = sadd.s32 1, %s1103_s16  ;;  %p910_p0 = scmp.ge.s32.totalorder %s1107_s17, 1  ;;  %s1107_s17 = sphi %s1156_s17, %s14_s17   ;;  %s1103_s16 = sphi %s1154_s16, %s1506_s16   ;;  %s1099_s15 = sphi %s1152_s15, %s1505_s15  }
   0x3   : > { %p35_p1 = scmp.ge.s32.totalorder %s33_s18, 2  ;;  %p233_p2 = scmp.lt.s32.totalorder %s1107_s17, 3 }
   0x5   : > { %s1508_s18 = smov (%p35_p1, %s33_s18), 0  ;;  %p234_p3 = pnand %p910_p0, %p233_p2 }
   0x6   : > { %p295_p4 = scmp.lt.s32.totalorder (!%p234_p3), %s1099_s15, 1  ;;  %s1203_s7 = smov (!%p234_p3), 0  }
   0x7   : > { %237 = sbr.rel (%p234_p3) target bundleno = 124 (0x7c), region = 36 }
   0xc   : > { %vm334_vm0 = vcmask 253952   ;;  %v1173_v0 = vld [vmem:[%s1476_s0] sm:$0x1]  ;;  %v1125_v1 = vmov 0.0   ;;  %s1510_s15 = smov (!%p295_p4, %s1099_s15), 1 }
   0xd   : > { %335 = vst.msk [vmem:[#allocation2] sm:$0x1] %vm334_vm0, %v1125_v1  ;;  %v1179_v2 = vld [vmem:[%s1477_s1] sm:$0x1]  ;;  %v1126_v3 = vmov -1e+38  }
   0xe   : > { %336 = vst.msk [vmem:[#allocation3] sm:$0x1] %vm334_vm0, %v1125_v1  ;;  %s1183_s23 = sshll.u32 %s1510_s15, 6 }
   0xf   : > { %337 = vst.msk [vmem:[#allocation4] sm:$0x1] %vm334_vm0, %v1126_v3  ;;  %s304_s26 = scalar_lea.vmem %s1478_s2, %s1183_s23  ;;  %s316_s29 = scalar_lea.vmem %s1479_s3, %s1183_s23 }
  0x10   : > { %s328_s6 = scalar_lea.vmem %s1480_s4, %s1183_s23 }
  0x14   : > { %v340_v4 = vld [vmem:[#allocation2] sm:$0x1]  }
  0x15   : > { %v341_v5 = vld [vmem:[#allocation3] sm:$0x1]  }
  0x16   : > { %v342_v6 = vld [vmem:[#allocation4] sm:$0x1]  }
  0x17 LB: >> { %s1214_s8 = sshll.u32 %s1123_s7, 3  ;;  %v372_v7 = vadd.f32 %v1111_v6, %v1173_v0  ;;  %s348_s7 = sadd.s32 1, %s1123_s7   ;;  %s1123_s7 = sphi %s1203_s7, %s348_s7   ;;  %v1119_v4 = vphi %v340_v4, %v1504_v4   ;;  %v1115_v5 = vphi %v341_v5, %v1503_v5   ;;  %v1111_v6 = vphi %v342_v6, %v1502_v6  }
  0x18   : >> { %s1223_s11 = scalar_lea.vmem %s304_s26, %s1214_s8  ;;  %s1238_s14 = scalar_lea.vmem %s316_s29, %s1214_s8 }
  0x19   : >> { %v354_v8 = vld [vmem:[%s1223_s11] sm:$0x1]  ;;  %v355_v9 = vld [vmem:[%s1223_s11 + $0x1] sm:$0x1]  ;;  %v356_v17 = vld [vmem:[%s1223_s11 + $0x2] sm:$0x1]  ;;  %s1334_s20 = scalar_lea.vmem %s328_s6, %s1214_s8 }
  0x1a   : >> { %v371_v10 = vadd.f32 %v354_v8, %v1179_v2  ;;  %v403_v11 = vmax.f32 %v372_v7, %v354_v8  ;;  %v415_v12 = vadd.f32 %v355_v9, %v1179_v2  ;;  %v459_v19 = vadd.f32 %v356_v17, %v1179_v2  ;;  %v363_v39 = vld [vmem:[%s1238_s14] sm:$0x1]  ;;  %v1247_v50 = vld [vmem:[%s1223_s11 + $0x3] sm:$0x1]  ;;  %v1253_v56 = vld [vmem:[%s1223_s11 + $0x4] sm:$0x1] }
  0x1b   : >> { %v503_v55 = vadd.f32 %v1247_v50, %v1179_v2  ;;  %v1257_v59 = vadd.f32 %v1253_v56, %v1179_v2  ;;  %p345_p5 = scmp.ge.s32.totalorder %s348_s7, 8  }
  0x1c   : >> { %v373_v13 = vmax.f32 %v1111_v6, %v371_v10  ;;  %v404_v14 = vsub.f32 %v372_v7, %v403_v11  ;;  %v407_v15 = vsub.f32 %v354_v8, %v403_v11  ;;  %v416_v16 = vadd.f32 %v403_v11, %v1173_v0 }
  0x1d   : >> { %v417_v18 = vmax.f32 %v403_v11, %v415_v12 }
  0x1e   : >> { %v374_v20 = vsub.f32 %v1111_v6, %v373_v13  ;;  %v377_v21 = vsub.f32 %v371_v10, %v373_v13  ;;  %v405_v22 = vmul.f32 1.442695, %v404_v14  ;;  %v408_v23 = vmul.f32 1.442695, %v407_v15  ;;  %v364_v6 = vld [vmem:[%s1238_s14 + $0x1] sm:$0x1] }
  0x1f   : >> { %v418_v24 = vsub.f32 %v403_v11, %v417_v18  ;;  %v421_v25 = vsub.f32 %v415_v12, %v417_v18  ;;  %v447_v26 = vmax.f32 %v416_v16, %v355_v9 }
  0x20   : >> { %v375_v27 = vmul.f32 1.442695, %v374_v20  ;;  %v378_v28 = vmul.f32 1.442695, %v377_v21  ;;  %989 = vpow2.f32 %v405_v22 }
  0x21   : >> { %991 = vpow2.f32 %v408_v23  ;;  %v419_v29 = vmul.f32 1.442695, %v418_v24  ;;  %v422_v30 = vmul.f32 1.442695, %v421_v25  ;;  %v451_v31 = vsub.f32 %v355_v9, %v447_v26 }
  0x22   : >> { %993 = vpow2.f32 %v375_v27  ;;  %v448_v32 = vsub.f32 %v416_v16, %v447_v26  ;;  %v460_v33 = vadd.f32 %v447_v26, %v1173_v0  ;;  %v461_v34 = vmax.f32 %v447_v26, %v459_v19 }
  0x23   : >> { %995 = vpow2.f32 %v378_v28  ;;  %v452_v35 = vmul.f32 1.442695, %v451_v31  ;;  %v365_v31 = vld [vmem:[%s1238_s14 + $0x2] sm:$0x1] }
  0x24   : >> { %997 = vpow2.f32 %v419_v29  ;;  %v449_v36 = vmul.f32 1.442695, %v448_v32  ;;  %v462_v37 = vsub.f32 %v447_v26, %v461_v34  ;;  %v465_v38 = vsub.f32 %v459_v19, %v461_v34 }
  0x25   : >> { %999 = vpow2.f32 %v422_v30  ;;  %v1242_v40 = vmax.f32 %v460_v33, %v356_v17 }
  0x26   : >> { %v990_v41 = vpop.eup %989  ;;  %v463_v42 = vmul.f32 1.442695, %v462_v37  ;;  %1001 = vpow2.f32 %v449_v36  ;;  %v466_v49 = vmul.f32 1.442695, %v465_v38 }
  0x27   : >> { %v992_v43 = vpop.eup %991  ;;  %v410_v44 = vmul.f32 %v1119_v4, %v990_v41  ;;  %v413_v45 = vmul.f32 %v1115_v5, %v990_v41  ;;  %v495_v46 = vsub.f32 %v356_v17, %v1242_v40  ;;  %1003 = vpow2.f32 %v452_v35 }
  0x28   : >> { %v994_v47 = vpop.eup %993  ;;  %v411_v48 = vmul.f32 %v992_v43, %v363_v39  ;;  %v492_v51 = vsub.f32 %v460_v33, %v1242_v40  ;;  %1005 = vpow2.f32 %v463_v42  ;;  %v504_v7 = vadd.f32 %v1242_v40, %v1173_v0 }
  0x29   : >> { %v996_v52 = vpop.eup %995  ;;  %v383_v53 = vmul.f32 %v1115_v5, %v994_v47  ;;  %v414_v54 = vadd.f32 %v992_v43, %v413_v45  ;;  %v496_v58 = vmul.f32 1.442695, %v495_v46  ;;  %v380_v3 = vmul.f32 %v1119_v4, %v994_v47 }
  0x2a   : >> { %v998_v57 = vpop.eup %997  ;;  %v412_v62 = vadd.f32 %v411_v48, %v410_v44  ;;  %v493_v1 = vmul.f32 1.442695, %v492_v51  ;;  %v381_v5 = vmul.f32 %v996_v52, %v363_v39  ;;  %1007 = vpow2.f32 %v466_v49 }
  0x2b   : >> { %v1000_v60 = vpop.eup %999  ;;  %v1259_v61 = vadd.f32 %v996_v52, %v383_v53  ;;  %v427_v63 = vmul.f32 %v998_v57, %v414_v54  ;;  %v505_v11 = vmax.f32 %v1242_v40, %v503_v55  ;;  %v1276_v20 = vmax.f32 %v504_v7, %v1247_v50 }
  0x2c   : >> { %v1002_v8 = vpop.eup %1001  ;;  %v424_v9 = vmul.f32 %v998_v57, %v412_v62  ;;  %v425_v10 = vmul.f32 %v1000_v60, %v364_v6  ;;  %v1271_v19 = vadd.f32 %v381_v5, %v380_v3 }
  0x2d   : >> { %1009 = vrcp.f32 %v1259_v61  ;;  %v1004_v12 = vpop.eup %1003  ;;  %v394_v13 = vand.u32 2147483647, %v1259_v61  ;;  %v396_v14 = vand.u32 2147483648, %v1259_v61  ;;  %v1269_v15 = vadd.f32 %v1000_v60, %v427_v63 }
  0x2e   : >> { %1011 = vpow2.f32 %v496_v58  ;;  %v455_v4 = vmul.f32 %v1004_v12, %v364_v6  ;;  %v454_v16 = vmul.f32 %v1002_v8, %v412_v62  ;;  %v457_v17 = vmul.f32 %v1002_v8, %v414_v54  ;;  %v1006_v18 = vpop.eup %1005 }
  0x2f   : >> { %1013 = vpow2.f32 %v493_v1  ;;  %vm390_vm1 = vweird.f32 %v1259_v61  ;;  %v1278_v21 = vadd.f32 %v425_v10, %v424_v9  ;;  %v438_v22 = vand.u32 2147483647, %v1269_v15 }
  0x30   : >> { %1015 = vrcp.f32 %v1269_v15  ;;  %v458_v23 = vadd.f32 %v1004_v12, %v457_v17  ;;  %v506_v24 = vsub.f32 %v1242_v40, %v505_v11  ;;  %v1008_v25 = vpop.eup %1007  ;;  %vm1282_vm2 = vcmp.eq.f32.partialorder %v394_v13, 8.507059e+37  ;;  %v366_v17 = vld [vmem:[%s1238_s14 + $0x3] sm:$0x1] }
  0x31   : >> { %v397_v27 = vor.u32 1.1754944e-38, %v396_v14  ;;  %vm434_vm3 = vweird.f32 %v1269_v15  ;;  %v509_v28 = vsub.f32 %v503_v55, %v505_v11  ;;  %v440_v30 = vand.u32 2147483648, %v1269_v15 }
  0x32   : >> { %v456_v32 = vadd.f32 %v455_v4, %v454_v16  ;;  %v471_v33 = vmul.f32 %v1006_v18, %v458_v23  ;;  %v507_v34 = vmul.f32 1.442695, %v506_v24  ;;  %v1290_v37 = vmul.f32 %v1008_v25, %v365_v31 }
  0x33   : >> { %v1010_v29 = vpop.eup %1009  ;;  %v510_v38 = vmul.f32 1.442695, %v509_v28  ;;  %v539_v39 = vsub.f32 %v1247_v50, %v1276_v20  ;;  %vm1294_vm4 = vcmp.eq.f32.partialorder %v438_v22, 8.507059e+37  ;;  %v536_v43 = vsub.f32 %v504_v7, %v1276_v20 }
  0x34   : >> { %v1012_v35 = vpop.eup %1011  ;;  %v386_v36 = vmul.f32 %v1010_v29, %v1259_v61  ;;  %v1298_v42 = vadd.f32 %v1008_v25, %v471_v33  ;;  %1017 = vpow2.f32 %v507_v34  ;;  %vm391_vm5 = vweird.f32 %v1010_v29 }
  0x35   : >> { %v1014_v40 = vpop.eup %1013  ;;  %1019 = vpow2.f32 %v510_v38  ;;  %v499_v48 = vmul.f32 %v1012_v35, %v365_v31  ;;  %v441_v51 = vor.u32 1.1754944e-38, %v440_v30  ;;  %v468_v52 = vmul.f32 %v1006_v18, %v456_v32  ;;  %vm1305_vm6 = vmor %vm390_vm1, %vm391_vm5 }
  0x36   : >> { %v1016_v44 = vpop.eup %1015  ;;  %v387_v45 = vsub.f32 1.0, %v386_v36  ;;  %v501_v46 = vmul.f32 %v1014_v40, %v458_v23  ;;  %1021 = vrcp.f32 %v1298_v42  ;;  %v498_v49 = vmul.f32 %v1014_v40, %v456_v32 }
  0x37   : >> { %v430_v47 = vmul.f32 %v1016_v44, %v1269_v15  ;;  %v540_v53 = vmul.f32 1.442695, %v539_v39  ;;  %vm435_vm7 = vweird.f32 %v1016_v44  ;;  %vm478_vm8 = vweird.f32 %v1298_v42 }
  0x38   : >> { %v388_v50 = vmul.f32 %v1010_v29, %v387_v45  ;;  %v537_v57 = vmul.f32 1.442695, %v536_v43  ;;  %v482_v60 = vand.u32 2147483647, %v1298_v42  ;;  %v502_v62 = vadd.f32 %v1012_v35, %v501_v46  ;;  %vm1321_vm9 = vmor %vm434_vm3, %vm435_vm7 }
  0x39   : >> { %v431_v55 = vsub.f32 1.0, %v430_v47  ;;  %v548_v63 = vadd.f32 %v1276_v20, %v1173_v0  ;;  %v1313_v3 = vadd.f32 %v499_v48, %v498_v49  ;;  %v549_v5 = vmax.f32 %v1276_v20, %v1257_v59 }
  0x3a   : >> { %v389_v58 = vadd.f32 %v1010_v29, %v388_v50  ;;  %v1018_v1 = vpop.eup %1017  ;;  %1023 = vpow2.f32 %v537_v57  ;;  %v484_v9 = vand.u32 2147483648, %v1298_v42  ;;  %v470_v32 = vadd.f32 %v1290_v37, %v468_v52 }
  0x3b   : >> { %v432_v61 = vmul.f32 %v1016_v44, %v431_v55  ;;  %v1020_v6 = vpop.eup %1019  ;;  %v515_v10 = vmul.f32 %v1018_v1, %v502_v62  ;;  %1025 = vpow2.f32 %v540_v53  ;;  %v512_v14 = vmul.f32 %v1018_v1, %v1313_v3 }
  0x3c   : >> { %v393_v7 = vsel %vm1305_vm6, %v1010_v29, %v389_v58  ;;  %v1022_v11 = vpop.eup %1021  ;;  %v550_v15 = vsub.f32 %v1276_v20, %v549_v5  ;;  %v579_v22 = vmax.f32 %v548_v63, %v1253_v56  ;;  %v513_v24 = vmul.f32 %v1020_v6, %v366_v17 }
  0x3d   : >> { %v398_v12 = vsel %vm1282_vm2, %v397_v27, %v393_v7  ;;  %v433_v13 = vadd.f32 %v1016_v44, %v432_v61  ;;  %v474_v16 = vmul.f32 %v1022_v11, %v1298_v42  ;;  %v1341_v18 = vadd.f32 %v1020_v6, %v515_v10  ;;  %v359_v27 = vld [vmem:[%s1223_s11 + $0x5] sm:$0x1] }
  0x3e   : >> { %v399_v4 = vmul.f32 %v398_v12, %v1271_v19  ;;  %v551_v25 = vmul.f32 1.442695, %v550_v15  ;;  %v553_v26 = vsub.f32 %v1257_v59, %v549_v5  ;;  %vm479_vm10 = vweird.f32 %v1022_v11 }
  0x3f   : >> { %v437_v23 = vsel %vm1321_vm9, %v1016_v44, %v433_v13  ;;  %v475_v20 = vsub.f32 1.0, %v474_v16  ;;  %1027 = vrcp.f32 %v1341_v18  ;;  %v591_v30 = vadd.f32 %v359_v27, %v1179_v2  ;;  %vm1364_vm12 = vmor %vm478_vm8, %vm479_vm10 }
  0x40   : >> { %402 = vst.msk [vmem:[%s1334_s20] sm:$0x1] %vm334_vm0, %v399_v4  ;;  %v442_v19 = vsel %vm1294_vm4, %v441_v51, %v437_v23  ;;  %v1024_v28 = vpop.eup %1023  ;;  %vm1356_vm11 = vcmp.eq.f32.partialorder %v482_v60, 8.507059e+37  ;;  %1029 = vpow2.f32 %v551_v25  ;;  %v554_v36 = vmul.f32 1.442695, %v553_v26 }
  0x41   : >> { %v443_v29 = vmul.f32 %v442_v19, %v1278_v21  ;;  %v1026_v31 = vpop.eup %1025  ;;  %v476_v33 = vmul.f32 %v1022_v11, %v475_v20  ;;  %v485_v21 = vor.u32 1.1754944e-38, %v484_v9  ;;  %v545_v35 = vmul.f32 %v1024_v28, %v502_v62  ;;  %v1379_v60 = vld [vmem:[%s1223_s11 + $0x6] sm:$0x1] }
  0x42   : >> { %v583_v38 = vsub.f32 %v1253_v56, %v579_v22  ;;  %v514_v39 = vadd.f32 %v513_v24, %v512_v14  ;;  %vm522_vm13 = vweird.f32 %v1341_v18  ;;  %v580_v40 = vsub.f32 %v548_v63, %v579_v22 }
  0x43   : >> { %916 = vst.msk [vmem:[%s1334_s20 + $0x1] sm:$0x1] %vm334_vm0, %v443_v29  ;;  %v477_v37 = vadd.f32 %v1022_v11, %v476_v33  ;;  %1031 = vpow2.f32 %v554_v36  ;;  %v592_v43 = vadd.f32 %v579_v22, %v1173_v0  ;;  %v593_v44 = vmax.f32 %v579_v22, %v591_v30 }
  0x44   : >> { %v584_v41 = vmul.f32 1.442695, %v583_v38  ;;  %v526_v46 = vand.u32 2147483647, %v1341_v18  ;;  %v528_v47 = vand.u32 2147483648, %v1341_v18  ;;  %v546_v50 = vadd.f32 %v1026_v31, %v545_v35 }
  0x45   : >> { %v1028_v42 = vpop.eup %1027  ;;  %v481_v45 = vsel %vm1364_vm12, %v1022_v11, %v477_v37  ;;  %v581_v56 = vmul.f32 1.442695, %v580_v40  ;;  %v594_v53 = vsub.f32 %v579_v22, %v593_v44  ;;  %v597_v54 = vsub.f32 %v591_v30, %v593_v44 }
  0x46   : >> { %v486_v48 = vsel %vm1356_vm11, %v485_v21, %v481_v45  ;;  %v518_v49 = vmul.f32 %v1028_v42, %v1341_v18  ;;  %vm523_vm14 = vweird.f32 %v1028_v42  ;;  %v1030_v51 = vpop.eup %1029  ;;  %v623_v58 = vmax.f32 %v592_v43, %v359_v27 }
  0x47   : >> { %v487_v52 = vmul.f32 %v486_v48, %v470_v32  ;;  %1033 = vpow2.f32 %v581_v56  ;;  %v559_v57 = vmul.f32 %v1030_v51, %v546_v50  ;;  %v543_v62 = vmul.f32 %v1026_v31, %v366_v17  ;;  %vm1389_vm15 = vmor %vm522_vm13, %vm523_vm14  ;;  %v1395_v17 = vld [vmem:[%s1223_s11 + $0x7] sm:$0x1] }
  0x48   : >> { %v519_v55 = vsub.f32 1.0, %v518_v49  ;;  %1035 = vpow2.f32 %v584_v41  ;;  %v595_v63 = vmul.f32 1.442695, %v594_v53  ;;  %v598_v1 = vmul.f32 1.442695, %v597_v54 }
  0x49   : >> { %918 = vst.msk [vmem:[%s1334_s20 + $0x2] sm:$0x1] %vm334_vm0, %v487_v52  ;;  %v635_v61 = vadd.f32 %v1379_v60, %v1179_v2  ;;  %v1032_v5 = vpop.eup %1031  ;;  %v542_v7 = vmul.f32 %v1024_v28, %v1313_v3  ;;  %v627_v8 = vsub.f32 %v359_v27, %v623_v58  ;;  %v624_v9 = vsub.f32 %v592_v43, %v623_v58  ;;  %v367_v27 = vld [vmem:[%s1238_s14 + $0x4] sm:$0x1] }
  0x4a   : >> { %v520_v6 = vmul.f32 %v1028_v42, %v519_v55  ;;  %vm527_vm1 = vcmp.eq.f32.partialorder %v526_v46, 8.507059e+37  ;;  %v529_v11 = vor.u32 1.1754944e-38, %v528_v47  ;;  %v560_v12 = vadd.f32 %v1032_v5, %v559_v57  ;;  %v368_v55 = vld [vmem:[%s1238_s14 + $0x5] sm:$0x1] }
  0x4b   : >> { %1037 = vpow2.f32 %v595_v63  ;;  %v628_v14 = vmul.f32 1.442695, %v627_v8  ;;  %v625_v15 = vmul.f32 1.442695, %v624_v9  ;;  %v636_v4 = vadd.f32 %v623_v58, %v1173_v0 }
  0x4c   : >> { %v521_v13 = vadd.f32 %v1028_v42, %v520_v6  ;;  %1039 = vpow2.f32 %v598_v1  ;;  %v637_v16 = vmax.f32 %v623_v58, %v635_v61  ;;  %v544_v26 = vadd.f32 %v543_v62, %v542_v7 }
  0x4d   : >> { %v1034_v3 = vpop.eup %1033  ;;  %1041 = vrcp.f32 %v560_v12  ;;  %v679_v19 = vadd.f32 %v1395_v17, %v1179_v2  ;;  %v667_v31 = vmax.f32 %v636_v4, %v1379_v60  ;;  %v557_v59 = vmul.f32 %v1032_v5, %v367_v27 }
  0x4e   : >> { %v1036_v18 = vpop.eup %1035  ;;  %v525_v22 = vsel %vm1389_vm15, %v1028_v42, %v521_v13  ;;  %v589_v24 = vmul.f32 %v1034_v3, %v546_v50  ;;  %1043 = vpow2.f32 %v628_v14  ;;  %v638_v29 = vsub.f32 %v623_v58, %v637_v16 }
  0x4f   : >> { %v530_v23 = vsel %vm527_vm1, %v529_v11, %v525_v22  ;;  %1045 = vpow2.f32 %v625_v15  ;;  %v641_v30 = vsub.f32 %v635_v61, %v637_v16  ;;  %v556_v33 = vmul.f32 %v1030_v51, %v544_v26 }
  0x50   : >> { %v531_v25 = vmul.f32 %v530_v23, %v514_v39  ;;  %v590_v28 = vadd.f32 %v1036_v18, %v589_v24  ;;  %vm566_vm2 = vweird.f32 %v560_v12  ;;  %v570_v34 = vand.u32 2147483647, %v560_v12 }
  0x51   : >> { %v1038_v20 = vpop.eup %1037  ;;  %v572_v35 = vand.u32 2147483648, %v560_v12  ;;  %v639_v38 = vmul.f32 1.442695, %v638_v29  ;;  %v642_v37 = vmul.f32 1.442695, %v641_v30  ;;  %v587_v40 = vmul.f32 %v1036_v18, %v367_v27 }
  0x52   : >> { %v1040_v32 = vpop.eup %1039  ;;  %920 = vst.msk [vmem:[%s1334_s20 + $0x3] sm:$0x1] %vm334_vm0, %v531_v25  ;;  %v603_v36 = vmul.f32 %v1038_v20, %v590_v28  ;;  %v586_v41 = vmul.f32 %v1034_v3, %v544_v26  ;;  %v671_v43 = vsub.f32 %v1379_v60, %v667_v31  ;;  %v668_v45 = vsub.f32 %v636_v4, %v667_v31 }
  0x53   : >> { %v1042_v21 = vpop.eup %1041  ;;  %1047 = vpow2.f32 %v639_v38  ;;  %v680_v48 = vadd.f32 %v667_v31, %v1173_v0  ;;  %v558_v49 = vadd.f32 %v557_v59, %v556_v33  ;;  %vm1410_vm4 = vcmp.eq.f32.partialorder %v570_v34, 8.507059e+37 }
  0x54   : >> { %v562_v39 = vmul.f32 %v1042_v21, %v560_v12  ;;  %v1044_v44 = vpop.eup %1043  ;;  %vm567_vm3 = vweird.f32 %v1042_v21  ;;  %v1406_v42 = vadd.f32 %v1040_v32, %v603_v36  ;;  %1049 = vpow2.f32 %v642_v37 }
  0x55   : >> { %v1046_v46 = vpop.eup %1045  ;;  %v672_v56 = vmul.f32 1.442695, %v671_v43  ;;  %vm1415_vm5 = vmor %vm566_vm2, %vm567_vm3  ;;  %v573_v54 = vor.u32 1.1754944e-38, %v572_v35  ;;  %v588_v57 = vadd.f32 %v587_v40, %v586_v41  ;;  %v669_v58 = vmul.f32 1.442695, %v668_v45 }
  0x56   : >> { %v563_v47 = vsub.f32 1.0, %v562_v39  ;;  %1051 = vrcp.f32 %v1406_v42  ;;  %v633_v52 = vmul.f32 %v1046_v46, %v590_v28  ;;  %v681_v60 = vmax.f32 %v667_v31, %v679_v19 }
  0x57   : >> { %1053 = vpow2.f32 %v672_v56  ;;  %v1421_v6 = vmax.f32 %v680_v48, %v1395_v17   ;;  %v600_v5 = vmul.f32 %v1038_v20, %v588_v57  ;;  %v631_v11 = vmul.f32 %v1044_v44, %v368_v55 }
  0x58   : >> { %v564_v50 = vmul.f32 %v1042_v21, %v563_v47  ;;  %v634_v63 = vadd.f32 %v1044_v44, %v633_v52  ;;  %1055 = vpow2.f32 %v669_v58  ;;  %v682_v7 = vsub.f32 %v667_v31, %v681_v60  ;;  %v369_v31 = vld [vmem:[%s1238_s14 + $0x6] sm:$0x1] }
  0x59   : >> { %v1499_v1 = vmov %v1421_v6  ;;  %v1048_v61 = vpop.eup %1047  ;;  %v685_v8 = vsub.f32 %v679_v19, %v681_v60  ;;  %v630_v3 = vmul.f32 %v1046_v46, %v588_v57  ;;  %v601_v18 = vmul.f32 %v1040_v32, %v368_v55  ;;  %v370_v55 = vld [vmem:[%s1238_s14 + $0x7] sm:$0x1] }
  0x5a   : >> { %v565_v62 = vadd.f32 %v1042_v21, %v564_v50  ;;  %v1050_v9 = vpop.eup %1049  ;;  %v647_v12 = vmul.f32 %v1048_v61, %v634_v63  ;;  %v712_v13 = vsub.f32 %v680_v48, %v1499_v1  ;;  %v683_v6 = vmul.f32 1.442695, %v682_v7  ;;  %726 = vst.msk [vmem:[#allocation4] sm:$0x1] (%p345_p5), %vm334_vm0, %v1499_v1 }
  0x5b   : >> { %v686_v4 = vmul.f32 1.442695, %v685_v8  ;;  %vm610_vm6 = vweird.f32 %v1406_v42  ;;  %v616_v24 = vand.u32 2147483648, %v1406_v42  ;;  %v614_v20 = vand.u32 2147483647, %v1406_v42 }
  0x5c   : >> { %v569_v10 = vsel %vm1415_vm5, %v1042_v21, %v565_v62  ;;  %v1052_v14 = vpop.eup %1051  ;;  %v648_v23 = vadd.f32 %v1050_v9, %v647_v12  ;;  %1057 = vpow2.f32 %v683_v6  ;;  %v713_v25 = vmul.f32 1.442695, %v712_v13 }
  0x5d   : >> { %v574_v15 = vsel %vm1410_vm4, %v573_v54, %v569_v10  ;;  %v606_v22 = vmul.f32 %v1052_v14, %v1406_v42  ;;  %v1054_v26 = vpop.eup %1053  ;;  %vm611_vm7 = vweird.f32 %v1052_v14  ;;  %v632_v28 = vadd.f32 %v631_v11, %v630_v3 }
  0x5e   : >> { %v575_v16 = vmul.f32 %v574_v15, %v558_v49  ;;  %1059 = vrcp.f32 %v648_v23  ;;  %v1056_v27 = vpop.eup %1055  ;;  %v715_v29 = vsub.f32 %v1395_v17, %v1499_v1  ;;  %vm1439_vm8 = vmor %vm610_vm6, %vm611_vm7  ;;  %v617_v59 = vor.u32 1.1754944e-38, %v616_v24 }
  0x5f   : >> { %v607_v19 = vsub.f32 1.0, %v606_v22  ;;  %1061 = vpow2.f32 %v686_v4  ;;  %v677_v32 = vmul.f32 %v1056_v27, %v634_v63  ;;  %v602_v21 = vadd.f32 %v601_v18, %v600_v5 }
  0x60   : >> { %922 = vst.msk [vmem:[%s1334_s20 + $0x4] sm:$0x1] %vm334_vm0, %v575_v16  ;;  %1063 = vpow2.f32 %v713_v25  ;;  %v716_v34 = vmul.f32 1.442695, %v715_v29  ;;  %vm615_vm9 = vcmp.eq.f32.partialorder %v614_v20, 8.507059e+37  ;;  %v675_v37 = vmul.f32 %v1054_v26, %v369_v31 }
  0x61   : >> { %v608_v30 = vmul.f32 %v1052_v14, %v607_v19  ;;  %v678_v36 = vadd.f32 %v1054_v26, %v677_v32  ;;  %v674_v39 = vmul.f32 %v1056_v27, %v632_v28  ;;  %v644_v42 = vmul.f32 %v1048_v61, %v632_v28 }
  0x62   : >> { %v1058_v38 = vpop.eup %1057  ;;  %1065 = vpow2.f32 %v716_v34  ;;  %v645_v45 = vmul.f32 %v1050_v9, %v369_v31  ;;  %vm654_vm10 = vweird.f32 %v648_v23  ;;  %v660_v56 = vand.u32 2147483648, %v648_v23 }
  0x63   : >> { %v609_v35 = vadd.f32 %v1052_v14, %v608_v30  ;;  %v691_v41 = vmul.f32 %v1058_v38, %v678_v36  ;;  %v658_v51 = vand.u32 2147483647, %v648_v23  ;;  %v676_v52 = vadd.f32 %v675_v37, %v674_v39 }
  0x64   : >> { %v1060_v17 = vpop.eup %1059  ;;  %v661_v60 = vor.u32 1.1754944e-38, %v660_v56  ;;  %v646_v63 = vadd.f32 %v645_v45, %v644_v42 }
  0x65   : >> { %v613_v40 = vsel %vm1439_vm8, %v1052_v14, %v609_v35  ;;  %v1062_v43 = vpop.eup %1061  ;;  %v650_v46 = vmul.f32 %v1060_v17, %v648_v23  ;;  %vm655_vm11 = vweird.f32 %v1060_v17  ;;  %vm659_vm13 = vcmp.eq.f32.partialorder %v658_v51, 8.507059e+37 }
  0x66   : >> { %v618_v44 = vsel %vm615_vm9, %v617_v59, %v613_v40  ;;  %v692_v48 = vadd.f32 %v1062_v43, %v691_v41  ;;  %v1064_v49 = vpop.eup %1063  ;;  %vm656_vm12 = vmor %vm654_vm10, %vm655_vm11  ;;  %v688_v13 = vmul.f32 %v1058_v38, %v676_v52  ;;  %v689_v14 = vmul.f32 %v1062_v43, %v370_v55 }
  0x67   : >> { %v619_v47 = vmul.f32 %v618_v44, %v602_v21  ;;  %v651_v50 = vsub.f32 1.0, %v650_v46  ;;  %v718_v57 = vmul.f32 %v1064_v49, %v676_v52  ;;  %v721_v58 = vmul.f32 %v1064_v49, %v678_v36 }
  0x68   : >> { %1067 = vrcp.f32 %v692_v48  ;;  %v1066_v53 = vpop.eup %1065  ;;  %v704_v15 = vand.u32 2147483648, %v692_v48  ;;  %vm698_vm14 = vweird.f32 %v692_v48  ;;  %v702_v6 = vand.u32 2147483647, %v692_v48 }
  0x69   : >> { %924 = vst.msk [vmem:[%s1334_s20 + $0x5] sm:$0x1] %vm334_vm0, %v619_v47  ;;  %v652_v54 = vmul.f32 %v1060_v17, %v651_v50  ;;  %v719_v62 = vmul.f32 %v1066_v53, %v370_v55  ;;  %v722_v7 = vadd.f32 %v1066_v53, %v721_v58   ;;  %v690_v18 = vadd.f32 %v689_v14, %v688_v13 }
  0x6a   : >> { %v705_v16 = vor.u32 1.1754944e-38, %v704_v15  ;;  %vm703_vm2 = vcmp.eq.f32.partialorder %v702_v6, 8.507059e+37  ;;  %v1502_v6 = vmov %v1499_v1 }
  0x6b   : >> { %v653_v61 = vadd.f32 %v1060_v17, %v652_v54  ;;  %v720_v8 = vadd.f32 %v719_v62, %v718_v57   ;;  %725 = vst.msk [vmem:[#allocation3] sm:$0x1] (%p345_p5), %vm334_vm0, %v722_v7 }
  0x6d   : >> { %v657_v5 = vsel %vm656_vm12, %v1060_v17, %v653_v61  ;;  %724 = vst.msk [vmem:[#allocation2] sm:$0x1] (%p345_p5), %vm334_vm0, %v720_v8 }
  0x6e   : >> { %v1068_v9 = vpop.eup %1067  ;;  %v662_v10 = vsel %vm659_vm13, %v661_v60, %v657_v5  ;;  %v1503_v5 = vmov %v722_v7 }
  0x6f   : >> { %v663_v11 = vmul.f32 %v662_v10, %v646_v63  ;;  %v694_v12 = vmul.f32 %v1068_v9, %v692_v48  ;;  %vm699_vm15 = vweird.f32 %v1068_v9 }
  0x70   : >> { %vm700_vm1 = vmor %vm698_vm14, %vm699_vm15 }
  0x71   : >> { %926 = vst.msk [vmem:[%s1334_s20 + $0x6] sm:$0x1] %vm334_vm0, %v663_v11  ;;  %v695_v3 = vsub.f32 1.0, %v694_v12 }
  0x73   : >> { %v696_v4 = vmul.f32 %v1068_v9, %v695_v3 }
  0x75   : >> { %v697_v22 = vadd.f32 %v1068_v9, %v696_v4  ;;  %v1504_v4 = vmov %v720_v8 }
  0x77   : >> { %v701_v23 = vsel %vm700_vm1, %v1068_v9, %v697_v22  ;;  %347 = sbr.rel (!%p345_p5) target bundleno = 23 (0x17), region = 96 }
  0x78   : >> { %v706_v24 = vsel %vm703_vm2, %v705_v16, %v701_v23 }
  0x79   : >> { %v707_v25 = vmul.f32 %v706_v24, %v690_v18 }
  0x7b   : >> { %928 = vst.msk [vmem:[%s1334_s20 + $0x7] sm:$0x1] %vm334_vm0, %v707_v25 }
  0x7c PF: > { %s14_s17 = sadd.s32 1, %s1107_s17   ;;  %s1505_s15 = smov %s1103_s16 }
  0x7d   : > { %p11_p6 = scmp.ge.s32.totalorder %s14_s17, 4   ;;  %s1506_s16 = smov %s1508_s18 }
  0x7f   :  { %13 = sbr.rel (!%p11_p6) target bundleno = 2 (0x2), region = 107 }

// kernel: fwd.5
= control target key start
LH: loop header
LB: loop body
LE: loop exit
PB: predicated region body
PF: predicated region fallthrough
CT: control target
= control target key end

     0   :  { %s1064_s9 = smov 0   ;;  %s1066_s10 = smov 0   ;;  %s1758_s0 = inlined_call_operand.vmem [shape: f32[2,8,8,32], index: 0, kind: input, shape index: {}]   ;;  %s1759_s1 = inlined_call_operand.vmem [shape: f32[25,32], index: 1, kind: input, shape index: {}]   ;;  %s1760_s2 = inlined_call_operand.vmem [shape: bf16[2,8,8,32], index: 2, kind: output, shape index: {}]  }
   0x1   :  { %s1068_s11 = smov 0  }
   0x2 LB: > { %s24_s12 = sadd.s32 1, %s1042_s10  ;;  %p989_p0 = scmp.ge.s32.totalorder %s1046_s11, 1  ;;  %s1046_s11 = sphi %s1068_s11, %s12_s11   ;;  %s1042_s10 = sphi %s1066_s10, %s1862_s10   ;;  %s1038_s9 = sphi %s1064_s9, %s1861_s9  }
   0x3   : > { %p26_p1 = scmp.ge.s32.totalorder %s24_s12, 2  ;;  %p140_p2 = scmp.lt.s32.totalorder %s1046_s11, 3 }
   0x5   : > { %s1864_s12 = smov (%p26_p1, %s24_s12), 0  ;;  %p141_p3 = pnand %p989_p0, %p140_p2 }
   0x7   : > { %144 = sbr.rel (%p141_p3) target bundleno = 155 (0x9b), region = 28 }
   0xc   : > { %vm192_vm0 = vcmask 261120   ;;  %v1048_v0 = vmov 0.0   ;;  %vm194_vm1 = vcmask 257024   ;;  %v237_v1 = vld [vmem:[%s1759_s1] sm:$0xff]  ;;  %vm204_vm2 = vcmask 254976   ;;  %p172_p4 = scmp.lt.s32.totalorder %s1038_s9, 1 }
   0xd   : > { %193 = vst.msk [vmem:[#allocation2] sm:$0xff] %vm192_vm0, %v1048_v0  ;;  %v1099_v2 = vperm.slane %v237_v1, 0  ;;  %v1106_v4 = vperm.slane %v237_v1, 1  ;;  %v1108_v5 = vperm.slane %v237_v1, 2  ;;  %v1115_v7 = vperm.slane %v237_v1, 3  ;;  %v238_v39 = vld [vmem:[%s1759_s1 + $0x8] sm:$0xff] }
   0xe   : > { %196 = vst.msk [vmem:[#allocation2 + $0x10] sm:$0xff] %vm192_vm0, %v1048_v0  ;;  %s1866_s9 = smov (!%p172_p4, %s1038_s9), 1  ;;  %v1126_v13 = vperm.slane %v237_v1, 4  ;;  %v1139_v21 = vperm.slane %v237_v1, 5  ;;  %v1157_v28 = vperm.slane %v237_v1, 6  ;;  %v1172_v37 = vperm.slane %v237_v1, 7 }
   0xf   : > { %199 = vst.msk [vmem:[#allocation2 + $0xa0] sm:$0xff] %vm192_vm0, %v1048_v0  ;;  %s996_s15 = sshll.u32 %s1866_s9, 6  ;;  %v1187_v48 = vperm.slane %v238_v39, 0  ;;  %v1191_v51 = vperm.slane %v238_v39, 1  ;;  %v1211_v62 = vperm.slane %v238_v39, 2  ;;  %v1220_v1 = vperm.slane %v238_v39, 3 }
  0x10   : > { %201 = vst.msk [vmem:[#allocation2 + $0xb0] sm:$0xff] %vm192_vm0, %v1048_v0  ;;  %s1152_s18 = scalar_lea.vmem %s1758_s0, %s996_s15  ;;  %s997_s25 = sshll.u32 %s1866_s9, 5 }
  0x11   : > { %195 = vst.msk [vmem:[#allocation2 + $0x8] sm:$0xf] %vm194_vm1, %v1048_v0  ;;  %v221_v31 = vld [vmem:[%s1152_s18] sm:$0xff]  ;;  %v222_v34 = vld [vmem:[%s1152_s18 + $0x8] sm:$0xff]  ;;  %v223_v35 = vld [vmem:[%s1152_s18 + $0x10] sm:$0xff]  ;;  %s1624_s28 = scalar_lea.vmem %s1760_s2, %s997_s25 }
  0x12   : > { %197 = vst.msk [vmem:[#allocation2 + $0x18] sm:$0xf] %vm194_vm1, %v1048_v0  ;;  %v224_v38 = vld [vmem:[%s1152_s18 + $0x18] sm:$0xff]  ;;  %v225_v42 = vld [vmem:[%s1152_s18 + $0x20] sm:$0xff]  ;;  %v226_v45 = vld [vmem:[%s1152_s18 + $0x28] sm:$0xff] }
  0x13   : > { %200 = vst.msk [vmem:[#allocation2 + $0xa8] sm:$0xf] %vm194_vm1, %v1048_v0  ;;  %v227_v46 = vld [vmem:[%s1152_s18 + $0x30] sm:$0xff] }
  0x14   : > { %v241_v3 = vld [vmem:[#allocation2] sm:$0xff]  ;;  %202 = vst.msk [vmem:[#allocation2 + $0xb8] sm:$0xf] %vm194_vm1, %v1048_v0 }
  0x15   : > { %205 = vst.msk [vmem:[#allocation2 + $0x20] sm:$0x3] %vm204_vm2, %v1048_v0  ;;  %v250_v6 = vmul.f32 %v1099_v2, %v241_v3  ;;  %v242_v17 = vld [vmem:[#allocation2 + $0x10] sm:$0xff] }
  0x16   : > { %206 = vst.msk [vmem:[#allocation2 + $0x30] sm:$0x3] %vm204_vm2, %v1048_v0  ;;  %v251_v22 = vmul.f32 %v1099_v2, %v242_v17  ;;  %v376_v27 = vmul.f32 %v1139_v21, %v242_v17  ;;  %v1240_v17 = vperm.slane %v238_v39, 6 }
  0x17   : > { %207 = vst.msk [vmem:[#allocation2 + $0x40] sm:$0x3] %vm204_vm2, %v1048_v0 }
  0x18   : > { %v266_v8 = vld [vmem:[#allocation2 + $0x1] sm:$0xff]  ;;  %208 = vst.msk [vmem:[#allocation2 + $0x50] sm:$0x3] %vm204_vm2, %v1048_v0 }
  0x19   : > { %v291_v9 = vld [vmem:[#allocation2 + $0x2] sm:$0xff]  ;;  %v275_v11 = vmul.f32 %v1106_v4, %v266_v8  ;;  %209 = vst.msk [vmem:[#allocation2 + $0x60] sm:$0x3] %vm204_vm2, %v1048_v0  ;;  %v267_v18 = vld [vmem:[#allocation2 + $0x11] sm:$0xff] }
  0x1a   : > { %v316_v10 = vld [vmem:[#allocation2 + $0x3] sm:$0xff]  ;;  %v300_v12 = vmul.f32 %v1108_v5, %v291_v9  ;;  %210 = vst.msk [vmem:[#allocation2 + $0x70] sm:$0x3] %vm204_vm2, %v1048_v0  ;;  %v276_v23 = vmul.f32 %v1106_v4, %v267_v18  ;;  %v292_v25 = vld [vmem:[#allocation2 + $0x12] sm:$0xff]  ;;  %v401_v36 = vmul.f32 %v1157_v28, %v267_v18 }
  0x1b   : > { %v341_v14 = vld [vmem:[#allocation2 + $0x4] sm:$0xff]  ;;  %v283_v15 = vadd.f32 %v275_v11, %v250_v6  ;;  %v325_v16 = vmul.f32 %v1115_v7, %v316_v10  ;;  %211 = vst.msk [vmem:[#allocation2 + $0x80] sm:$0x3] %vm204_vm2, %v1048_v0  ;;  %v301_v30 = vmul.f32 %v1108_v5, %v292_v25  ;;  %v317_v32 = vld [vmem:[#allocation2 + $0x13] sm:$0xff]  ;;  %v426_v47 = vmul.f32 %v1172_v37, %v292_v25 }
  0x1c   : > { %212 = vst.msk [vmem:[#allocation2 + $0x90] sm:$0x3] %vm204_vm2, %v1048_v0  ;;  %v350_v20 = vmul.f32 %v1126_v13, %v341_v14  ;;  %v284_v29 = vadd.f32 %v276_v23, %v251_v22  ;;  %v326_v41 = vmul.f32 %v1115_v7, %v317_v32  ;;  %v342_v43 = vld [vmem:[#allocation2 + $0x14] sm:$0xff]  ;;  %v451_v56 = vmul.f32 %v1187_v48, %v317_v32 }
  0x1d   : > { %v308_v19 = vadd.f32 %v300_v12, %v283_v15  ;;  %213 = vst.msk [vmem:[#allocation2 + $0x2a] sm:$0x3] %vm204_vm2, %v1048_v0  ;;  %v351_v50 = vmul.f32 %v1126_v13, %v342_v43  ;;  %v1209_v61 = vmul.f32 %v1191_v51, %v342_v43  ;;  %v1230_v11 = vperm.slane %v238_v39, 4 }
  0x1e   : > { %214 = vst.msk [vmem:[#allocation2 + $0x3a] sm:$0x3] %vm204_vm2, %v1048_v0  ;;  %v309_v40 = vadd.f32 %v301_v30, %v284_v29  ;;  %v1248_v23 = vperm.slane %v238_v39, 7 }
  0x1f   : > { %v333_v24 = vadd.f32 %v325_v16, %v308_v19  ;;  %215 = vst.msk [vmem:[#allocation2 + $0x4a] sm:$0x3] %vm204_vm2, %v1048_v0  ;;  %v1238_v16 = vperm.slane %v238_v39, 5 }
  0x20   : > { %216 = vst.msk [vmem:[#allocation2 + $0x5a] sm:$0x3] %vm204_vm2, %v1048_v0  ;;  %v334_v49 = vadd.f32 %v326_v41, %v309_v40 }
  0x21   : > { %v358_v26 = vadd.f32 %v350_v20, %v333_v24  ;;  %217 = vst.msk [vmem:[#allocation2 + $0x6a] sm:$0x3] %vm204_vm2, %v1048_v0 }
  0x22   : > { %218 = vst.msk [vmem:[#allocation2 + $0x7a] sm:$0x3] %vm204_vm2, %v1048_v0  ;;  %v359_v60 = vadd.f32 %v351_v50, %v334_v49 }
  0x23   : > { %v384_v33 = vadd.f32 %v376_v27, %v358_v26  ;;  %219 = vst.msk [vmem:[#allocation2 + $0x8a] sm:$0x3] %vm204_vm2, %v1048_v0 }
  0x24   : > { %220 = vst.msk [vmem:[#allocation2 + $0x9a] sm:$0x3] %vm204_vm2, %v1048_v0  ;;  %v1218_v0 = vld [vmem:[%s1759_s1 + $0x10] sm:$0xff] }
  0x25   : > { %229 = vst.msk [vmem:[#allocation2 + $0x22] sm:$0xff] %vm192_vm0, %v221_v31  ;;  %v409_v44 = vadd.f32 %v401_v36, %v384_v33  ;;  %v1251_v24 = vperm.slane %v1218_v0, 0  ;;  %v1258_v29 = vperm.slane %v1218_v0, 1 }
  0x26   : > { %230 = vst.msk [vmem:[#allocation2 + $0x32] sm:$0xff] %vm192_vm0, %v222_v34  ;;  %v1267_v34 = vperm.slane %v1218_v0, 2 }
  0x27   : > { %231 = vst.msk [vmem:[#allocation2 + $0x42] sm:$0xff] %vm192_vm0, %v223_v35  ;;  %v434_v52 = vadd.f32 %v426_v47, %v409_v44  ;;  %v1270_v35 = vperm.slane %v1218_v0, 3  ;;  %v1283_v44 = vperm.slane %v1218_v0, 4 }
  0x28   : > { %232 = vst.msk [vmem:[#allocation2 + $0x52] sm:$0xff] %vm192_vm0, %v224_v38 }
  0x29   : > { %233 = vst.msk [vmem:[#allocation2 + $0x62] sm:$0xff] %vm192_vm0, %v225_v42  ;;  %v1222_v3 = vadd.f32 %v451_v56, %v434_v52 }
  0x2a   : > { %234 = vst.msk [vmem:[#allocation2 + $0x72] sm:$0xff] %vm192_vm0, %v226_v45  ;;  %v1286_v45 = vperm.slane %v1218_v0, 5 }
  0x2b   : > { %235 = vst.msk [vmem:[#allocation2 + $0x82] sm:$0xff] %vm192_vm0, %v227_v46  ;;  %v1289_v46 = vperm.slane %v1218_v0, 6 }
  0x2c   : > { %v1195_v53 = vld [vmem:[#allocation2 + $0x20] sm:$0xff]  ;;  %1799 = vst [vmem:[#allocation3_spill] sm:$0xff] %v1211_v62 }
  0x2d   : > { %v1197_v54 = vld [vmem:[#allocation2 + $0x21] sm:$0xff]  ;;  %v252_v57 = vmul.f32 %v1099_v2, %v1195_v53  ;;  %v1206_v59 = vld [vmem:[#allocation2 + $0x30] sm:$0xff]  ;;  %1800 = vst [vmem:[#allocation4_spill] sm:$0xff] %v1218_v0  ;;  %v377_v19 = vmul.f32 %v1139_v21, %v1195_v53 }
  0x2e   : > { %v1199_v55 = vld [vmem:[#allocation2 + $0x22] sm:$0xff]  ;;  %v277_v58 = vmul.f32 %v1106_v4, %v1197_v54  ;;  %v1213_v63 = vld [vmem:[#allocation2 + $0x31] sm:$0xff]  ;;  %v253_v12 = vmul.f32 %v1099_v2, %v1206_v59  ;;  %1804 = vst [vmem:[#allocation8_spill] sm:$0xff] %v1258_v29  ;;  %v402_v41 = vmul.f32 %v1157_v28, %v1197_v54 }
  0x2f   : > { %v302_v8 = vmul.f32 %v1108_v5, %v1199_v55  ;;  %v1226_v9 = vld [vmem:[#allocation2 + $0x23] sm:$0xff]  ;;  %v1228_v10 = vld [vmem:[#allocation2 + $0x32] sm:$0xff]  ;;  %v278_v14 = vmul.f32 %v1106_v4, %v1213_v63  ;;  %v385_v31 = vadd.f32 %v377_v19, %v359_v60  ;;  %1806 = vst [vmem:[#allocation10_spill] sm:$0xff] %v1267_v34  ;;  %v427_v60 = vmul.f32 %v1172_v37, %v1199_v55 }
  0x30   : > { %v285_v6 = vadd.f32 %v277_v58, %v252_v57  ;;  %1801 = vst [vmem:[#allocation5_spill] sm:$0xff] %v1228_v10  ;;  %v1236_v15 = vld [vmem:[#allocation2 + $0x33] sm:$0xff]  ;;  %v1244_v20 = vld [vmem:[#allocation2 + $0x40] sm:$0xff]  ;;  %v327_v25 = vmul.f32 %v1115_v7, %v1226_v9  ;;  %v303_v27 = vmul.f32 %v1108_v5, %v1228_v10 }
  0x31   : > { %1802 = vst [vmem:[#allocation6_spill] sm:$0xff] %v1236_v15  ;;  %v1246_v22 = vld [vmem:[#allocation2 + $0x41] sm:$0xff]  ;;  %v286_v26 = vadd.f32 %v278_v14, %v253_v12  ;;  %v328_v32 = vmul.f32 %v1115_v7, %v1236_v15  ;;  %v254_v39 = vmul.f32 %v1099_v2, %v1244_v20  ;;  %v1278_v42 = vld [vmem:[#allocation2 + $0x34] sm:$0xff]  ;;  %v410_v58 = vadd.f32 %v402_v41, %v385_v31 }
  0x32   : > { %v310_v18 = vadd.f32 %v302_v8, %v285_v6  ;;  %1803 = vst [vmem:[#allocation7_spill] sm:$0xff] %v1246_v22  ;;  %v1260_v30 = vld [vmem:[#allocation2 + $0x24] sm:$0xff]  ;;  %v279_v40 = vmul.f32 %v1106_v4, %v1246_v22  ;;  %v1295_v56 = vld [vmem:[#allocation2 + $0x50] sm:$0xff]  ;;  %v452_v6 = vmul.f32 %v1187_v48, %v1226_v9  ;;  %v228_v14 = vld [vmem:[%s1152_s18 + $0x38] sm:$0xff]  ;;  %v353_v19 = vmul.f32 %v1126_v13, %v1278_v42 }
  0x33   : > { %v1264_v33 = vld [vmem:[#allocation2 + $0x42] sm:$0xff]  ;;  %1807 = vst [vmem:[#allocation11_spill] sm:$0xff] %v1270_v35  ;;  %v311_v38 = vadd.f32 %v303_v27, %v286_v26  ;;  %v352_v47 = vmul.f32 %v1126_v13, %v1260_v30  ;;  %v1297_v57 = vld [vmem:[#allocation2 + $0x51] sm:$0xff]  ;;  %v1305_v8 = vmul.f32 %v1191_v51, %v1260_v30  ;;  %v1319_v31 = vmul.f32 %v1211_v62, %v1195_v53 }
  0x34   : > { %1805 = vst [vmem:[#allocation9_spill] sm:$0xff] %v1264_v33  ;;  %v335_v36 = vadd.f32 %v327_v25, %v310_v18  ;;  %v1280_v43 = vld [vmem:[#allocation2 + $0x43] sm:$0xff]  ;;  %v287_v50 = vadd.f32 %v279_v40, %v254_v39  ;;  %v304_v52 = vmul.f32 %v1108_v5, %v1264_v33  ;;  %v1314_v27 = vld [vmem:[#allocation2 + $0x52] sm:$0xff]  ;;  %v403_v40 = vmul.f32 %v1157_v28, %v1213_v63 }
  0x35   : > { %1808 = vst [vmem:[#allocation12_spill] sm:$0xff] %v1278_v42  ;;  %v336_v49 = vadd.f32 %v328_v32, %v311_v38  ;;  %v1307_v12 = vld [vmem:[#allocation2 + $0x44] sm:$0xff]  ;;  %v329_v26 = vmul.f32 %v1115_v7, %v1280_v43  ;;  %v378_v32 = vmul.f32 %v1139_v21, %v1206_v59  ;;  %v280_v38 = vmul.f32 %v1106_v4, %v1297_v57 }
  0x36   : > { %1809 = vst [vmem:[#allocation13_spill] sm:$0xff] %v1280_v43  ;;  %v360_v18 = vadd.f32 %v352_v47, %v335_v36  ;;  %v312_v25 = vadd.f32 %v304_v52, %v287_v50  ;;  %v255_v36 = vmul.f32 %v1099_v2, %v1295_v56  ;;  %v354_v47 = vmul.f32 %v1126_v13, %v1307_v12  ;;  %v1331_v50 = vld [vmem:[#allocation2 + $0x53] sm:$0xff]  ;;  %v1371_v34 = vld [vmem:[#allocation2 + $0x63] sm:$0xff] }
  0x37   : > { %1810 = vst [vmem:[#allocation14_spill] sm:$0xff] %v1283_v44  ;;  %v361_v39 = vadd.f32 %v353_v19, %v336_v49  ;;  %v435_v53 = vadd.f32 %v427_v60, %v410_v58  ;;  %v428_v52 = vmul.f32 %v1172_v37, %v1228_v10  ;;  %v1339_v49 = vld [vmem:[#allocation2 + $0x61] sm:$0xff]  ;;  %v379_v44 = vmul.f32 %v1139_v21, %v1244_v20  ;;  %v1345_v58 = vld [vmem:[#allocation2 + $0x54] sm:$0xff] }
  0x38   : > { %1811 = vst [vmem:[#allocation15_spill] sm:$0xff] %v1286_v45  ;;  %v337_v41 = vadd.f32 %v329_v26, %v312_v25  ;;  %v1337_v45 = vld [vmem:[#allocation2 + $0x60] sm:$0xff]  ;;  %v386_v19 = vadd.f32 %v378_v32, %v360_v18  ;;  %v453_v25 = vmul.f32 %v1187_v48, %v1236_v15  ;;  %v1349_v60 = vmul.f32 %v1191_v51, %v1278_v42  ;;  %v1375_v10 = vld [vmem:[#allocation2 + $0x70] sm:$0xff] }
  0x39   : > { %1812 = vst [vmem:[#allocation16_spill] sm:$0xff] %v1289_v46  ;;  %v305_v46 = vmul.f32 %v1108_v5, %v1314_v27  ;;  %v330_v18 = vmul.f32 %v1115_v7, %v1331_v50  ;;  %v1357_v32 = vld [vmem:[#allocation2 + $0x62] sm:$0xff]  ;;  %v256_v0 = vmul.f32 %v1099_v2, %v1337_v45  ;;  %v1365_v35 = vadd.f32 %v452_v6, %v435_v53 }
  0x3a   : > { %1813 = vst [vmem:[#allocation17_spill] sm:$0xff] %v1297_v57  ;;  %v362_v26 = vadd.f32 %v354_v47, %v337_v41  ;;  %v387_v41 = vadd.f32 %v379_v44, %v361_v39  ;;  %v380_v47 = vmul.f32 %v1139_v21, %v1295_v56  ;;  %v355_v42 = vmul.f32 %v1126_v13, %v1345_v58 }
  0x3b   : > { %236 = vst.msk [vmem:[#allocation2 + $0x92] sm:$0xff] %vm192_vm0, %v228_v14  ;;  %v288_v14 = vadd.f32 %v280_v38, %v255_v36  ;;  %v1353_v36 = vmul.f32 %v1211_v62, %v1206_v59  ;;  %v411_v44 = vadd.f32 %v403_v40, %v386_v19  ;;  %v306_v29 = vmul.f32 %v1108_v5, %v1357_v32 }
  0x3c   : > { %1814 = vst [vmem:[#allocation18_spill] sm:$0xff] %v1349_v60  ;;  %v281_v60 = vmul.f32 %v1106_v4, %v1339_v49  ;;  %v388_v39 = vadd.f32 %v380_v47, %v362_v26  ;;  %v429_v6 = vmul.f32 %v1172_v37, %v1264_v33  ;;  %v454_v53 = vmul.f32 %v1187_v48, %v1280_v43  ;;  %v1391_v47 = vld [vmem:[#allocation2 + $0x72] sm:$0xff] }
  0x3d   : > { %1815 = vst [vmem:[#allocation19_spill] sm:$0xff] %v1353_v36  ;;  %v313_v38 = vadd.f32 %v305_v46, %v288_v14  ;;  %v404_v46 = vmul.f32 %v1157_v28, %v1246_v22  ;;  %v1377_v36 = vld [vmem:[#allocation2 + $0x71] sm:$0xff]  ;;  %v381_v40 = vmul.f32 %v1139_v21, %v1337_v45  ;;  %v405_v19 = vmul.f32 %v1157_v28, %v1297_v57 }
  0x3e   : > { %v289_v15 = vadd.f32 %v281_v60, %v256_v0  ;;  %v331_v60 = vmul.f32 %v1115_v7, %v1371_v34  ;;  %1816 = vst [vmem:[#allocation20_spill] sm:$0xff] %v1391_v47  ;;  %v1395_v33 = vmul.f32 %v1191_v51, %v1307_v12  ;;  %v1407_v22 = vmul.f32 %v1211_v62, %v1244_v20 }
  0x3f   : > { %v338_v14 = vadd.f32 %v330_v18, %v313_v38  ;;  %v1383_v18 = vld [vmem:[#allocation2 + $0x64] sm:$0xff]  ;;  %v412_v0 = vadd.f32 %v404_v46, %v387_v41  ;;  %v282_v41 = vmul.f32 %v1106_v4, %v1377_v36  ;;  %v436_v46 = vadd.f32 %v428_v52, %v411_v44 }
  0x40   : > { %v314_v26 = vadd.f32 %v306_v29, %v289_v15  ;;  %1817 = vst [vmem:[#allocation21_spill] sm:$0xff] %v1395_v33  ;;  %v413_v43 = vadd.f32 %v405_v19, %v388_v39  ;;  %v356_v15 = vmul.f32 %v1126_v13, %v1383_v18  ;;  %v1403_v29 = vld [vmem:[#allocation2 + $0x73] sm:$0xff]  ;;  %v430_v52 = vmul.f32 %v1172_v37, %v1314_v27 }
  0x41   : > { %v363_v38 = vadd.f32 %v355_v42, %v338_v14  ;;  %v257_v14 = vmul.f32 %v1099_v2, %v1375_v10  ;;  %1818 = vst [vmem:[#allocation22_spill] sm:$0xff] %v1403_v29  ;;  %v307_v2 = vmul.f32 %v1108_v5, %v1391_v47  ;;  %v437_v4 = vadd.f32 %v429_v6, %v412_v0  ;;  %v1417_v19 = vld [vmem:[#allocation2 + $0x74] sm:$0xff] }
  0x42   : > { %v339_v57 = vadd.f32 %v331_v60, %v314_v26  ;;  %v455_v44 = vmul.f32 %v1187_v48, %v1331_v50  ;;  %1819 = vst [vmem:[#allocation23_spill] sm:$0xff] %v1417_v19  ;;  %v332_v33 = vmul.f32 %v1115_v7, %v1403_v29  ;;  %v438_v5 = vadd.f32 %v430_v52, %v413_v43 }
  0x43   : > { %v389_v42 = vadd.f32 %v381_v40, %v363_v38  ;;  %v406_v38 = vmul.f32 %v1157_v28, %v1339_v49  ;;  %v290_v40 = vadd.f32 %v282_v41, %v257_v14  ;;  %v382_v14 = vmul.f32 %v1139_v21, %v1375_v10 }
  0x44   : > { %v364_v39 = vadd.f32 %v356_v15, %v339_v57  ;;  %v461_v41 = vadd.f32 %v453_v25, %v436_v46  ;;  %v1425_v6 = vmul.f32 %v1191_v51, %v1345_v58  ;;  %v1429_v0 = vmul.f32 %v1211_v62, %v1295_v56  ;;  %v1431_v57 = vld [vmem:[#allocation2 + $0x80] sm:$0xff] }
  0x45   : > { %v414_v26 = vadd.f32 %v406_v38, %v389_v42  ;;  %v315_v60 = vadd.f32 %v307_v2, %v290_v40  ;;  %1820 = vst [vmem:[#allocation24_spill] sm:$0xff] %v1431_v57  ;;  %v431_v42 = vmul.f32 %v1172_v37, %v1357_v32  ;;  %v357_v7 = vmul.f32 %v1126_v13, %v1417_v19 }
  0x46   : > { %v390_v38 = vadd.f32 %v382_v14, %v364_v39  ;;  %v1437_v25 = vadd.f32 %v454_v53, %v437_v4  ;;  %v456_v43 = vmul.f32 %v1187_v48, %v1371_v34  ;;  %v1443_v46 = vmul.f32 %v1191_v51, %v1383_v18  ;;  %v1451_v53 = vld [vmem:[#allocation2 + $0x81] sm:$0xff] }
  0x47   : > { %v340_v15 = vadd.f32 %v332_v33, %v315_v60  ;;  %v484_v40 = vadd.f32 %v1209_v61, %v1222_v3  ;;  %v439_v2 = vadd.f32 %v431_v42, %v414_v26  ;;  %v407_v33 = vmul.f32 %v1157_v28, %v1377_v36  ;;  %1821 = vst [vmem:[#allocation25_spill] sm:$0xff] %v1451_v53  ;;  %v1459_v60 = vld [vmem:[#allocation2 + $0x82] sm:$0xff] }
  0x48   : > { %v383_v13 = vmul.f32 %v1139_v21, %v1431_v57  ;;  %v1453_v4 = vadd.f32 %v455_v44, %v438_v5  ;;  %v1457_v39 = vmul.f32 %v1211_v62, %v1337_v45  ;;  %1822 = vst [vmem:[#allocation26_spill] sm:$0xff] %v1459_v60  ;;  %v1461_v14 = vld [vmem:[#allocation2 + $0x83] sm:$0xff]  ;;  %v526_v3 = vmul.f32 %v1220_v1, %v1197_v54 }
  0x49   : > { %v365_v52 = vadd.f32 %v357_v7, %v340_v15  ;;  %1823 = vst [vmem:[#allocation27_spill] sm:$0xff] %v1461_v14  ;;  %v509_v61 = vadd.f32 %v1319_v31, %v484_v40  ;;  %v415_v26 = vadd.f32 %v407_v33, %v390_v38  ;;  %v432_v21 = vmul.f32 %v1172_v37, %v1391_v47  ;;  %v1474_v42 = vld [vmem:[#allocation2 + $0x84] sm:$0xff]  ;;  %v1842_v47 = vld [vmem:[#allocation9_spill] sm:$0xff] }
  0x4a   : > { %v457_v44 = vmul.f32 %v1187_v48, %v1403_v29  ;;  %v1472_v5 = vmul.f32 %v1191_v51, %v1417_v19  ;;  %1825 = vst [vmem:[#allocation29_spill] sm:$0xff] %v1474_v42  ;;  %v1478_v15 = vmul.f32 %v1211_v62, %v1375_v10  ;;  %v408_v54 = vmul.f32 %v1157_v28, %v1451_v53 }
  0x4b   : > { %v534_v31 = vadd.f32 %v526_v3, %v509_v61  ;;  %v551_v7 = vmul.f32 %v1230_v11, %v1199_v55  ;;  %v1484_v38 = vadd.f32 %v456_v43, %v439_v2  ;;  %v391_v40 = vadd.f32 %v383_v13, %v365_v52  ;;  %v1829_v13 = vld [vmem:[#allocation19_spill] sm:$0xff]  ;;  %v1830_v61 = vld [vmem:[#allocation5_spill] sm:$0xff]  ;;  %v1831_v3 = vld [vmem:[#allocation8_spill] sm:$0xff] }
  0x4c   : > { %1824 = vst [vmem:[#allocation28_spill] sm:$0xff] %v1472_v5  ;;  %v433_v33 = vmul.f32 %v1172_v37, %v1459_v60  ;;  %v1490_v5 = vmul.f32 %v1187_v48, %v1461_v14  ;;  %v1494_v19 = vmul.f32 %v1191_v51, %v1474_v42  ;;  %v576_v28 = vmul.f32 %v1238_v16, %v1226_v9  ;;  %v1840_v60 = vld [vmem:[#allocation15_spill] sm:$0xff] }
  0x4d   : > { %v559_v29 = vadd.f32 %v551_v7, %v534_v31  ;;  %v485_v55 = vadd.f32 %v1305_v8, %v1365_v35  ;;  %v440_v43 = vadd.f32 %v432_v21, %v415_v26  ;;  %v1502_v2 = vmul.f32 %v1211_v62, %v1431_v57  ;;  %v1832_v21 = vld [vmem:[#allocation6_spill] sm:$0xff]  ;;  %v1839_v62 = vld [vmem:[#allocation7_spill] sm:$0xff] }
  0x4e   : > { %1826 = vst [vmem:[#allocation30_spill] sm:$0xff] %v1490_v5  ;;  %v601_v37 = vmul.f32 %v1240_v17, %v1260_v30  ;;  %v627_v48 = vmul.f32 %v1248_v23, %v1206_v59  ;;  %v652_v52 = vmul.f32 %v1251_v24, %v1213_v63  ;;  %v527_v35 = vmul.f32 %v1220_v1, %v1213_v63  ;;  %v1833_v31 = vld [vmem:[#allocation10_spill] sm:$0xff]  ;;  %v1834_v30 = vld [vmem:[#allocation12_spill] sm:$0xff] }
  0x4f   : > { %1827 = vst [vmem:[#allocation31_spill] sm:$0xff] %v1494_v19  ;;  %v584_v51 = vadd.f32 %v576_v28, %v559_v29  ;;  %v510_v9 = vadd.f32 %v1829_v13, %v485_v55  ;;  %v416_v8 = vadd.f32 %v408_v54, %v391_v40  ;;  %v677_v26 = vmul.f32 %v1831_v3, %v1830_v61  ;;  %v1835_v19 = vld [vmem:[#allocation11_spill] sm:$0xff]  ;;  %v1522_v59 = vld [vmem:[%s1759_s1 + $0x18] ss:$0 sm:$0xff]  ;;  %v1836_v28 = vld [vmem:[#allocation4_spill] sm:$0xff] }
  0x50   : > { %1828 = vst [vmem:[#allocation32_spill] sm:$0xff] %v1502_v2  ;;  %v702_v7 = vmul.f32 %v1833_v31, %v1832_v21  ;;  %v727_v42 = vmul.f32 %v1835_v19, %v1834_v30  ;;  %v1525_v55 = vperm.slane %v1836_v28, 7  ;;  %v552_v54 = vmul.f32 %v1230_v11, %v1830_v61  ;;  %v1838_v13 = vld [vmem:[#allocation14_spill] sm:$0xff] }
  0x51   : > { %v609_v29 = vadd.f32 %v601_v37, %v584_v51  ;;  %v535_v63 = vadd.f32 %v527_v35, %v510_v9  ;;  %v1529_v40 = vadd.f32 %v457_v44, %v440_v43  ;;  %v753_v14 = vmul.f32 %v1838_v13, %v1244_v20  ;;  %v1841_v2 = vld [vmem:[#allocation18_spill] sm:$0xff]  ;;  %v1843_v37 = vld [vmem:[#allocation16_spill] sm:$0xff] }
  0x52   : > { %v778_v53 = vmul.f32 %v1840_v60, %v1839_v62  ;;  %v486_v57 = vadd.f32 %v1841_v2, %v461_v41  ;;  %v803_v51 = vmul.f32 %v1843_v37, %v1842_v47  ;;  %v577_v9 = vmul.f32 %v1238_v16, %v1832_v21  ;;  %v1844_v2 = vld [vmem:[#allocation13_spill] sm:$0xff] }
  0x53   : > { %1837 = vst [vmem:[#allocation19_spill] sm:$0xff] %v1529_v40  ;;  %v635_v5 = vadd.f32 %v627_v48, %v609_v29  ;;  %v560_v28 = vadd.f32 %v552_v54, %v535_v63  ;;  %v1540_v35 = vadd.f32 %v433_v33, %v416_v8  ;;  %v1544_v44 = vmul.f32 %v1522_v59, %v1307_v12 }
  0x54   : > { %v511_v43 = vadd.f32 %v1407_v22, %v486_v57  ;;  %v528_v61 = vmul.f32 %v1220_v1, %v1839_v62  ;;  %v828_v48 = vmul.f32 %v1525_v55, %v1844_v2  ;;  %v602_v63 = vmul.f32 %v1240_v17, %v1834_v30 }
  0x55   : > { %v660_v41 = vadd.f32 %v652_v52, %v635_v5  ;;  %v585_v29 = vadd.f32 %v577_v9, %v560_v28  ;;  %v628_v33 = vmul.f32 %v1248_v23, %v1244_v20  ;;  %v653_v8 = vmul.f32 %v1251_v24, %v1839_v62  ;;  %v1845_v62 = vld [vmem:[#allocation21_spill] sm:$0xff] }
  0x56   : > { %v536_v21 = vadd.f32 %v528_v61, %v511_v43  ;;  %v553_v22 = vmul.f32 %v1230_v11, %v1842_v47  ;;  %v678_v5 = vmul.f32 %v1831_v3, %v1842_v47  ;;  %v703_v52 = vmul.f32 %v1833_v31, %v1844_v2 }
  0x57   : > { %v685_v57 = vadd.f32 %v677_v26, %v660_v41  ;;  %v610_v54 = vadd.f32 %v602_v63, %v585_v29  ;;  %v728_v30 = vmul.f32 %v1835_v19, %v1307_v12  ;;  %v578_v20 = vmul.f32 %v1238_v16, %v1844_v2  ;;  %v1846_v41 = vld [vmem:[#allocation17_spill] sm:$0xff] }
  0x58   : > { %v561_v28 = vadd.f32 %v553_v22, %v536_v21  ;;  %v487_v9 = vadd.f32 %v1845_v62, %v1437_v25  ;;  %v754_v26 = vmul.f32 %v1838_v13, %v1295_v56  ;;  %v779_v47 = vmul.f32 %v1840_v60, %v1846_v41 }
  0x59   : > { %v710_v43 = vadd.f32 %v702_v7, %v685_v57  ;;  %v636_v61 = vadd.f32 %v628_v33, %v610_v54  ;;  %v603_v63 = vmul.f32 %v1240_v17, %v1307_v12  ;;  %v529_v2 = vmul.f32 %v1220_v1, %v1846_v41 }
  0x5a   : > { %v586_v29 = vadd.f32 %v578_v20, %v561_v28  ;;  %v512_v21 = vadd.f32 %v1429_v0, %v487_v9  ;;  %v804_v25 = vmul.f32 %v1843_v37, %v1314_v27  ;;  %v829_v7 = vmul.f32 %v1525_v55, %v1331_v50 }
  0x5b   : > { %v735_v22 = vadd.f32 %v727_v42, %v710_v43  ;;  %v661_v40 = vadd.f32 %v653_v8, %v636_v61  ;;  %v629_v57 = vmul.f32 %v1248_v23, %v1295_v56  ;;  %v554_v12 = vmul.f32 %v1230_v11, %v1314_v27 }
  0x5c   : > { %v611_v33 = vadd.f32 %v603_v63, %v586_v29  ;;  %v537_v54 = vadd.f32 %v529_v2, %v512_v21  ;;  %v854_v42 = vmul.f32 %v1522_v59, %v1345_v58  ;;  %v654_v8 = vmul.f32 %v1251_v24, %v1846_v41 }
  0x5d   : > { %v761_v0 = vadd.f32 %v753_v14, %v735_v22  ;;  %v686_v28 = vadd.f32 %v678_v5, %v661_v40  ;;  %v679_v62 = vmul.f32 %v1831_v3, %v1314_v27  ;;  %v579_v56 = vmul.f32 %v1238_v16, %v1331_v50 }
  0x5e   : > { %v637_v20 = vadd.f32 %v629_v57, %v611_v33  ;;  %v562_v9 = vadd.f32 %v554_v12, %v537_v54  ;;  %v704_v14 = vmul.f32 %v1833_v31, %v1331_v50  ;;  %v729_v40 = vmul.f32 %v1835_v19, %v1345_v58 }
  0x5f   : > { %v786_v43 = vadd.f32 %v778_v53, %v761_v0  ;;  %v711_v61 = vadd.f32 %v703_v52, %v686_v28  ;;  %v604_v41 = vmul.f32 %v1240_v17, %v1345_v58  ;;  %v488_v27 = vadd.f32 %v1425_v6, %v1453_v4 }
  0x60   : > { %v662_v5 = vadd.f32 %v654_v8, %v637_v20  ;;  %v587_v29 = vadd.f32 %v579_v56, %v562_v9  ;;  %v755_v53 = vmul.f32 %v1838_v13, %v1337_v45  ;;  %v630_v52 = vmul.f32 %v1248_v23, %v1337_v45 }
  0x61   : > { %v811_v63 = vadd.f32 %v803_v51, %v786_v43  ;;  %v736_v21 = vadd.f32 %v728_v30, %v711_v61  ;;  %v513_v22 = vadd.f32 %v1457_v39, %v488_v27  ;;  %v530_v33 = vmul.f32 %v1220_v1, %v1339_v49 }
  0x62   : > { %v687_v50 = vadd.f32 %v679_v62, %v662_v5  ;;  %v612_v2 = vadd.f32 %v604_v41, %v587_v29  ;;  %v780_v6 = vmul.f32 %v1840_v60, %v1339_v49  ;;  %v655_v4 = vmul.f32 %v1251_v24, %v1339_v49 }
  0x63   : > { %v836_v58 = vadd.f32 %v828_v48, %v811_v63  ;;  %v762_v57 = vadd.f32 %v754_v26, %v736_v21  ;;  %v538_v54 = vadd.f32 %v530_v33, %v513_v22  ;;  %v555_v45 = vmul.f32 %v1230_v11, %v1357_v32 }
  0x64   : > { %v712_v51 = vadd.f32 %v704_v14, %v687_v50  ;;  %v638_v30 = vadd.f32 %v630_v52, %v612_v2  ;;  %v805_v0 = vmul.f32 %v1843_v37, %v1357_v32  ;;  %v680_v48 = vmul.f32 %v1831_v3, %v1357_v32  ;;  %v1847_v2 = vld [vmem:[#allocation20_spill] sm:$0xff] }
  0x65   : > { %v861_v39 = vadd.f32 %v1544_v44, %v836_v58  ;;  %v787_v12 = vadd.f32 %v779_v47, %v762_v57  ;;  %v563_v28 = vadd.f32 %v555_v45, %v538_v54  ;;  %v580_v8 = vmul.f32 %v1238_v16, %v1371_v34  ;;  %v1848_v57 = vld [vmem:[#allocation30_spill] sm:$0xff] }
  0x66   : > { %v737_v49 = vadd.f32 %v729_v40, %v712_v51  ;;  %v663_v26 = vadd.f32 %v655_v4, %v638_v30  ;;  %v830_v20 = vmul.f32 %v1525_v55, %v1371_v34  ;;  %v705_v32 = vmul.f32 %v1833_v31, %v1371_v34 }
  0x67   : > { %v869_v44 = vpack.c.bf16 %v861_v39, %v861_v39  ;;  %v812_v47 = vadd.f32 %v804_v25, %v787_v12  ;;  %v588_v56 = vadd.f32 %v580_v8, %v563_v28  ;;  %v605_v43 = vmul.f32 %v1240_v17, %v1383_v18  ;;  %v1852_v28 = vld [vmem:[#allocation28_spill] sm:$0xff] }
  0x68   : > { %v763_v62 = vadd.f32 %v755_v53, %v737_v49  ;;  %v688_v9 = vadd.f32 %v680_v48, %v663_v26  ;;  %v855_v14 = vmul.f32 %v1522_v59, %v1383_v18  ;;  %v730_v25 = vmul.f32 %v1835_v19, %v1383_v18  ;;  %v1850_v48 = vld [vmem:[#allocation23_spill] sm:$0xff] }
  0x69   : > { %877 = vst.msk [vmem:[%s1624_s28] sm:$0xf] %vm194_vm1, %v869_v44  ;;  %v837_v61 = vadd.f32 %v829_v7, %v812_v47  ;;  %v489_v40 = vadd.f32 %v1443_v46, %v1484_v38  ;;  %v613_v29 = vadd.f32 %v605_v43, %v588_v56  ;;  %v631_v41 = vmul.f32 %v1248_v23, %v1375_v10  ;;  %v1851_v26 = vld [vmem:[#allocation19_spill] sm:$0xff]  ;;  %v1853_v56 = vld [vmem:[#allocation24_spill] sm:$0xff] }
  0x6a   : > { %v788_v5 = vadd.f32 %v780_v6, %v763_v62  ;;  %v713_v34 = vadd.f32 %v705_v32, %v688_v9  ;;  %v756_v63 = vmul.f32 %v1838_v13, %v1375_v10  ;;  %v531_v21 = vmul.f32 %v1220_v1, %v1377_v36  ;;  %v499_v62 = vld [vmem:[#allocation2 + $0x90] sm:$0xff] }
  0x6b   : > { %v862_v27 = vadd.f32 %v854_v42, %v837_v61  ;;  %v514_v7 = vadd.f32 %v1478_v15, %v489_v40  ;;  %v639_v52 = vadd.f32 %v631_v41, %v613_v29  ;;  %v656_v46 = vmul.f32 %v1251_v24, %v1377_v36  ;;  %v1854_v61 = vld [vmem:[#allocation32_spill] sm:$0xff] }
  0x6c   : > { %v813_v18 = vadd.f32 %v805_v0, %v788_v5  ;;  %v738_v53 = vadd.f32 %v730_v25, %v713_v34  ;;  %v781_v50 = vmul.f32 %v1840_v60, %v1377_v36  ;;  %v556_v10 = vmul.f32 %v1230_v11, %v1847_v2  ;;  %v1849_v36 = vld [vmem:[#allocation22_spill] sm:$0xff]  ;;  %v1855_v25 = vld [vmem:[#allocation25_spill] sm:$0xff] }
  0x6d   : > { %v870_v38 = vpack.c.bf16 %v862_v27, %v862_v27  ;;  %v539_v42 = vadd.f32 %v531_v21, %v514_v7  ;;  %v664_v15 = vadd.f32 %v656_v46, %v639_v52  ;;  %v681_v58 = vmul.f32 %v1831_v3, %v1847_v2  ;;  %v1856_v21 = vld [vmem:[#allocation26_spill] sm:$0xff] }
  0x6e   : > { %v838_v22 = vadd.f32 %v830_v20, %v813_v18  ;;  %v764_v33 = vadd.f32 %v756_v63, %v738_v53  ;;  %v466_v6 = vadd.f32 %v1848_v57, %v1540_v35  ;;  %v806_v4 = vmul.f32 %v1843_v37, %v1847_v2  ;;  %v1857_v53 = vld [vmem:[#allocation3_spill] sm:$0xff] }
  0x6f   : > { %878 = vst.msk [vmem:[%s1624_s28 + $0x4] sm:$0xf] %vm194_vm1, %v870_v38  ;;  %v564_v51 = vadd.f32 %v556_v10, %v539_v42  ;;  %v581_v30 = vmul.f32 %v1238_v16, %v1849_v36  ;;  %v689_v39 = vadd.f32 %v681_v58, %v664_v15  ;;  %v706_v12 = vmul.f32 %v1833_v31, %v1849_v36  ;;  %v524_v15 = vld [vmem:[#allocation2 + $0x91] sm:$0xff] }
  0x70   : > { %v863_v54 = vadd.f32 %v855_v14, %v838_v22  ;;  %v789_v45 = vadd.f32 %v781_v50, %v764_v33  ;;  %v831_v0 = vmul.f32 %v1525_v55, %v1849_v36  ;;  %v606_v49 = vmul.f32 %v1240_v17, %v1850_v48  ;;  %v1858_v22 = vld [vmem:[#allocation27_spill] sm:$0xff] }
  0x71   : > { %v589_v35 = vadd.f32 %v581_v30, %v564_v51  ;;  %v490_v8 = vadd.f32 %v1852_v28, %v1851_v26  ;;  %v714_v20 = vadd.f32 %v706_v12, %v689_v39  ;;  %v731_v32 = vmul.f32 %v1835_v19, %v1850_v48  ;;  %v1860_v39 = vld [vmem:[#allocation31_spill] sm:$0xff] }
  0x72   : > { %v871_v44 = vpack.c.bf16 %v863_v54, %v863_v54  ;;  %v814_v47 = vadd.f32 %v806_v4, %v789_v45  ;;  %v632_v43 = vmul.f32 %v1248_v23, %v1853_v56  ;;  %v532_v40 = vmul.f32 %v1220_v1, %v1855_v25  ;;  %v1859_v54 = vld [vmem:[#allocation29_spill] sm:$0xff] }
  0x73   : > { %v614_v9 = vadd.f32 %v606_v49, %v589_v35  ;;  %v515_v14 = vadd.f32 %v1854_v61, %v490_v8  ;;  %v856_v34 = vmul.f32 %v1522_v59, %v1850_v48  ;;  %v739_v29 = vadd.f32 %v731_v32, %v714_v20  ;;  %v799_v49 = vld [vmem:[#allocation2 + $0x92] sm:$0xff] }
  0x74   : > { %879 = vst.msk [vmem:[%s1624_s28 + $0x8] sm:$0xf] %vm194_vm1, %v871_v44  ;;  %v839_v5 = vadd.f32 %v831_v0, %v814_v47  ;;  %v757_v41 = vmul.f32 %v1838_v13, %v1853_v56  ;;  %v657_v63 = vmul.f32 %v1251_v24, %v1855_v25  ;;  %v557_v18 = vmul.f32 %v1230_v11, %v1856_v21  ;;  %v849_v61 = vld [vmem:[#allocation2 + $0x94] sm:$0xff] }
  0x75   : > { %v640_v27 = vadd.f32 %v632_v43, %v614_v9  ;;  %v540_v7 = vadd.f32 %v532_v40, %v515_v14  ;;  %v508_v52 = vmul.f32 %v1857_v53, %v499_v62  ;;  %v782_v50 = vmul.f32 %v1840_v60, %v1855_v25  ;;  %v824_v9 = vld [vmem:[#allocation2 + $0x93] sm:$0xff] }
  0x76   : > { %v864_v46 = vadd.f32 %v856_v34, %v839_v5  ;;  %v765_v38 = vadd.f32 %v757_v41, %v739_v29  ;;  %v682_v2 = vmul.f32 %v1831_v3, %v1856_v21  ;;  %v582_v33 = vmul.f32 %v1238_v16, %v1858_v22  ;;  %v750_v29 = vld [vmem:[#allocation2 + $0xa0] sm:$0xff] }
  0x77   : > { %v665_v42 = vadd.f32 %v657_v63, %v640_v27  ;;  %v565_v10 = vadd.f32 %v557_v18, %v540_v7  ;;  %v807_v4 = vmul.f32 %v1843_v37, %v1856_v21  ;;  %v707_v51 = vmul.f32 %v1833_v31, %v1858_v22 }
  0x78   : > { %v872_v58 = vpack.c.bf16 %v864_v46, %v864_v46  ;;  %v790_v57 = vadd.f32 %v782_v50, %v765_v38  ;;  %v607_v45 = vmul.f32 %v1240_v17, %v1859_v54  ;;  %v491_v12 = vadd.f32 %v1860_v39, %v466_v6 }
  0x79   : > { %v690_v36 = vadd.f32 %v682_v2, %v665_v42  ;;  %v590_v30 = vadd.f32 %v582_v33, %v565_v10  ;;  %v832_v35 = vmul.f32 %v1525_v55, %v1858_v22  ;;  %v732_v48 = vmul.f32 %v1835_v19, %v1859_v54  ;;  %v775_v42 = vld [vmem:[#allocation2 + $0xa1] sm:$0xff] }
  0x7a   : > { %880 = vst.msk [vmem:[%s1624_s28 + $0xc] sm:$0xf] %vm194_vm1, %v872_v58  ;;  %v815_v0 = vadd.f32 %v807_v4, %v790_v57  ;;  %v633_v26 = vmul.f32 %v1248_v23, %v499_v62  ;;  %v516_v44 = vadd.f32 %v508_v52, %v491_v12  ;;  %v533_v47 = vmul.f32 %v1220_v1, %v524_v15 }
  0x7b   : > { %v715_v28 = vadd.f32 %v707_v51, %v690_v36  ;;  %v615_v8 = vadd.f32 %v607_v45, %v590_v30  ;;  %v857_v6 = vmul.f32 %v1522_v59, %v1859_v54  ;;  %v758_v32 = vmul.f32 %v1838_v13, %v499_v62  ;;  %v825_v36 = vld [vmem:[#allocation2 + $0xa3] sm:$0xff] }
  0x7c   : > { %v840_v20 = vadd.f32 %v832_v35, %v815_v0  ;;  %v658_v56 = vmul.f32 %v1251_v24, %v524_v15  ;;  %v541_v25 = vadd.f32 %v533_v47, %v516_v44  ;;  %v558_v40 = vmul.f32 %v799_v49, %v1230_v11  ;;  %v850_v0 = vld [vmem:[#allocation2 + $0xa4] sm:$0xff]  ;;  %v751_v35 = vld [vmem:[#allocation2 + $0xb0] sm:$0xff] }
  0x7d   : > { %v740_v43 = vadd.f32 %v732_v48, %v715_v28  ;;  %v641_v14 = vadd.f32 %v633_v26, %v615_v8  ;;  %v783_v34 = vmul.f32 %v1840_v60, %v524_v15  ;;  %v683_v1 = vmul.f32 %v799_v49, %v1831_v3 }
  0x7e   : > { %v865_v5 = vadd.f32 %v857_v6, %v840_v20  ;;  %v566_v63 = vadd.f32 %v558_v40, %v541_v25  ;;  %v583_v62 = vmul.f32 %v824_v9, %v1238_v16  ;;  %v808_v21 = vmul.f32 %v1843_v37, %v799_v49  ;;  %v776_v20 = vld [vmem:[#allocation2 + $0xb1] sm:$0xff] }
  0x7f   : > { %v766_v41 = vadd.f32 %v758_v32, %v740_v43  ;;  %v666_v27 = vadd.f32 %v658_v56, %v641_v14  ;;  %v708_v18 = vmul.f32 %v824_v9, %v1833_v31  ;;  %v608_v53 = vmul.f32 %v849_v61, %v1240_v17  ;;  %v800_v17 = vld [vmem:[#allocation2 + $0xa2] sm:$0xff]  ;;  %v801_v56 = vld [vmem:[#allocation2 + $0xb2] sm:$0xff] }
  0x80   : > { %v873_v7 = vpack.c.bf16 %v865_v5, %v865_v5  ;;  %v591_v46 = vadd.f32 %v583_v62, %v566_v63  ;;  %v634_v38 = vmul.f32 %v750_v29, %v1248_v23  ;;  %v833_v50 = vmul.f32 %v1525_v55, %v824_v9  ;;  %v826_v14 = vld [vmem:[#allocation2 + $0xb3] sm:$0xff] }
  0x81   : > { %v791_v11 = vadd.f32 %v783_v34, %v766_v41  ;;  %v691_v52 = vadd.f32 %v683_v1, %v666_v27  ;;  %v733_v16 = vmul.f32 %v849_v61, %v1835_v19  ;;  %v858_v33 = vmul.f32 %v1522_v59, %v849_v61  ;;  %v851_v34 = vld [vmem:[#allocation2 + $0xb4] sm:$0xff] }
  0x82   : > { %881 = vst.msk [vmem:[%s1624_s28 + $0x10] sm:$0xf] %vm194_vm1, %v873_v7  ;;  %v616_v22 = vadd.f32 %v608_v53, %v591_v46  ;;  %v759_v15 = vmul.f32 %v1838_v13, %v750_v29  ;;  %v659_v23 = vmul.f32 %v775_v42, %v1251_v24  ;;  %v784_v51 = vmul.f32 %v1840_v60, %v775_v42 }
  0x83   : > { %v816_v2 = vadd.f32 %v808_v21, %v791_v11  ;;  %v716_v10 = vadd.f32 %v708_v18, %v691_v52  ;;  %v684_v39 = vmul.f32 %v800_v17, %v1831_v3  ;;  %v809_v12 = vmul.f32 %v1843_v37, %v800_v17 }
  0x84   : > { %v642_v4 = vadd.f32 %v634_v38, %v616_v22  ;;  %v709_v28 = vmul.f32 %v825_v36, %v1833_v31  ;;  %v834_v8 = vmul.f32 %v1525_v55, %v825_v36  ;;  %v734_v47 = vmul.f32 %v850_v0, %v1835_v19 }
  0x85   : > { %v841_v58 = vadd.f32 %v833_v50, %v816_v2  ;;  %v741_v57 = vadd.f32 %v733_v16, %v716_v10  ;;  %v760_v3 = vmul.f32 %v1838_v13, %v751_v35  ;;  %v859_v32 = vmul.f32 %v1522_v59, %v850_v0 }
  0x86   : > { %v667_v45 = vadd.f32 %v659_v23, %v642_v4  ;;  %v785_v61 = vmul.f32 %v1840_v60, %v776_v20  ;;  %v810_v5 = vmul.f32 %v1843_v37, %v801_v56  ;;  %v835_v13 = vmul.f32 %v1525_v55, %v826_v14 }
  0x87   : > { %v866_v30 = vadd.f32 %v858_v33, %v841_v58  ;;  %v767_v54 = vadd.f32 %v759_v15, %v741_v57  ;;  %v860_v29 = vmul.f32 %v1522_v59, %v851_v34 }
  0x88   : > { %v692_v26 = vadd.f32 %v684_v39, %v667_v45 }
  0x89   : > { %v874_v48 = vpack.c.bf16 %v866_v30, %v866_v30  ;;  %v792_v49 = vadd.f32 %v784_v51, %v767_v54 }
  0x8a   : > { %v717_v44 = vadd.f32 %v709_v28, %v692_v26 }
  0x8b   : > { %882 = vst.msk [vmem:[%s1624_s28 + $0x14] sm:$0xf] %vm194_vm1, %v874_v48  ;;  %v817_v24 = vadd.f32 %v809_v12, %v792_v49 }
  0x8c   : > { %v742_v9 = vadd.f32 %v734_v47, %v717_v44 }
  0x8d   : > { %v842_v6 = vadd.f32 %v834_v8, %v817_v24 }
  0x8e   : > { %v768_v31 = vadd.f32 %v760_v3, %v742_v9 }
  0x8f   : > { %v867_v43 = vadd.f32 %v859_v32, %v842_v6 }
  0x90   : > { %v793_v40 = vadd.f32 %v785_v61, %v768_v31 }
  0x91   : > { %v875_v25 = vpack.c.bf16 %v867_v43, %v867_v43 }
  0x92   : > { %v818_v19 = vadd.f32 %v810_v5, %v793_v40 }
  0x93   : > { %883 = vst.msk [vmem:[%s1624_s28 + $0x18] sm:$0xf] %vm194_vm1, %v875_v25 }
  0x94   : > { %v843_v1 = vadd.f32 %v835_v13, %v818_v19 }
  0x96   : > { %v868_v41 = vadd.f32 %v860_v29, %v843_v1 }
  0x98   : > { %v876_v27 = vpack.c.bf16 %v868_v41, %v868_v41 }
  0x9a   : > { %884 = vst.msk [vmem:[%s1624_s28 + $0x1c] sm:$0xf] %vm194_vm1, %v876_v27 }
  0x9b PF: > { %s12_s11 = sadd.s32 1, %s1046_s11   ;;  %s1861_s9 = smov %s1042_s10 }
  0x9c   : > { %p9_p5 = scmp.ge.s32.totalorder %s12_s11, 4   ;;  %s1862_s10 = smov %s1864_s12 }
  0x9e   :  { %11 = sbr.rel (!%p9_p5) target bundleno = 2 (0x2), region = 66 }

// kernel: fwd.9
= control target key start
LH: loop header
LB: loop body
LE: loop exit
PB: predicated region body
PF: predicated region fallthrough
CT: control target
= control target key end

     0   :  { %vm87_vm0 = vcmask 261120   ;;  %s399_s2 = inlined_call_operand.vmem [shape: bf16[32,32], index: 2, kind: input, shape index: {}]   ;;  %s400_s0 = inlined_call_operand.vmem [shape: f32[128,32], index: 0, kind: input, shape index: {}]   ;;  %s401_s1 = inlined_call_operand.vmem [shape: f32[128,32], index: 1, kind: input, shape index: {}]   ;;  %s402_s3 = inlined_call_operand.vmem [shape: f32[128,32], index: 3, kind: output, shape index: {}]  }
   0x1   :  { %v198_v0 = vld [vmem:[%s399_s2 + $0x8] sm:$0xff]  ;;  %v197_v1 = vld [vmem:[%s399_s2] sm:$0xff]  ;;  %v17_v30 = vld [vmem:[%s400_s0 + $0x10] sm:$0xff] }
   0x2   :  { %v15_v2 = vld [vmem:[%s400_s0] sm:$0xff]  ;;  %v16_v3 = vld [vmem:[%s400_s0 + $0x8] sm:$0xff]  ;;  %118 = vmatpush.bf16.msra.mxu0 %v198_v0  ;;  %199 = vmatpush.bf16.msra.mxu1 %v198_v0  ;;  %v18_v31 = vld [vmem:[%s400_s0 + $0x18] sm:$0xff] }
   0x3   :  { %v31_v4 = vld [vmem:[%s401_s1] sm:$0xff]  ;;  %v32_v5 = vld [vmem:[%s401_s1 + $0x8] sm:$0xff]  ;;  %200 = vmatpush.bf16.msra.mxu2 %v198_v0  ;;  %201 = vmatpush.bf16.msra.mxu3 %v198_v0  ;;  %v33_v32 = vld [vmem:[%s401_s1 + $0x10] sm:$0xff] }
   0x4   :  { %v47_v6 = vmul.f32 %v31_v4, %v15_v2  ;;  %v48_v7 = vmul.f32 %v32_v5, %v16_v3  ;;  %v19_v8 = vld [vmem:[%s400_s0 + $0x20] sm:$0xff]  ;;  %v20_v9 = vld [vmem:[%s400_s0 + $0x28] sm:$0xff]  ;;  %v34_v33 = vld [vmem:[%s401_s1 + $0x18] sm:$0xff]  ;;  %v49_v46 = vmul.f32 %v33_v32, %v17_v30 }
   0x5   :  { %v35_v10 = vld [vmem:[%s401_s1 + $0x20] sm:$0xff]  ;;  %v36_v11 = vld [vmem:[%s401_s1 + $0x28] sm:$0xff]  ;;  %v21_v34 = vld [vmem:[%s400_s0 + $0x30] sm:$0xff]  ;;  %v50_v47 = vmul.f32 %v34_v33, %v18_v31 }
   0x6   :  { %v51_v12 = vmul.f32 %v35_v10, %v19_v8  ;;  %v23_v13 = vld [vmem:[%s400_s0 + $0x40] sm:$0xff]  ;;  %v24_v14 = vld [vmem:[%s400_s0 + $0x48] sm:$0xff]  ;;  %v52_v15 = vmul.f32 %v36_v11, %v20_v9  ;;  %v63_v19 = vpack.c.bf16 %v48_v7, %v47_v6  ;;  %119 = vmatpush.bf16.msra.mxu0 %v197_v1  ;;  %202 = vmatpush.bf16.msra.mxu1 %v197_v1  ;;  %v22_v35 = vld [vmem:[%s400_s0 + $0x38] sm:$0xff] }
   0x7   :  { %v39_v16 = vld [vmem:[%s401_s1 + $0x40] sm:$0xff]  ;;  %v40_v17 = vld [vmem:[%s401_s1 + $0x48] sm:$0xff]  ;;  %203 = vmatpush.bf16.msra.mxu2 %v197_v1  ;;  %204 = vmatpush.bf16.msra.mxu3 %v197_v1  ;;  %v37_v36 = vld [vmem:[%s401_s1 + $0x30] sm:$0xff]  ;;  %v64_v54 = vpack.c.bf16 %v50_v47, %v49_v46 }
   0x8   :  { %v27_v18 = vld [vmem:[%s400_s0 + $0x60] sm:$0xff]  ;;  %v55_v20 = vmul.f32 %v39_v16, %v23_v13  ;;  %v56_v21 = vmul.f32 %v40_v17, %v24_v14  ;;  %v28_v22 = vld [vmem:[%s400_s0 + $0x68] sm:$0xff]  ;;  %v65_v25 = vpack.c.bf16 %v52_v15, %v51_v12  ;;  %v38_v37 = vld [vmem:[%s401_s1 + $0x38] sm:$0xff]  ;;  %v53_v48 = vmul.f32 %v37_v36, %v21_v34 }
   0x9   :  { %v43_v23 = vld [vmem:[%s401_s1 + $0x60] sm:$0xff]  ;;  %v44_v24 = vld [vmem:[%s401_s1 + $0x68] sm:$0xff]  ;;  %189 = vmatmul.msk.bf16.vlgmr.msra.gmra.mxu0 %vm87_vm0, %v63_v19  ;;  %v25_v38 = vld [vmem:[%s400_s0 + $0x50] sm:$0xff]  ;;  %v54_v49 = vmul.f32 %v38_v37, %v22_v35 }
   0xa   :  { %v59_v26 = vmul.f32 %v43_v23, %v27_v18  ;;  %v60_v27 = vmul.f32 %v44_v24, %v28_v22  ;;  %v67_v28 = vpack.c.bf16 %v56_v21, %v55_v20  ;;  %191 = vmatmul.msk.bf16.vlgmr.msra.gmra.mxu1 %vm87_vm0, %v65_v25  ;;  %v26_v39 = vld [vmem:[%s400_s0 + $0x58] sm:$0xff]  ;;  %v41_v40 = vld [vmem:[%s401_s1 + $0x50] sm:$0xff] }
   0xb   :  { %v42_v41 = vld [vmem:[%s401_s1 + $0x58] sm:$0xff]  ;;  %v29_v42 = vld [vmem:[%s400_s0 + $0x70] sm:$0xff]  ;;  %v57_v50 = vmul.f32 %v41_v40, %v25_v38  ;;  %v66_v55 = vpack.c.bf16 %v54_v49, %v53_v48 }
   0xc   :  { %v69_v29 = vpack.c.bf16 %v60_v27, %v59_v26  ;;  %193 = vmatmul.msk.bf16.vlgmr.msra.gmra.mxu2 %vm87_vm0, %v67_v28  ;;  %v30_v43 = vld [vmem:[%s400_s0 + $0x78] sm:$0xff]  ;;  %v45_v44 = vld [vmem:[%s401_s1 + $0x70] sm:$0xff]  ;;  %v58_v51 = vmul.f32 %v42_v41, %v26_v39 }
   0xd   :  { %v46_v45 = vld [vmem:[%s401_s1 + $0x78] sm:$0xff]  ;;  %v61_v52 = vmul.f32 %v45_v44, %v29_v42 }
   0xe   :  { %195 = vmatmul.msk.bf16.vlgmr.msra.gmra.mxu3 %vm87_vm0, %v69_v29  ;;  %v62_v53 = vmul.f32 %v46_v45, %v30_v43  ;;  %v68_v56 = vpack.c.bf16 %v58_v51, %v57_v50 }
  0x10   :  { %v70_v57 = vpack.c.bf16 %v62_v53, %v61_v52 }
  0x19   :  { %190 = vmatmul.msk.bf16.gmra.mxu0 %vm87_vm0, %v64_v54 }
  0x1a   :  { %192 = vmatmul.msk.bf16.gmra.mxu1 %vm87_vm0, %v66_v55 }
  0x1c   :  { %194 = vmatmul.msk.bf16.gmra.mxu2 %vm87_vm0, %v68_v56 }
  0x1e   :  { %196 = vmatmul.msk.bf16.gmra.mxu3 %vm87_vm0, %v70_v57 }
  0x86   :  { %v121_v58 = vpop.f32.mrf.mxu0 }
  0x87   :  { %v131_v59 = vpop.f32.mrf.mxu1  ;;  %161 = vst.msk [vmem:[%s402_s3] sm:$0xff] %vm87_vm0, %v121_v58 }
  0x88   :  { %165 = vst.msk [vmem:[%s402_s3 + $0x20] sm:$0xff] %vm87_vm0, %v131_v59 }
  0x8e   :  { %v123_v62 = vpop.f32.mrf.mxu0 }
  0x8f   :  { %v141_v60 = vpop.f32.mrf.mxu2  ;;  %v133_v63 = vpop.f32.mrf.mxu1  ;;  %162 = vst.msk [vmem:[%s402_s3 + $0x8] sm:$0xff] %vm87_vm0, %v123_v62 }
  0x90   :  { %169 = vst.msk [vmem:[%s402_s3 + $0x40] sm:$0xff] %vm87_vm0, %v141_v60 }
  0x91   :  { %v151_v61 = vpop.f32.mrf.mxu3  ;;  %166 = vst.msk [vmem:[%s402_s3 + $0x28] sm:$0xff] %vm87_vm0, %v133_v63 }
  0x92   :  { %173 = vst.msk [vmem:[%s402_s3 + $0x60] sm:$0xff] %vm87_vm0, %v151_v61 }
  0x96   :  { %v126_v2 = vpop.f32.mrf.mxu0 }
  0x97   :  { %v143_v0 = vpop.f32.mrf.mxu2  ;;  %v136_v3 = vpop.f32.mrf.mxu1  ;;  %163 = vst.msk [vmem:[%s402_s3 + $0x10] sm:$0xff] %vm87_vm0, %v126_v2 }
  0x98   :  { %170 = vst.msk [vmem:[%s402_s3 + $0x48] sm:$0xff] %vm87_vm0, %v143_v0 }
  0x99   :  { %v153_v1 = vpop.f32.mrf.mxu3  ;;  %167 = vst.msk [vmem:[%s402_s3 + $0x30] sm:$0xff] %vm87_vm0, %v136_v3 }
  0x9a   :  { %174 = vst.msk [vmem:[%s402_s3 + $0x68] sm:$0xff] %vm87_vm0, %v153_v1 }
  0x9e   :  { %v128_v6 = vpop.f32.mrf.mxu0 }
  0x9f   :  { %v146_v4 = vpop.f32.mrf.mxu2  ;;  %v138_v7 = vpop.f32.mrf.mxu1  ;;  %164 = vst.msk [vmem:[%s402_s3 + $0x18] sm:$0xff] %vm87_vm0, %v128_v6 }
  0xa0   :  { %171 = vst.msk [vmem:[%s402_s3 + $0x50] sm:$0xff] %vm87_vm0, %v146_v4 }
  0xa1   :  { %v156_v5 = vpop.f32.mrf.mxu3  ;;  %168 = vst.msk [vmem:[%s402_s3 + $0x38] sm:$0xff] %vm87_vm0, %v138_v7 }
  0xa2   :  { %175 = vst.msk [vmem:[%s402_s3 + $0x70] sm:$0xff] %vm87_vm0, %v156_v5 }
  0xa7   :  { %v148_v8 = vpop.f32.mrf.mxu2 }
  0xa8   :  { %172 = vst.msk [vmem:[%s402_s3 + $0x58] sm:$0xff] %vm87_vm0, %v148_v8 }
  0xa9   :  { %v158_v9 = vpop.f32.mrf.mxu3 }
  0xaa   :  { %176 = vst.msk [vmem:[%s402_s3 + $0x78] sm:$0xff] %vm87_vm0, %v158_v9 }

</bundles_post_ra>
